<compile_context>
chip_gen: v7x
topology: tpu7x:2x2x1
jax: 0.10.0
libtpu: 0.0.40
codegen_flags: <defaults>
</compile_context>

<pallas_src>
import functools

import jax
import jax.numpy as jnp
from jax import lax
from jax.experimental import pallas as pl
from jax.experimental.pallas import tpu as pltpu


def _make_dwconv_kernel(Hb, W, DT, n_hblk, nct, dtype):
    """Hb: rows per H block, W: width (sublane axis), DT = D*c_tile (lane axis)."""
    H = Hb * n_hblk
    R = (Hb + 2) * W  # rows of the halo-extended operand

    def kernel(x_ref, x_hbm, m_ref, b_ref, o_ref, halo, sem):
        # x_ref:  (Hb, W, DT)           activation block (b, c-tile squeezed)
        # x_hbm:  (B*nct*H, W, DT)      raw HBM view, used only for halo rows
        # m_ref:  (9, DT, DT)           tap matrices, index = kh*3 + kw
        # b_ref:  (1, DT)               bias
        # o_ref:  (Hb, W, DT)
        # halo:   (2, W, DT) VMEM scratch, sem: 2 DMA semaphores
        j = pl.program_id(0)
        b = pl.program_id(1)
        h = pl.program_id(2)
        nh = pl.num_programs(2)
        row_base = (b * nct + j) * H + h * Hb  # flat row index of this block's first row

        # ---- fetch the two H-halo rows (zero padding at the volume boundary) ----
        @pl.when(h > 0)
        def _():
            pltpu.make_async_copy(x_hbm.at[row_base - 1], halo.at[0], sem.at[0]).start()

        @pl.when(h == 0)
        def _():
            halo[0] = jnp.zeros((W, DT), dtype)

        @pl.when(h < nh - 1)
        def _():
            pltpu.make_async_copy(x_hbm.at[row_base + Hb], halo.at[1], sem.at[1]).start()

        @pl.when(h == nh - 1)
        def _():
            halo[1] = jnp.zeros((W, DT), dtype)

        # Widen / flatten the main block while the halo DMAs are in flight.
        xb = x_ref[...].astype(jnp.float32).reshape(Hb * W, DT)

        @pl.when(h > 0)
        def _():
            pltpu.make_async_copy(x_hbm.at[row_base - 1], halo.at[0], sem.at[0]).wait()

        @pl.when(h < nh - 1)
        def _():
            pltpu.make_async_copy(x_hbm.at[row_base + Hb], halo.at[1], sem.at[1]).wait()

        hp = halo[0].astype(jnp.float32)  # input row r0-1 (or zeros)
        hn = halo[1].astype(jnp.float32)  # input row r0+Hb (or zeros)
        x_ext = jnp.concatenate([hp, xb, hn], axis=0)  # (R, DT)

        # kw = 0 / 2 shifts along W: XLU roll + w-boundary select (wraps masked out).
        w_pos = lax.broadcasted_iota(jnp.int32, (R, DT), 0) % W
        x_l = jnp.where(w_pos != 0, pltpu.roll(x_ext, shift=1, axis=0), 0.0)      # x[w-1]
        x_r = jnp.where(w_pos != W - 1, pltpu.roll(x_ext, shift=R - 1, axis=0), 0.0)  # x[w+1]
        variants = (x_l, x_ext, x_r)

        # 9 MXU matmuls: each folds the 3 kd taps + per-channel weights + d padding.
        s = [None, None, None]
        for kw in range(3):
            v = variants[kw]
            for kh in range(3):
                p = jnp.dot(v, m_ref[kh * 3 + kw], preferred_element_type=jnp.float32)
                s[kh] = p if s[kh] is None else s[kh] + p

        # Combine the kh shifts: ext row t corresponds to input row (r0 + t - 1),
        # output row i needs input rows i-1 (kh=0), i (kh=1), i+1 (kh=2).
        bias_row = b_ref[...].astype(jnp.float32)  # (1, DT), broadcasts over sublanes
        out = (s[0][0:Hb * W]
               + s[1][W:(Hb + 1) * W]
               + s[2][2 * W:(Hb + 2) * W]
               + bias_row)
        o_ref[...] = out.reshape(Hb, W, DT).astype(o_ref.dtype)

    return kernel


def _pick_c_tile(C, D, max_lanes=256):
    """Largest divisor of C with D*tc <= max_lanes, preferring lane-dense (mult of 128)."""
    cands = [t for t in range(1, C + 1) if C % t == 0 and D * t <= max_lanes]
    if not cands:
        return 1
    dense = [t for t in cands if (D * t) % 128 == 0]
    return max(dense) if dense else max(cands)


def _pick_h_tile(H, row_bytes, budget=2 << 20):
    """Largest divisor of H keeping one activation block under ~2 MiB."""
    cands = [t for t in range(1, H + 1) if H % t == 0 and t * row_bytes <= budget]
    return max(cands) if cands else 1


@functools.partial(jax.jit, static_argnames=("H", "W", "D", "c_tile", "h_tile"))
def dwconv_forward(x, weight, bias, H, W, D, c_tile=None, h_tile=None):
    """x: (B, N, C) with N = H*W*D. weight: (C, 3, 3, 3). bias: (C,).
    Returns (B, N, C), matching PyTorch DWConv.forward."""
    B, N, C = x.shape
    assert N == H * W * D
    tc = c_tile if c_tile is not None else _pick_c_tile(C, D)
    assert C % tc == 0
    nct = C // tc
    DT = D * tc
    Hb = h_tile if h_tile is not None else _pick_h_tile(H, W * DT * x.dtype.itemsize)
    assert H % Hb == 0
    n_hblk = H // Hb

    # ---- activations: (B, N, C) -> (B, nct, H, W, D*tc) ----
    x_sp = x.reshape(B, H, W, D, C)
    if nct == 1:
        x_in = x_sp.reshape(B, 1, H, W, DT)  # pure reshape, no data movement
    else:
        # TODO(synk): this transpose is one extra HBM pass; production callers should
        # keep activations in (B, nct, H, W, D*tc) layout upstream.
        x_in = (x_sp.reshape(B, H, W, D, nct, tc)
                .transpose(0, 4, 1, 2, 3, 5)
                .reshape(B, nct, H, W, DT))
    x_halo_src = x_in.reshape(B * nct * H, W, DT)  # flat-row alias for halo DMAs

    # ---- 9 banded block-diagonal (DT x DT) tap matrices per channel tile ----
    # M[kh*3+kw][i, o] = weight[c_o, kh, kw, kd] where i=(d_i,c_i), o=(d_o,c_o),
    # kd = d_i - d_o + 1 in {0,1,2} and c_i == c_o; zero otherwise (d padding baked in).
    # TODO(synk): mats/bias_tab depend only on (weight, bias, shape); cache across calls.
    idx = jnp.arange(DT)
    d_of = idx // tc
    c_of = idx % tc
    kd_mat = d_of[:, None] - d_of[None, :] + 1  # (input lane, output lane)
    sel = ((kd_mat[:, :, None] == jnp.arange(3)[None, None, :]) &
           (c_of[:, None] == c_of[None, :])[:, :, None]).astype(jnp.float32)  # (DT, DT, 3)
    w_r = weight.astype(jnp.float32).reshape(nct, tc, 3, 3, 3)   # (j, c, kh, kw, kd)
    w_col = w_r[:, c_of]                                          # (j, DT, kh, kw, kd)
    mats = jnp.einsum("iok,johwk->jhwio", sel, w_col).reshape(nct, 9, DT, DT)

    bias_tab = jnp.broadcast_to(
        bias.astype(jnp.float32).reshape(nct, 1, 1, tc),
        (nct, 1, D, tc)).reshape(nct, 1, DT)

    kernel = _make_dwconv_kernel(Hb, W, DT, n_hblk, nct, x.dtype)

    flops = int(2 * 9 * B * nct * n_hblk * (Hb + 2) * W * DT * DT)
    bytes_accessed = int(2 * B * H * W * D * C * x.dtype.itemsize
                         + mats.size * 4 + bias_tab.size * 4)

    out = pl.pallas_call(
        kernel,
        out_shape=jax.ShapeDtypeStruct((B, nct, H, W, DT), x.dtype),
        grid_spec=pltpu.PrefetchScalarGridSpec(
            num_scalar_prefetch=0,
            # channel-tile outermost -> tap matrices stay VMEM-resident across (b, h)
            grid=(nct, B, n_hblk),
            in_specs=[
                pl.BlockSpec((None, None, Hb, W, DT), lambda j, b, h: (b, j, h, 0, 0)),
                pl.BlockSpec(memory_space=pl.ANY),               # raw HBM view (halo DMAs)
                pl.BlockSpec((None, 9, DT, DT), lambda j, b, h: (j, 0, 0, 0)),
                pl.BlockSpec((None, 1, DT), lambda j, b, h: (j, 0, 0)),
            ],
            out_specs=pl.BlockSpec((None, None, Hb, W, DT), lambda j, b, h: (b, j, h, 0, 0)),
            scratch_shapes=[
                pltpu.VMEM((2, W, DT), x.dtype),
                pltpu.SemaphoreType.DMA((2,)),
            ],
        ),
        compiler_params=pltpu.CompilerParams(
            dimension_semantics=("parallel", "parallel", "parallel"),
            vmem_limit_bytes=48 * 1024 * 1024,
        ),
        cost_estimate=pl.CostEstimate(
            flops=flops, transcendentals=0, bytes_accessed=bytes_accessed),
    )(x_in, x_halo_src, mats, bias_tab)

    # ---- back to (B, N, C) ----
    if nct == 1:
        out_sp = out.reshape(B, H, W, D, C)
    else:
        out_sp = (out.reshape(B, nct, H, W, D, tc)
                  .transpose(0, 2, 3, 4, 1, 5)
                  .reshape(B, H, W, D, C))
    return out_sp.reshape(B, N, C)


def _reference_dwconv(x, weight, bias, H, W, D):
    """Independent reference using lax.conv_general_dilated (depthwise)."""
    B, N, C = x.shape
    x_ncdhw = jnp.transpose(x, (0, 2, 1)).reshape(B, C, H, W, D)
    w = weight.reshape(C, 1, 3, 3, 3)
    y = lax.conv_general_dilated(
        x_ncdhw, w,
        window_strides=(1, 1, 1),
        padding=((1, 1), (1, 1), (1, 1)),
        dimension_numbers=("NCHWD", "OIHWD", "NCHWD"),
        feature_group_count=C,
    )
    y = y + bias.reshape(1, C, 1, 1, 1)
    return jnp.transpose(y.reshape(B, C, N), (0, 2, 1))


if __name__ == "__main__":
    # Small shapes consistent with the module: dim (C) = 32, spatial 8x8x8, B = 2
    B, C, H, W, D = 2, 32, 8, 8, 8
    N = H * W * D

    key = jax.random.PRNGKey(0)
    kx, kw_, kb = jax.random.split(key, 3)

    # Round inputs to the bf16 grid so the check is insensitive to the MXU's
    # f32-vs-bf16 multiply path (bf16 x bf16 products are exact in the f32 accumulator).
    x = jax.random.normal(kx, (B, N, C), dtype=jnp.float32)
    x = x.astype(jnp.bfloat16).astype(jnp.float32)
    weight = (jax.random.normal(kw_, (C, 3, 3, 3), dtype=jnp.float32) * 0.1)
    weight = weight.astype(jnp.bfloat16).astype(jnp.float32)
    bias = (jax.random.normal(kb, (C,), dtype=jnp.float32) * 0.1)
    bias = bias.astype(jnp.bfloat16).astype(jnp.float32)

    ref = jax.block_until_ready(_reference_dwconv(x, weight, bias, H, W, D))

    # Auto tiling: c_tile=32 (DT=256, lane dense), single H block, grid=(1, 2, 1).
    out = jax.block_until_ready(dwconv_forward(x, weight, bias, H=H, W=W, D=D))
    assert out.shape == (B, N, C)
    assert jnp.allclose(out, ref, rtol=1e-4, atol=1e-4), "mismatch vs reference (auto tiling)"

    # Channel + H tiled path: exercises nct=2, n_hblk=2 (halo DMAs), grid=(2, 2, 2).
    out2 = jax.block_until_ready(
        dwconv_forward(x, weight, bias, H=H, W=W, D=D, c_tile=16, h_tile=4))
    assert jnp.allclose(out2, ref, rtol=1e-4, atol=1e-4), "mismatch vs reference (tiled)"

    print("KERNEL_OK")
</pallas_src>

<mosaic_0001>
module attributes {stable_mosaic.version = 11 : i64} {
  func.func @kernel(%arg0: i32, %arg1: i32, %arg2: i32, %arg3: memref<1x1x8x8x256xf32, #tpu.memory_space<vmem>>, %arg4: memref<16x8x256xf32, #tpu.memory_space<any>>, %arg5: memref<1x9x256x256xf32, #tpu.memory_space<vmem>>, %arg6: memref<1x1x256xf32, #tpu.memory_space<vmem>>, %arg7: memref<1x1x8x8x256xf32, #tpu.memory_space<vmem>>, %arg8: memref<2x8x256xf32, #tpu.memory_space<vmem>>, %arg9: memref<2x!tpu.dma_semaphore, #tpu.memory_space<semaphore_mem>>) attributes {dimension_semantics = [#tpu.dimension_semantics<parallel>, #tpu.dimension_semantics<parallel>, #tpu.dimension_semantics<parallel>], iteration_bounds = array<i64: 1, 2, 1>, scalar_prefetch = 0 : i64, scratch_operands = 2 : i64, tpu.core_type = #tpu.core_type<tc>, window_params = [{transform_indices = @transform_0, window_bounds = array<i64: 1, 1, 8, 8, 256>}, {}, {transform_indices = @transform_2, window_bounds = array<i64: 1, 9, 256, 256>}, {transform_indices = @transform_3, window_bounds = array<i64: 1, 1, 256>}, {transform_indices = @transform_4, window_bounds = array<i64: 1, 1, 8, 8, 256>}]} {
    %c1_i32 = arith.constant 1 : i32
    %0 = arith.muli %arg1, %c1_i32 : i32
    %1 = arith.addi %0, %arg0 : i32
    %c8_i32 = arith.constant 8 : i32
    %2 = arith.muli %1, %c8_i32 : i32
    %c8_i32_0 = arith.constant 8 : i32
    %3 = arith.muli %arg2, %c8_i32_0 : i32
    %4 = arith.addi %2, %3 : i32
    %c0_i32 = arith.constant 0 : i32
    %5 = arith.cmpi sgt, %arg2, %c0_i32 : i32
    %6 = arith.extui %5 : i1 to i32
    %c0_i32_1 = arith.constant 0 : i32
    %7 = arith.cmpi ne, %6, %c0_i32_1 : i32
    scf.if %7 {
      %c1_i32_76 = arith.constant 1 : i32
      %104 = arith.subi %4, %c1_i32_76 : i32
      %c0_i32_77 = arith.constant 0 : i32
      %c0_i32_78 = arith.constant 0 : i32
      %c0_i32_79 = arith.constant 0 : i32
      %c0_i32_80 = arith.constant 0 : i32
      %105 = tpu.memref_slice %arg4[%104, %c0_i32_79, %c0_i32_80] : memref<16x8x256xf32, #tpu.memory_space<any>> -> memref<1x8x256xf32, #tpu.memory_space<any>>
      %106 = tpu.memref_squeeze %105 : memref<1x8x256xf32, #tpu.memory_space<any>> -> memref<8x256xf32, #tpu.memory_space<any>>
      %c0_i32_81 = arith.constant 0 : i32
      %c0_i32_82 = arith.constant 0 : i32
      %107 = tpu.memref_slice %arg8[%c0_i32_77, %c0_i32_81, %c0_i32_82] : memref<2x8x256xf32, #tpu.memory_space<vmem>> -> memref<1x8x256xf32, #tpu.memory_space<vmem>>
      %108 = tpu.memref_squeeze %107 : memref<1x8x256xf32, #tpu.memory_space<vmem>> -> memref<8x256xf32, #tpu.memory_space<vmem>>
      %109 = tpu.memref_slice %arg9[%c0_i32_78] : memref<2x!tpu.dma_semaphore, #tpu.memory_space<semaphore_mem>> -> memref<1x!tpu.dma_semaphore, #tpu.memory_space<semaphore_mem>>
      %110 = tpu.memref_squeeze %109 : memref<1x!tpu.dma_semaphore, #tpu.memory_space<semaphore_mem>> -> memref<!tpu.dma_semaphore, #tpu.memory_space<semaphore_mem>>
      tpu.enqueue_dma source(%106 : memref<8x256xf32, #tpu.memory_space<any>>) target(%108 : memref<8x256xf32, #tpu.memory_space<vmem>>) target_semaphore(%110 : memref<!tpu.dma_semaphore, #tpu.memory_space<semaphore_mem>>)
    } else {
    }
    %c0_i32_2 = arith.constant 0 : i32
    %8 = arith.cmpi eq, %arg2, %c0_i32_2 : i32
    %9 = arith.extui %8 : i1 to i32
    %c0_i32_3 = arith.constant 0 : i32
    %10 = arith.cmpi ne, %9, %c0_i32_3 : i32
    scf.if %10 {
      %cst_76 = arith.constant 0.000000e+00 : f32
      %104 = vector.broadcast %cst_76 : f32 to vector<8x256xf32>
      %c0_77 = arith.constant 0 : index
      %c0_78 = arith.constant 0 : index
      %c0_79 = arith.constant 0 : index
      %105 = vector.load %arg8[%c0_77, %c0_78, %c0_79] : memref<2x8x256xf32, #tpu.memory_space<vmem>>, vector<1x8x256xf32>
      %106 = vector.shape_cast %105 : vector<1x8x256xf32> to vector<8x256xf32>
      %107 = vector.shape_cast %104 : vector<8x256xf32> to vector<1x8x256xf32>
      tpu.vector_store %arg8[%c0_77, %c0_78, %c0_79], %107 {strides = array<i32>} : memref<2x8x256xf32, #tpu.memory_space<vmem>>, vector<1x8x256xf32>,
    } else {
    }
    %c0_i32_4 = arith.constant 0 : i32
    %11 = arith.cmpi slt, %arg2, %c0_i32_4 : i32
    %12 = arith.extui %11 : i1 to i32
    %c0_i32_5 = arith.constant 0 : i32
    %13 = arith.cmpi ne, %12, %c0_i32_5 : i32
    scf.if %13 {
      %c8_i32_76 = arith.constant 8 : i32
      %104 = arith.addi %4, %c8_i32_76 : i32
      %c1_i32_77 = arith.constant 1 : i32
      %c1_i32_78 = arith.constant 1 : i32
      %c0_i32_79 = arith.constant 0 : i32
      %c0_i32_80 = arith.constant 0 : i32
      %105 = tpu.memref_slice %arg4[%104, %c0_i32_79, %c0_i32_80] : memref<16x8x256xf32, #tpu.memory_space<any>> -> memref<1x8x256xf32, #tpu.memory_space<any>>
      %106 = tpu.memref_squeeze %105 : memref<1x8x256xf32, #tpu.memory_space<any>> -> memref<8x256xf32, #tpu.memory_space<any>>
      %c0_i32_81 = arith.constant 0 : i32
      %c0_i32_82 = arith.constant 0 : i32
      %107 = tpu.memref_slice %arg8[%c1_i32_77, %c0_i32_81, %c0_i32_82] : memref<2x8x256xf32, #tpu.memory_space<vmem>> -> memref<1x8x256xf32, #tpu.memory_space<vmem>>
      %108 = tpu.memref_squeeze %107 : memref<1x8x256xf32, #tpu.memory_space<vmem>> -> memref<8x256xf32, #tpu.memory_space<vmem>>
      %109 = tpu.memref_slice %arg9[%c1_i32_78] : memref<2x!tpu.dma_semaphore, #tpu.memory_space<semaphore_mem>> -> memref<1x!tpu.dma_semaphore, #tpu.memory_space<semaphore_mem>>
      %110 = tpu.memref_squeeze %109 : memref<1x!tpu.dma_semaphore, #tpu.memory_space<semaphore_mem>> -> memref<!tpu.dma_semaphore, #tpu.memory_space<semaphore_mem>>
      tpu.enqueue_dma source(%106 : memref<8x256xf32, #tpu.memory_space<any>>) target(%108 : memref<8x256xf32, #tpu.memory_space<vmem>>) target_semaphore(%110 : memref<!tpu.dma_semaphore, #tpu.memory_space<semaphore_mem>>)
    } else {
    }
    %c0_i32_6 = arith.constant 0 : i32
    %14 = arith.cmpi eq, %arg2, %c0_i32_6 : i32
    %15 = arith.extui %14 : i1 to i32
    %c0_i32_7 = arith.constant 0 : i32
    %16 = arith.cmpi ne, %15, %c0_i32_7 : i32
    scf.if %16 {
      %cst_76 = arith.constant 0.000000e+00 : f32
      %104 = vector.broadcast %cst_76 : f32 to vector<8x256xf32>
      %c1_77 = arith.constant 1 : index
      %c0_78 = arith.constant 0 : index
      %c0_79 = arith.constant 0 : index
      %105 = vector.load %arg8[%c1_77, %c0_78, %c0_79] : memref<2x8x256xf32, #tpu.memory_space<vmem>>, vector<1x8x256xf32>
      %106 = vector.shape_cast %105 : vector<1x8x256xf32> to vector<8x256xf32>
      %107 = vector.shape_cast %104 : vector<8x256xf32> to vector<1x8x256xf32>
      tpu.vector_store %arg8[%c1_77, %c0_78, %c0_79], %107 {strides = array<i32>} : memref<2x8x256xf32, #tpu.memory_space<vmem>>, vector<1x8x256xf32>,
    } else {
    }
    %c0 = arith.constant 0 : index
    %c0_8 = arith.constant 0 : index
    %c0_9 = arith.constant 0 : index
    %c0_10 = arith.constant 0 : index
    %c0_11 = arith.constant 0 : index
    %17 = vector.load %arg3[%c0, %c0_8, %c0_9, %c0_10, %c0_11] : memref<1x1x8x8x256xf32, #tpu.memory_space<vmem>>, vector<1x1x8x8x256xf32>
    %18 = vector.shape_cast %17 : vector<1x1x8x8x256xf32> to vector<8x8x256xf32>
    %19 = vector.shape_cast %18 : vector<8x8x256xf32> to vector<64x256xf32>
    %c0_i32_12 = arith.constant 0 : i32
    %20 = arith.cmpi sgt, %arg2, %c0_i32_12 : i32
    %21 = arith.extui %20 : i1 to i32
    %c0_i32_13 = arith.constant 0 : i32
    %22 = arith.cmpi ne, %21, %c0_i32_13 : i32
    scf.if %22 {
      %c1_i32_76 = arith.constant 1 : i32
      %104 = arith.subi %4, %c1_i32_76 : i32
      %c0_i32_77 = arith.constant 0 : i32
      %c0_i32_78 = arith.constant 0 : i32
      %c0_i32_79 = arith.constant 0 : i32
      %c0_i32_80 = arith.constant 0 : i32
      %105 = tpu.memref_slice %arg4[%104, %c0_i32_79, %c0_i32_80] : memref<16x8x256xf32, #tpu.memory_space<any>> -> memref<1x8x256xf32, #tpu.memory_space<any>>
      %106 = tpu.memref_squeeze %105 : memref<1x8x256xf32, #tpu.memory_space<any>> -> memref<8x256xf32, #tpu.memory_space<any>>
      %c0_i32_81 = arith.constant 0 : i32
      %c0_i32_82 = arith.constant 0 : i32
      %107 = tpu.memref_slice %arg8[%c0_i32_77, %c0_i32_81, %c0_i32_82] : memref<2x8x256xf32, #tpu.memory_space<vmem>> -> memref<1x8x256xf32, #tpu.memory_space<vmem>>
      %108 = tpu.memref_squeeze %107 : memref<1x8x256xf32, #tpu.memory_space<vmem>> -> memref<8x256xf32, #tpu.memory_space<vmem>>
      %109 = tpu.memref_slice %arg9[%c0_i32_78] : memref<2x!tpu.dma_semaphore, #tpu.memory_space<semaphore_mem>> -> memref<1x!tpu.dma_semaphore, #tpu.memory_space<semaphore_mem>>
      %110 = tpu.memref_squeeze %109 : memref<1x!tpu.dma_semaphore, #tpu.memory_space<semaphore_mem>> -> memref<!tpu.dma_semaphore, #tpu.memory_space<semaphore_mem>>
      tpu.wait_dma2 semaphore(%110 : memref<!tpu.dma_semaphore, #tpu.memory_space<semaphore_mem>>) src(%106 : memref<8x256xf32, #tpu.memory_space<any>>) dst(%108 : memref<8x256xf32, #tpu.memory_space<vmem>>)
    } else {
    }
    %c0_i32_14 = arith.constant 0 : i32
    %23 = arith.cmpi slt, %arg2, %c0_i32_14 : i32
    %24 = arith.extui %23 : i1 to i32
    %c0_i32_15 = arith.constant 0 : i32
    %25 = arith.cmpi ne, %24, %c0_i32_15 : i32
    scf.if %25 {
      %c8_i32_76 = arith.constant 8 : i32
      %104 = arith.addi %4, %c8_i32_76 : i32
      %c1_i32_77 = arith.constant 1 : i32
      %c1_i32_78 = arith.constant 1 : i32
      %c0_i32_79 = arith.constant 0 : i32
      %c0_i32_80 = arith.constant 0 : i32
      %105 = tpu.memref_slice %arg4[%104, %c0_i32_79, %c0_i32_80] : memref<16x8x256xf32, #tpu.memory_space<any>> -> memref<1x8x256xf32, #tpu.memory_space<any>>
      %106 = tpu.memref_squeeze %105 : memref<1x8x256xf32, #tpu.memory_space<any>> -> memref<8x256xf32, #tpu.memory_space<any>>
      %c0_i32_81 = arith.constant 0 : i32
      %c0_i32_82 = arith.constant 0 : i32
      %107 = tpu.memref_slice %arg8[%c1_i32_77, %c0_i32_81, %c0_i32_82] : memref<2x8x256xf32, #tpu.memory_space<vmem>> -> memref<1x8x256xf32, #tpu.memory_space<vmem>>
      %108 = tpu.memref_squeeze %107 : memref<1x8x256xf32, #tpu.memory_space<vmem>> -> memref<8x256xf32, #tpu.memory_space<vmem>>
      %109 = tpu.memref_slice %arg9[%c1_i32_78] : memref<2x!tpu.dma_semaphore, #tpu.memory_space<semaphore_mem>> -> memref<1x!tpu.dma_semaphore, #tpu.memory_space<semaphore_mem>>
      %110 = tpu.memref_squeeze %109 : memref<1x!tpu.dma_semaphore, #tpu.memory_space<semaphore_mem>> -> memref<!tpu.dma_semaphore, #tpu.memory_space<semaphore_mem>>
      tpu.wait_dma2 semaphore(%110 : memref<!tpu.dma_semaphore, #tpu.memory_space<semaphore_mem>>) src(%106 : memref<8x256xf32, #tpu.memory_space<any>>) dst(%108 : memref<8x256xf32, #tpu.memory_space<vmem>>)
    } else {
    }
    %c0_16 = arith.constant 0 : index
    %c0_17 = arith.constant 0 : index
    %c0_18 = arith.constant 0 : index
    %26 = vector.load %arg8[%c0_16, %c0_17, %c0_18] : memref<2x8x256xf32, #tpu.memory_space<vmem>>, vector<1x8x256xf32>
    %27 = vector.shape_cast %26 : vector<1x8x256xf32> to vector<8x256xf32>
    %c1 = arith.constant 1 : index
    %c0_19 = arith.constant 0 : index
    %c0_20 = arith.constant 0 : index
    %28 = vector.load %arg8[%c1, %c0_19, %c0_20] : memref<2x8x256xf32, #tpu.memory_space<vmem>>, vector<1x8x256xf32>
    %29 = vector.shape_cast %28 : vector<1x8x256xf32> to vector<8x256xf32>
    %30 = tpu.concatenate %27, %19, %29 in 0 : vector<8x256xf32>, vector<64x256xf32>, vector<8x256xf32> -> vector<80x256xf32>
    %31 = tpu.iota {dimensions = array<i32: 0>} : vector<80x256xi32>
    %c8_i32_21 = arith.constant 8 : i32
    %c0_i32_22 = arith.constant 0 : i32
    %32 = arith.cmpi eq, %c8_i32_21, %c0_i32_22 : i32
    %c1_i32_23 = arith.constant 1 : i32
    %33 = arith.select %32, %c1_i32_23, %c8_i32_21 : i32
    %34 = vector.broadcast %33 : i32 to vector<80x256xi32>
    %35 = arith.remsi %31, %34 : vector<80x256xi32>
    %c0_i32_24 = arith.constant 0 : i32
    %36 = vector.broadcast %c0_i32_24 : i32 to vector<80x256xi32>
    %37 = arith.cmpi ne, %35, %36 : vector<80x256xi32>
    %c0_i32_25 = arith.constant 0 : i32
    %38 = vector.broadcast %c0_i32_25 : i32 to vector<80x256xi32>
    %39 = arith.cmpi slt, %35, %38 : vector<80x256xi32>
    %c0_i32_26 = arith.constant 0 : i32
    %40 = arith.cmpi slt, %33, %c0_i32_26 : i32
    %41 = vector.broadcast %40 : i1 to vector<80x256xi1>
    %42 = vector.broadcast %41 : vector<80x256xi1> to vector<80x256xi1>
    %43 = arith.xori %39, %42 : vector<80x256xi1>
    %44 = arith.andi %43, %37 : vector<80x256xi1>
    %45 = vector.broadcast %33 : i32 to vector<80x256xi32>
    %46 = arith.addi %35, %45 : vector<80x256xi32>
    %47 = arith.select %44, %46, %35 : vector<80x256xi1>, vector<80x256xi32>
    %c0_i32_27 = arith.constant 0 : i32
    %48 = vector.broadcast %c0_i32_27 : i32 to vector<80x256xi32>
    %49 = arith.cmpi ne, %47, %48 : vector<80x256xi32>
    %c1_i32_28 = arith.constant 1 : i32
    %50 = tpu.dynamic_rotate %30 by %c1_i32_28 dim 0 : vector<80x256xf32>, i32 -> vector<80x256xf32>
    %cst = arith.constant 0.000000e+00 : f32
    %51 = vector.broadcast %cst : f32 to vector<80x256xf32>
    %52 = arith.select %49, %50, %51 : vector<80x256xi1>, vector<80x256xf32>
    %c7_i32 = arith.constant 7 : i32
    %53 = vector.broadcast %c7_i32 : i32 to vector<80x256xi32>
    %54 = arith.cmpi ne, %47, %53 : vector<80x256xi32>
    %c79_i32 = arith.constant 79 : i32
    %55 = tpu.dynamic_rotate %30 by %c79_i32 dim 0 : vector<80x256xf32>, i32 -> vector<80x256xf32>
    %cst_29 = arith.constant 0.000000e+00 : f32
    %56 = vector.broadcast %cst_29 : f32 to vector<80x256xf32>
    %57 = arith.select %54, %55, %56 : vector<80x256xi1>, vector<80x256xf32>
    %c0_30 = arith.constant 0 : index
    %c0_31 = arith.constant 0 : index
    %c0_32 = arith.constant 0 : index
    %c0_33 = arith.constant 0 : index
    %58 = vector.load %arg5[%c0_30, %c0_31, %c0_32, %c0_33] : memref<1x9x256x256xf32, #tpu.memory_space<vmem>>, vector<1x1x256x256xf32>
    %59 = vector.shape_cast %58 : vector<1x1x256x256xf32> to vector<256x256xf32>
    %cst_34 = arith.constant dense<0.000000e+00> : vector<80x256xf32>
    %60 = tpu.matmul %52, %59, %cst_34 {dimension_numbers = #tpu.dot_dimension_numbers<[1], [0], [0], [1], [0, 0, 1, 1], [], []>} : vector<80x256xf32>, vector<256x256xf32>, vector<80x256xf32> -> vector<80x256xf32>
    %c0_35 = arith.constant 0 : index
    %c3 = arith.constant 3 : index
    %c0_36 = arith.constant 0 : index
    %c0_37 = arith.constant 0 : index
    %61 = vector.load %arg5[%c0_35, %c3, %c0_36, %c0_37] : memref<1x9x256x256xf32, #tpu.memory_space<vmem>>, vector<1x1x256x256xf32>
    %62 = vector.shape_cast %61 : vector<1x1x256x256xf32> to vector<256x256xf32>
    %cst_38 = arith.constant dense<0.000000e+00> : vector<80x256xf32>
    %63 = tpu.matmul %52, %62, %cst_38 {dimension_numbers = #tpu.dot_dimension_numbers<[1], [0], [0], [1], [0, 0, 1, 1], [], []>} : vector<80x256xf32>, vector<256x256xf32>, vector<80x256xf32> -> vector<80x256xf32>
    %c0_39 = arith.constant 0 : index
    %c6 = arith.constant 6 : index
    %c0_40 = arith.constant 0 : index
    %c0_41 = arith.constant 0 : index
    %64 = vector.load %arg5[%c0_39, %c6, %c0_40, %c0_41] : memref<1x9x256x256xf32, #tpu.memory_space<vmem>>, vector<1x1x256x256xf32>
    %65 = vector.shape_cast %64 : vector<1x1x256x256xf32> to vector<256x256xf32>
    %cst_42 = arith.constant dense<0.000000e+00> : vector<80x256xf32>
    %66 = tpu.matmul %52, %65, %cst_42 {dimension_numbers = #tpu.dot_dimension_numbers<[1], [0], [0], [1], [0, 0, 1, 1], [], []>} : vector<80x256xf32>, vector<256x256xf32>, vector<80x256xf32> -> vector<80x256xf32>
    %c0_43 = arith.constant 0 : index
    %c1_44 = arith.constant 1 : index
    %c0_45 = arith.constant 0 : index
    %c0_46 = arith.constant 0 : index
    %67 = vector.load %arg5[%c0_43, %c1_44, %c0_45, %c0_46] : memref<1x9x256x256xf32, #tpu.memory_space<vmem>>, vector<1x1x256x256xf32>
    %68 = vector.shape_cast %67 : vector<1x1x256x256xf32> to vector<256x256xf32>
    %cst_47 = arith.constant dense<0.000000e+00> : vector<80x256xf32>
    %69 = tpu.matmul %30, %68, %cst_47 {dimension_numbers = #tpu.dot_dimension_numbers<[1], [0], [0], [1], [0, 0, 1, 1], [], []>} : vector<80x256xf32>, vector<256x256xf32>, vector<80x256xf32> -> vector<80x256xf32>
    %70 = arith.addf %60, %69 : vector<80x256xf32>
    %c0_48 = arith.constant 0 : index
    %c4 = arith.constant 4 : index
    %c0_49 = arith.constant 0 : index
    %c0_50 = arith.constant 0 : index
    %71 = vector.load %arg5[%c0_48, %c4, %c0_49, %c0_50] : memref<1x9x256x256xf32, #tpu.memory_space<vmem>>, vector<1x1x256x256xf32>
    %72 = vector.shape_cast %71 : vector<1x1x256x256xf32> to vector<256x256xf32>
    %cst_51 = arith.constant dense<0.000000e+00> : vector<80x256xf32>
    %73 = tpu.matmul %30, %72, %cst_51 {dimension_numbers = #tpu.dot_dimension_numbers<[1], [0], [0], [1], [0, 0, 1, 1], [], []>} : vector<80x256xf32>, vector<256x256xf32>, vector<80x256xf32> -> vector<80x256xf32>
    %74 = arith.addf %63, %73 : vector<80x256xf32>
    %c0_52 = arith.constant 0 : index
    %c7 = arith.constant 7 : index
    %c0_53 = arith.constant 0 : index
    %c0_54 = arith.constant 0 : index
    %75 = vector.load %arg5[%c0_52, %c7, %c0_53, %c0_54] : memref<1x9x256x256xf32, #tpu.memory_space<vmem>>, vector<1x1x256x256xf32>
    %76 = vector.shape_cast %75 : vector<1x1x256x256xf32> to vector<256x256xf32>
    %cst_55 = arith.constant dense<0.000000e+00> : vector<80x256xf32>
    %77 = tpu.matmul %30, %76, %cst_55 {dimension_numbers = #tpu.dot_dimension_numbers<[1], [0], [0], [1], [0, 0, 1, 1], [], []>} : vector<80x256xf32>, vector<256x256xf32>, vector<80x256xf32> -> vector<80x256xf32>
    %78 = arith.addf %66, %77 : vector<80x256xf32>
    %c0_56 = arith.constant 0 : index
    %c2 = arith.constant 2 : index
    %c0_57 = arith.constant 0 : index
    %c0_58 = arith.constant 0 : index
    %79 = vector.load %arg5[%c0_56, %c2, %c0_57, %c0_58] : memref<1x9x256x256xf32, #tpu.memory_space<vmem>>, vector<1x1x256x256xf32>
    %80 = vector.shape_cast %79 : vector<1x1x256x256xf32> to vector<256x256xf32>
    %cst_59 = arith.constant dense<0.000000e+00> : vector<80x256xf32>
    %81 = tpu.matmul %57, %80, %cst_59 {dimension_numbers = #tpu.dot_dimension_numbers<[1], [0], [0], [1], [0, 0, 1, 1], [], []>} : vector<80x256xf32>, vector<256x256xf32>, vector<80x256xf32> -> vector<80x256xf32>
    %82 = arith.addf %70, %81 : vector<80x256xf32>
    %c0_60 = arith.constant 0 : index
    %c5 = arith.constant 5 : index
    %c0_61 = arith.constant 0 : index
    %c0_62 = arith.constant 0 : index
    %83 = vector.load %arg5[%c0_60, %c5, %c0_61, %c0_62] : memref<1x9x256x256xf32, #tpu.memory_space<vmem>>, vector<1x1x256x256xf32>
    %84 = vector.shape_cast %83 : vector<1x1x256x256xf32> to vector<256x256xf32>
    %cst_63 = arith.constant dense<0.000000e+00> : vector<80x256xf32>
    %85 = tpu.matmul %57, %84, %cst_63 {dimension_numbers = #tpu.dot_dimension_numbers<[1], [0], [0], [1], [0, 0, 1, 1], [], []>} : vector<80x256xf32>, vector<256x256xf32>, vector<80x256xf32> -> vector<80x256xf32>
    %86 = arith.addf %74, %85 : vector<80x256xf32>
    %c0_64 = arith.constant 0 : index
    %c8 = arith.constant 8 : index
    %c0_65 = arith.constant 0 : index
    %c0_66 = arith.constant 0 : index
    %87 = vector.load %arg5[%c0_64, %c8, %c0_65, %c0_66] : memref<1x9x256x256xf32, #tpu.memory_space<vmem>>, vector<1x1x256x256xf32>
    %88 = vector.shape_cast %87 : vector<1x1x256x256xf32> to vector<256x256xf32>
    %cst_67 = arith.constant dense<0.000000e+00> : vector<80x256xf32>
    %89 = tpu.matmul %57, %88, %cst_67 {dimension_numbers = #tpu.dot_dimension_numbers<[1], [0], [0], [1], [0, 0, 1, 1], [], []>} : vector<80x256xf32>, vector<256x256xf32>, vector<80x256xf32> -> vector<80x256xf32>
    %90 = arith.addf %78, %89 : vector<80x256xf32>
    %c0_68 = arith.constant 0 : index
    %c0_69 = arith.constant 0 : index
    %c0_70 = arith.constant 0 : index
    %91 = vector.load %arg6[%c0_68, %c0_69, %c0_70] : memref<1x1x256xf32, #tpu.memory_space<vmem>>, vector<1x1x256xf32>
    %92 = vector.shape_cast %91 : vector<1x1x256xf32> to vector<1x256xf32>
    %93 = vector.extract_strided_slice %82 {offsets = [0, 0], sizes = [64, 256], strides = [1, 1]} : vector<80x256xf32> to vector<64x256xf32>
    %94 = vector.extract_strided_slice %86 {offsets = [8, 0], sizes = [64, 256], strides = [1, 1]} : vector<80x256xf32> to vector<64x256xf32>
    %95 = arith.addf %93, %94 : vector<64x256xf32>
    %96 = vector.extract_strided_slice %90 {offsets = [16, 0], sizes = [64, 256], strides = [1, 1]} : vector<80x256xf32> to vector<64x256xf32>
    %97 = arith.addf %95, %96 : vector<64x256xf32>
    %98 = vector.broadcast %92 : vector<1x256xf32> to vector<64x256xf32>
    %99 = arith.addf %97, %98 : vector<64x256xf32>
    %100 = vector.shape_cast %99 : vector<64x256xf32> to vector<8x8x256xf32>
    %c0_71 = arith.constant 0 : index
    %c0_72 = arith.constant 0 : index
    %c0_73 = arith.constant 0 : index
    %c0_74 = arith.constant 0 : index
    %c0_75 = arith.constant 0 : index
    %101 = vector.load %arg7[%c0_71, %c0_72, %c0_73, %c0_74, %c0_75] : memref<1x1x8x8x256xf32, #tpu.memory_space<vmem>>, vector<1x1x8x8x256xf32>
    %102 = vector.shape_cast %101 : vector<1x1x8x8x256xf32> to vector<8x8x256xf32>
    %103 = vector.shape_cast %100 : vector<8x8x256xf32> to vector<1x1x8x8x256xf32>
    tpu.vector_store %arg7[%c0_71, %c0_72, %c0_73, %c0_74, %c0_75], %103 {strides = array<i32>} : memref<1x1x8x8x256xf32, #tpu.memory_space<vmem>>, vector<1x1x8x8x256xf32>,
    return
  }
  func.func @transform_0(%arg0: i32, %arg1: i32, %arg2: i32) -> (i32, i32, i32, i32, i32) {
    %c0_i32 = arith.constant 0 : i32
    %c0_i32_0 = arith.constant 0 : i32
    %c0_i32_1 = arith.constant 0 : i32
    return %arg1, %arg0, %arg2, %c0_i32, %c0_i32_0 : i32, i32, i32, i32, i32
  }
  func.func @transform_2(%arg0: i32, %arg1: i32, %arg2: i32) -> (i32, i32, i32, i32) {
    %c0_i32 = arith.constant 0 : i32
    %c0_i32_0 = arith.constant 0 : i32
    %c0_i32_1 = arith.constant 0 : i32
    %c0_i32_2 = arith.constant 0 : i32
    return %arg0, %c0_i32, %c0_i32_0, %c0_i32_1 : i32, i32, i32, i32
  }
  func.func @transform_3(%arg0: i32, %arg1: i32, %arg2: i32) -> (i32, i32, i32) {
    %c0_i32 = arith.constant 0 : i32
    %c0_i32_0 = arith.constant 0 : i32
    %c0_i32_1 = arith.constant 0 : i32
    return %arg0, %c0_i32, %c0_i32_0 : i32, i32, i32
  }
  func.func @transform_4(%arg0: i32, %arg1: i32, %arg2: i32) -> (i32, i32, i32, i32, i32) {
    %c0_i32 = arith.constant 0 : i32
    %c0_i32_0 = arith.constant 0 : i32
    %c0_i32_1 = arith.constant 0 : i32
    return %arg1, %arg0, %arg2, %c0_i32, %c0_i32_0 : i32, i32, i32, i32, i32
  }
}

</mosaic_0001>

<bundles_post_ra>
// kernel: dwconv_forward.1
= control target key start
LH: loop header
LB: loop body
LE: loop exit
PB: predicated region body
PF: predicated region fallthrough
CT: control target
= control target key end

     0   :  { %s4188_s15 = smov 0   ;;  %s4190_s16 = smov 0   ;;  %s6890_s0 = inlined_call_operand.vmem [shape: f32[2,1,8,8,256], index: 0, kind: input, shape index: {}]   ;;  %s6891_s1 = inlined_call_operand.vmem [shape: f32[16,8,256], index: 1, kind: input, shape index: {}]   ;;  %s6892_s2 = inlined_call_operand.vmem [shape: f32[1,9,256,256], index: 2, kind: input, shape index: {}]   ;;  %s6893_s3 = inlined_call_operand.vmem [shape: f32[1,1,256], index: 3, kind: input, shape index: {}]   ;;  %s6894_s4 = inlined_call_operand.vmem [shape: f32[2,1,8,8,256], index: 4, kind: output, shape index: {}]  }
   0x1   :  { %s4192_s17 = smov 0  }
   0x2 LB: > { %s29_s1 = sadd.s32 1, %s4156_s16  ;;  %p2707_p0 = scmp.ge.s32.totalorder %s4160_s17, 1  ;;  %s4160_s17 = sphi %s4192_s17, %s14_s17   ;;  %s4156_s16 = sphi %s4190_s16, %s7038_s16   ;;  %s4152_s15 = sphi %s4188_s15, %s7037_s15  }
   0x3   : > { %p31_p1 = scmp.ge.s32.totalorder %s29_s1, 2  ;;  %p194_p2 = scmp.lt.s32.totalorder %s4160_s17, 3 }
   0x5   : > { %s7040_s1 = smov (%p31_p1, %s29_s1), 0  ;;  %p195_p3 = pnand %p2707_p0, %p194_p2 }
   0x7   : > { %198 = sbr.rel (%p195_p3) target bundleno = 572 (0x23c), region = 32 }
   0xe   : > { %v2850_v0 = vld [vmem:[%s6892_s2 + $0x208] sm:$0xff]  ;;  %v2852_v1 = vld [vmem:[%s6892_s2 + $0x218] sm:$0xff]  ;;  %v2849_v5 = vld [vmem:[%s6892_s2 + $0x200] sm:$0xff]  ;;  %v6905_v7 = vmov 0.0   ;;  %p246_p4 = scmp.lt.s32.totalorder %s4152_s15, 1 }
   0xf   : > { %v3018_v2 = vld [vmem:[%s6892_s2 + $0xe08] sm:$0xff]  ;;  %v3361_v3 = vpack.c.bf16 %v2852_v1, %v2850_v0  ;;  %v3020_v4 = vld [vmem:[%s6892_s2 + $0xe18] sm:$0xff]  ;;  %v2851_v6 = vld [vmem:[%s6892_s2 + $0x210] sm:$0xff]  ;;  %1652 = vmatprep.mubr.f32.mxu0 %v6905_v7  ;;  %1038 = vmatprep.mubr.f32.mxu1 %v6905_v7 }
  0x10   : > { %v3617_v8 = vpack.c.bf16 %v3020_v4, %v3018_v2  ;;  %v3363_v9 = vpack.c.bf16 %v2851_v6, %v2849_v5  ;;  %v3017_v10 = vld [vmem:[%s6892_s2 + $0xe00] sm:$0xff]  ;;  %v3019_v11 = vld [vmem:[%s6892_s2 + $0xe10] sm:$0xff]  ;;  %v2854_v12 = vld [vmem:[%s6892_s2 + $0x228] sm:$0xff]  ;;  %s7042_s15 = smov (!%p246_p4, %s4152_s15), 1 }
  0x11   : > { %3362 = vmatprep.subr.bf16.mxu1 %v3361_v3  ;;  %v3619_v13 = vpack.c.bf16 %v3019_v11, %v3017_v10  ;;  %v2856_v14 = vld [vmem:[%s6892_s2 + $0x238] sm:$0xff]  ;;  %v3022_v15 = vld [vmem:[%s6892_s2 + $0xe28] sm:$0xff]  ;;  %v2853_v19 = vld [vmem:[%s6892_s2 + $0x220] sm:$0xff]  ;;  %s3357_s9 = sshll.u32 %s7042_s15, 7 }
  0x12   : > { %v3024_v16 = vld [vmem:[%s6892_s2 + $0xe38] sm:$0xff]  ;;  %3618 = vmatprep.subr.bf16.mxu0 %v3617_v8  ;;  %3364 = vmatpush1.bf16.msra.mxu1 %v3363_v9  ;;  %v3365_v17 = vpack.c.bf16 %v2856_v14, %v2854_v12  ;;  %v2855_v20 = vld [vmem:[%s6892_s2 + $0x230] sm:$0xff]  ;;  %v3021_v21 = vld [vmem:[%s6892_s2 + $0xe20] sm:$0xff]  ;;  %s4642_s25 = scalar_lea.vmem %s6890_s0, %s3357_s9  ;;  %s6839_s29 = scalar_lea.vmem %s6894_s4, %s3357_s9 }
  0x13   : > { %v3621_v18 = vpack.c.bf16 %v3024_v16, %v3022_v15  ;;  %3620 = vmatpush1.bf16.msra.mxu0 %v3619_v13  ;;  %v3367_v22 = vpack.c.bf16 %v2855_v20, %v2853_v19  ;;  %v3023_v23 = vld [vmem:[%s6892_s2 + $0xe30] sm:$0xff]  ;;  %v2858_v24 = vld [vmem:[%s6892_s2 + $0x248] sm:$0xff]  ;;  %v2860_v25 = vld [vmem:[%s6892_s2 + $0x258] sm:$0xff] }
  0x14   : > { %3366 = vmatprep.subr.bf16.mxu1 %v3365_v17  ;;  %v3623_v26 = vpack.c.bf16 %v3023_v23, %v3021_v21  ;;  %v3369_v27 = vpack.c.bf16 %v2860_v25, %v2858_v24  ;;  %v3026_v28 = vld [vmem:[%s6892_s2 + $0xe48] sm:$0xff]  ;;  %v3028_v29 = vld [vmem:[%s6892_s2 + $0xe58] sm:$0xff]  ;;  %v2857_v30 = vld [vmem:[%s6892_s2 + $0x240] sm:$0xff] }
  0x15   : > { %3622 = vmatprep.subr.bf16.mxu0 %v3621_v18  ;;  %v3625_v31 = vpack.c.bf16 %v3028_v29, %v3026_v28  ;;  %v2859_v32 = vld [vmem:[%s6892_s2 + $0x250] sm:$0xff]  ;;  %v3025_v33 = vld [vmem:[%s6892_s2 + $0xe40] sm:$0xff]  ;;  %v2862_v36 = vld [vmem:[%s6892_s2 + $0x268] sm:$0xff] }
  0x16   : > { %v3027_v34 = vld [vmem:[%s6892_s2 + $0xe50] sm:$0xff]  ;;  %3368 = vmatpush1.bf16.msra.mxu1 %v3367_v22  ;;  %v3371_v35 = vpack.c.bf16 %v2859_v32, %v2857_v30  ;;  %v2864_v37 = vld [vmem:[%s6892_s2 + $0x278] sm:$0xff]  ;;  %v3030_v38 = vld [vmem:[%s6892_s2 + $0xe68] sm:$0xff] }
  0x17   : > { %3624 = vmatpush1.bf16.msra.mxu0 %v3623_v26  ;;  %3370 = vmatprep.subr.bf16.mxu1 %v3369_v27  ;;  %v3627_v39 = vpack.c.bf16 %v3027_v34, %v3025_v33  ;;  %v3373_v40 = vpack.c.bf16 %v2864_v37, %v2862_v36  ;;  %v3032_v41 = vld [vmem:[%s6892_s2 + $0xe78] sm:$0xff]  ;;  %v2861_v42 = vld [vmem:[%s6892_s2 + $0x260] sm:$0xff]  ;;  %v2863_v43 = vld [vmem:[%s6892_s2 + $0x270] sm:$0xff] }
  0x18   : > { %3626 = vmatprep.subr.bf16.mxu0 %v3625_v31  ;;  %v3629_v44 = vpack.c.bf16 %v3032_v41, %v3030_v38  ;;  %v3029_v45 = vld [vmem:[%s6892_s2 + $0xe60] sm:$0xff]  ;;  %v3031_v46 = vld [vmem:[%s6892_s2 + $0xe70] sm:$0xff]  ;;  %v2866_v47 = vld [vmem:[%s6892_s2 + $0x288] sm:$0xff]  ;;  %v3375_v51 = vpack.c.bf16 %v2863_v43, %v2861_v42 }
  0x19   : > { %v2868_v48 = vld [vmem:[%s6892_s2 + $0x298] sm:$0xff]  ;;  %v3034_v49 = vld [vmem:[%s6892_s2 + $0xe88] sm:$0xff]  ;;  %v3631_v52 = vpack.c.bf16 %v3031_v46, %v3029_v45  ;;  %v2865_v54 = vld [vmem:[%s6892_s2 + $0x280] sm:$0xff] }
  0x1a   : > { %v3036_v50 = vld [vmem:[%s6892_s2 + $0xe98] sm:$0xff]  ;;  %3372 = vmatpush1.bf16.msra.mxu1 %v3371_v35  ;;  %v3377_v53 = vpack.c.bf16 %v2868_v48, %v2866_v47  ;;  %v2867_v55 = vld [vmem:[%s6892_s2 + $0x290] sm:$0xff]  ;;  %v3033_v56 = vld [vmem:[%s6892_s2 + $0xe80] sm:$0xff] }
  0x1b   : > { %3628 = vmatpush1.bf16.msra.mxu0 %v3627_v39  ;;  %3374 = vmatprep.subr.bf16.mxu1 %v3373_v40  ;;  %v3633_v57 = vpack.c.bf16 %v3036_v50, %v3034_v49  ;;  %v3035_v58 = vld [vmem:[%s6892_s2 + $0xe90] sm:$0xff]  ;;  %v2870_v59 = vld [vmem:[%s6892_s2 + $0x2a8] sm:$0xff]  ;;  %v2872_v60 = vld [vmem:[%s6892_s2 + $0x2b8] sm:$0xff]  ;;  %v3379_v63 = vpack.c.bf16 %v2867_v55, %v2865_v54 }
  0x1c   : > { %3630 = vmatprep.subr.bf16.mxu0 %v3629_v44  ;;  %v3038_v61 = vld [vmem:[%s6892_s2 + $0xea8] sm:$0xff]  ;;  %v3040_v62 = vld [vmem:[%s6892_s2 + $0xeb8] sm:$0xff]  ;;  %v3635_v0 = vpack.c.bf16 %v3035_v58, %v3033_v56  ;;  %v3381_v1 = vpack.c.bf16 %v2872_v60, %v2870_v59  ;;  %v2869_v2 = vld [vmem:[%s6892_s2 + $0x2a0] sm:$0xff] }
  0x1d   : > { %v2871_v3 = vld [vmem:[%s6892_s2 + $0x2b0] sm:$0xff]  ;;  %v3037_v4 = vld [vmem:[%s6892_s2 + $0xea0] sm:$0xff]  ;;  %v3637_v5 = vpack.c.bf16 %v3040_v62, %v3038_v61  ;;  %v2874_v8 = vld [vmem:[%s6892_s2 + $0x2c8] sm:$0xff] }
  0x1e   : > { %3376 = vmatpush1.bf16.msra.mxu1 %v3375_v51  ;;  %v3039_v6 = vld [vmem:[%s6892_s2 + $0xeb0] sm:$0xff]  ;;  %v2876_v9 = vld [vmem:[%s6892_s2 + $0x2d8] sm:$0xff]  ;;  %v3042_v10 = vld [vmem:[%s6892_s2 + $0xec8] sm:$0xff]  ;;  %v3383_v12 = vpack.c.bf16 %v2871_v3, %v2869_v2 }
  0x1f   : > { %3632 = vmatpush1.bf16.msra.mxu0 %v3631_v52  ;;  %3378 = vmatprep.subr.bf16.mxu1 %v3377_v53  ;;  %v3044_v11 = vld [vmem:[%s6892_s2 + $0xed8] sm:$0xff]  ;;  %v3639_v13 = vpack.c.bf16 %v3039_v6, %v3037_v4  ;;  %v3385_v14 = vpack.c.bf16 %v2876_v9, %v2874_v8  ;;  %v2873_v15 = vld [vmem:[%s6892_s2 + $0x2c0] sm:$0xff]  ;;  %v2875_v16 = vld [vmem:[%s6892_s2 + $0x2d0] sm:$0xff] }
  0x20   : > { %3634 = vmatprep.subr.bf16.mxu0 %v3633_v57  ;;  %v3041_v17 = vld [vmem:[%s6892_s2 + $0xec0] sm:$0xff]  ;;  %v3641_v18 = vpack.c.bf16 %v3044_v11, %v3042_v10  ;;  %v3043_v19 = vld [vmem:[%s6892_s2 + $0xed0] sm:$0xff]  ;;  %v2878_v20 = vld [vmem:[%s6892_s2 + $0x2e8] sm:$0xff]  ;;  %v3387_v24 = vpack.c.bf16 %v2875_v16, %v2873_v15 }
  0x21   : > { %v2880_v21 = vld [vmem:[%s6892_s2 + $0x2f8] sm:$0xff]  ;;  %v3046_v22 = vld [vmem:[%s6892_s2 + $0xee8] sm:$0xff]  ;;  %v3643_v25 = vpack.c.bf16 %v3043_v19, %v3041_v17  ;;  %v2877_v27 = vld [vmem:[%s6892_s2 + $0x2e0] sm:$0xff] }
  0x22   : > { %3380 = vmatpush1.bf16.msra.mxu1 %v3379_v63  ;;  %v3048_v23 = vld [vmem:[%s6892_s2 + $0xef8] sm:$0xff]  ;;  %v3389_v26 = vpack.c.bf16 %v2880_v21, %v2878_v20  ;;  %v2879_v28 = vld [vmem:[%s6892_s2 + $0x2f0] sm:$0xff]  ;;  %v3045_v29 = vld [vmem:[%s6892_s2 + $0xee0] sm:$0xff] }
  0x23   : > { %3636 = vmatpush1.bf16.msra.mxu0 %v3635_v0  ;;  %3382 = vmatprep.subr.bf16.mxu1 %v3381_v1  ;;  %v3645_v30 = vpack.c.bf16 %v3048_v23, %v3046_v22  ;;  %v3047_v31 = vld [vmem:[%s6892_s2 + $0xef0] sm:$0xff]  ;;  %v2882_v32 = vld [vmem:[%s6892_s2 + $0x308] sm:$0xff]  ;;  %v2884_v33 = vld [vmem:[%s6892_s2 + $0x318] sm:$0xff]  ;;  %v3391_v36 = vpack.c.bf16 %v2879_v28, %v2877_v27 }
  0x24   : > { %3638 = vmatprep.subr.bf16.mxu0 %v3637_v5  ;;  %v3050_v34 = vld [vmem:[%s6892_s2 + $0xf08] sm:$0xff]  ;;  %v3052_v35 = vld [vmem:[%s6892_s2 + $0xf18] sm:$0xff]  ;;  %v3647_v37 = vpack.c.bf16 %v3047_v31, %v3045_v29  ;;  %v3393_v38 = vpack.c.bf16 %v2884_v33, %v2882_v32  ;;  %v2881_v39 = vld [vmem:[%s6892_s2 + $0x300] sm:$0xff] }
  0x25   : > { %v2883_v40 = vld [vmem:[%s6892_s2 + $0x310] sm:$0xff]  ;;  %v3049_v41 = vld [vmem:[%s6892_s2 + $0xf00] sm:$0xff]  ;;  %v3649_v42 = vpack.c.bf16 %v3052_v35, %v3050_v34  ;;  %v2886_v44 = vld [vmem:[%s6892_s2 + $0x328] sm:$0xff] }
  0x26   : > { %3384 = vmatpush1.bf16.msra.mxu1 %v3383_v12  ;;  %v3051_v43 = vld [vmem:[%s6892_s2 + $0xf10] sm:$0xff]  ;;  %v2888_v45 = vld [vmem:[%s6892_s2 + $0x338] sm:$0xff]  ;;  %v3054_v46 = vld [vmem:[%s6892_s2 + $0xf28] sm:$0xff]  ;;  %v3395_v48 = vpack.c.bf16 %v2883_v40, %v2881_v39 }
  0x27   : > { %3640 = vmatpush1.bf16.msra.mxu0 %v3639_v13  ;;  %3386 = vmatprep.subr.bf16.mxu1 %v3385_v14  ;;  %v3056_v47 = vld [vmem:[%s6892_s2 + $0xf38] sm:$0xff]  ;;  %v3651_v49 = vpack.c.bf16 %v3051_v43, %v3049_v41  ;;  %v3397_v50 = vpack.c.bf16 %v2888_v45, %v2886_v44  ;;  %v2885_v51 = vld [vmem:[%s6892_s2 + $0x320] sm:$0xff]  ;;  %v2887_v52 = vld [vmem:[%s6892_s2 + $0x330] sm:$0xff] }
  0x28   : > { %3642 = vmatprep.subr.bf16.mxu0 %v3641_v18  ;;  %v3053_v53 = vld [vmem:[%s6892_s2 + $0xf20] sm:$0xff]  ;;  %v3653_v54 = vpack.c.bf16 %v3056_v47, %v3054_v46  ;;  %v3055_v55 = vld [vmem:[%s6892_s2 + $0xf30] sm:$0xff]  ;;  %v2890_v56 = vld [vmem:[%s6892_s2 + $0x348] sm:$0xff]  ;;  %v3399_v60 = vpack.c.bf16 %v2887_v52, %v2885_v51 }
  0x29   : > { %v2892_v57 = vld [vmem:[%s6892_s2 + $0x358] sm:$0xff]  ;;  %v3058_v58 = vld [vmem:[%s6892_s2 + $0xf48] sm:$0xff]  ;;  %v3655_v61 = vpack.c.bf16 %v3055_v55, %v3053_v53  ;;  %v2889_v63 = vld [vmem:[%s6892_s2 + $0x340] sm:$0xff] }
  0x2a   : > { %3388 = vmatpush1.bf16.msra.mxu1 %v3387_v24  ;;  %v3060_v59 = vld [vmem:[%s6892_s2 + $0xf58] sm:$0xff]  ;;  %v3401_v62 = vpack.c.bf16 %v2892_v57, %v2890_v56  ;;  %v2891_v0 = vld [vmem:[%s6892_s2 + $0x350] sm:$0xff]  ;;  %v3057_v1 = vld [vmem:[%s6892_s2 + $0xf40] sm:$0xff] }
  0x2b   : > { %3644 = vmatpush1.bf16.msra.mxu0 %v3643_v25  ;;  %3390 = vmatprep.subr.bf16.mxu1 %v3389_v26  ;;  %v3657_v2 = vpack.c.bf16 %v3060_v59, %v3058_v58  ;;  %v3059_v3 = vld [vmem:[%s6892_s2 + $0xf50] sm:$0xff]  ;;  %v2894_v4 = vld [vmem:[%s6892_s2 + $0x368] sm:$0xff]  ;;  %v2896_v5 = vld [vmem:[%s6892_s2 + $0x378] sm:$0xff]  ;;  %v3403_v9 = vpack.c.bf16 %v2891_v0, %v2889_v63 }
  0x2c   : > { %3646 = vmatprep.subr.bf16.mxu0 %v3645_v30  ;;  %v3062_v6 = vld [vmem:[%s6892_s2 + $0xf68] sm:$0xff]  ;;  %v3064_v8 = vld [vmem:[%s6892_s2 + $0xf78] sm:$0xff]  ;;  %v3659_v10 = vpack.c.bf16 %v3059_v3, %v3057_v1  ;;  %v3405_v11 = vpack.c.bf16 %v2896_v5, %v2894_v4  ;;  %v2893_v12 = vld [vmem:[%s6892_s2 + $0x360] sm:$0xff] }
  0x2d   : > { %v2895_v13 = vld [vmem:[%s6892_s2 + $0x370] sm:$0xff]  ;;  %v3061_v14 = vld [vmem:[%s6892_s2 + $0xf60] sm:$0xff]  ;;  %v3661_v15 = vpack.c.bf16 %v3064_v8, %v3062_v6  ;;  %v2898_v17 = vld [vmem:[%s6892_s2 + $0x388] sm:$0xff] }
  0x2e   : > { %3392 = vmatpush1.bf16.msra.mxu1 %v3391_v36  ;;  %v3063_v16 = vld [vmem:[%s6892_s2 + $0xf70] sm:$0xff]  ;;  %v2900_v18 = vld [vmem:[%s6892_s2 + $0x398] sm:$0xff]  ;;  %v3066_v19 = vld [vmem:[%s6892_s2 + $0xf88] sm:$0xff]  ;;  %v3407_v21 = vpack.c.bf16 %v2895_v13, %v2893_v12 }
  0x2f   : > { %3648 = vmatpush1.bf16.msra.mxu0 %v3647_v37  ;;  %3394 = vmatprep.subr.bf16.mxu1 %v3393_v38  ;;  %v3068_v20 = vld [vmem:[%s6892_s2 + $0xf98] sm:$0xff]  ;;  %v3663_v22 = vpack.c.bf16 %v3063_v16, %v3061_v14  ;;  %v3409_v23 = vpack.c.bf16 %v2900_v18, %v2898_v17  ;;  %v2897_v24 = vld [vmem:[%s6892_s2 + $0x380] sm:$0xff]  ;;  %v2899_v25 = vld [vmem:[%s6892_s2 + $0x390] sm:$0xff] }
  0x30   : > { %3650 = vmatprep.subr.bf16.mxu0 %v3649_v42  ;;  %v3065_v26 = vld [vmem:[%s6892_s2 + $0xf80] sm:$0xff]  ;;  %v3665_v27 = vpack.c.bf16 %v3068_v20, %v3066_v19  ;;  %v3067_v28 = vld [vmem:[%s6892_s2 + $0xf90] sm:$0xff]  ;;  %v2902_v29 = vld [vmem:[%s6892_s2 + $0x3a8] sm:$0xff]  ;;  %v3411_v33 = vpack.c.bf16 %v2899_v25, %v2897_v24 }
  0x31   : > { %v2904_v30 = vld [vmem:[%s6892_s2 + $0x3b8] sm:$0xff]  ;;  %v3070_v31 = vld [vmem:[%s6892_s2 + $0xfa8] sm:$0xff]  ;;  %v3667_v34 = vpack.c.bf16 %v3067_v28, %v3065_v26  ;;  %v2901_v36 = vld [vmem:[%s6892_s2 + $0x3a0] sm:$0xff] }
  0x32   : > { %3396 = vmatpush1.bf16.msra.mxu1 %v3395_v48  ;;  %v3072_v32 = vld [vmem:[%s6892_s2 + $0xfb8] sm:$0xff]  ;;  %v3413_v35 = vpack.c.bf16 %v2904_v30, %v2902_v29  ;;  %v2903_v37 = vld [vmem:[%s6892_s2 + $0x3b0] sm:$0xff]  ;;  %v3069_v38 = vld [vmem:[%s6892_s2 + $0xfa0] sm:$0xff] }
  0x33   : > { %3652 = vmatpush1.bf16.msra.mxu0 %v3651_v49  ;;  %3398 = vmatprep.subr.bf16.mxu1 %v3397_v50  ;;  %v3669_v39 = vpack.c.bf16 %v3072_v32, %v3070_v31  ;;  %v3071_v40 = vld [vmem:[%s6892_s2 + $0xfb0] sm:$0xff]  ;;  %v2906_v41 = vld [vmem:[%s6892_s2 + $0x3c8] sm:$0xff]  ;;  %v2908_v42 = vld [vmem:[%s6892_s2 + $0x3d8] sm:$0xff]  ;;  %v3415_v45 = vpack.c.bf16 %v2903_v37, %v2901_v36 }
  0x34   : > { %3654 = vmatprep.subr.bf16.mxu0 %v3653_v54  ;;  %v3074_v43 = vld [vmem:[%s6892_s2 + $0xfc8] sm:$0xff]  ;;  %v3076_v44 = vld [vmem:[%s6892_s2 + $0xfd8] sm:$0xff]  ;;  %v3671_v46 = vpack.c.bf16 %v3071_v40, %v3069_v38  ;;  %v3417_v47 = vpack.c.bf16 %v2908_v42, %v2906_v41  ;;  %v2905_v48 = vld [vmem:[%s6892_s2 + $0x3c0] sm:$0xff] }
  0x35   : > { %v2907_v49 = vld [vmem:[%s6892_s2 + $0x3d0] sm:$0xff]  ;;  %v3073_v50 = vld [vmem:[%s6892_s2 + $0xfc0] sm:$0xff]  ;;  %v3673_v51 = vpack.c.bf16 %v3076_v44, %v3074_v43  ;;  %v2910_v53 = vld [vmem:[%s6892_s2 + $0x3e8] sm:$0xff] }
  0x36   : > { %3400 = vmatpush1.bf16.msra.mxu1 %v3399_v60  ;;  %v3075_v52 = vld [vmem:[%s6892_s2 + $0xfd0] sm:$0xff]  ;;  %v2912_v54 = vld [vmem:[%s6892_s2 + $0x3f8] sm:$0xff]  ;;  %v3078_v55 = vld [vmem:[%s6892_s2 + $0xfe8] sm:$0xff]  ;;  %v3419_v57 = vpack.c.bf16 %v2907_v49, %v2905_v48 }
  0x37   : > { %3656 = vmatpush1.bf16.msra.mxu0 %v3655_v61  ;;  %3402 = vmatprep.subr.bf16.mxu1 %v3401_v62  ;;  %v3080_v56 = vld [vmem:[%s6892_s2 + $0xff8] sm:$0xff]  ;;  %v3675_v58 = vpack.c.bf16 %v3075_v52, %v3073_v50  ;;  %v3421_v59 = vpack.c.bf16 %v2912_v54, %v2910_v53  ;;  %v2909_v60 = vld [vmem:[%s6892_s2 + $0x3e0] sm:$0xff]  ;;  %v2911_v61 = vld [vmem:[%s6892_s2 + $0x3f0] sm:$0xff] }
  0x38   : > { %3658 = vmatprep.subr.bf16.mxu0 %v3657_v2  ;;  %v3077_v62 = vld [vmem:[%s6892_s2 + $0xfe0] sm:$0xff]  ;;  %v3677_v63 = vpack.c.bf16 %v3080_v56, %v3078_v55  ;;  %v3079_v0 = vld [vmem:[%s6892_s2 + $0xff0] sm:$0xff]  ;;  %v716_v1 = vld [vmem:[%s6892_s2 + $0x8] sm:$0xff]  ;;  %v3423_v5 = vpack.c.bf16 %v2911_v61, %v2909_v60 }
  0x39   : > { %v718_v2 = vld [vmem:[%s6892_s2 + $0x18] sm:$0xff]  ;;  %v2786_v3 = vld [vmem:[%s6892_s2 + $0xc08] sm:$0xff]  ;;  %v3679_v6 = vpack.c.bf16 %v3079_v0, %v3077_v62  ;;  %v2787_v13 = vld [vmem:[%s6892_s2 + $0xc10] sm:$0xff] }
  0x3a   : > { %3404 = vmatpush1.bf16.msra.mxu1 %v3403_v9  ;;  %v2788_v4 = vld [vmem:[%s6892_s2 + $0xc18] sm:$0xff]  ;;  %v3425_v8 = vpack.c.bf16 %v718_v2, %v716_v1  ;;  %v715_v9 = vld [vmem:[%s6892_s2] sm:$0xff]  ;;  %v720_v14 = vld [vmem:[%s6892_s2 + $0x28] sm:$0xff] }
  0x3b   : > { %3660 = vmatpush1.bf16.msra.mxu0 %v3659_v10  ;;  %3406 = vmatprep.subr.bf16.mxu1 %v3405_v11  ;;  %v717_v10 = vld [vmem:[%s6892_s2 + $0x10] sm:$0xff]  ;;  %v2785_v11 = vld [vmem:[%s6892_s2 + $0xc00] sm:$0xff]  ;;  %v3681_v12 = vpack.c.bf16 %v2788_v4, %v2786_v3  ;;  %v2790_v16 = vld [vmem:[%s6892_s2 + $0xc28] sm:$0xff] }
  0x3c   : > { %3662 = vmatprep.subr.bf16.mxu0 %v3661_v15  ;;  %v722_v15 = vld [vmem:[%s6892_s2 + $0x38] sm:$0xff]  ;;  %v3427_v18 = vpack.c.bf16 %v717_v10, %v715_v9  ;;  %v3683_v19 = vpack.c.bf16 %v2787_v13, %v2785_v11  ;;  %v2791_v25 = vld [vmem:[%s6892_s2 + $0xc30] sm:$0xff]  ;;  %v724_v26 = vld [vmem:[%s6892_s2 + $0x48] sm:$0xff] }
  0x3d   : > { %v2792_v17 = vld [vmem:[%s6892_s2 + $0xc38] sm:$0xff]  ;;  %v3429_v20 = vpack.c.bf16 %v722_v15, %v720_v14  ;;  %v2794_v28 = vld [vmem:[%s6892_s2 + $0xc48] sm:$0xff]  ;;  %v4674_v32 = vld [vmem:[%s4642_s25] sm:$0xff] }
  0x3e   : > { %3408 = vmatpush1.bf16.msra.mxu1 %v3407_v21  ;;  %v719_v21 = vld [vmem:[%s6892_s2 + $0x20] sm:$0xff]  ;;  %v3685_v24 = vpack.c.bf16 %v2792_v17, %v2790_v16  ;;  %v2796_v29 = vld [vmem:[%s6892_s2 + $0xc58] sm:$0xff]  ;;  %v4670_v30 = vld [vmem:[%s4642_s25 + $0x8] sm:$0xff] }
  0x3f   : > { %3664 = vmatpush1.bf16.msra.mxu0 %v3663_v22  ;;  %3410 = vmatprep.subr.bf16.mxu1 %v3409_v23  ;;  %v721_v22 = vld [vmem:[%s6892_s2 + $0x30] sm:$0xff]  ;;  %v2789_v23 = vld [vmem:[%s6892_s2 + $0xc20] sm:$0xff]  ;;  %v3689_v38 = vpack.c.bf16 %v2796_v29, %v2794_v28  ;;  %v728_v40 = vld [vmem:[%s6892_s2 + $0x68] sm:$0xff] }
  0x40   : > { %3666 = vmatprep.subr.bf16.mxu0 %v3665_v27  ;;  %v726_v27 = vld [vmem:[%s6892_s2 + $0x58] sm:$0xff]  ;;  %v3431_v31 = vpack.c.bf16 %v721_v22, %v719_v21  ;;  %v725_v36 = vld [vmem:[%s6892_s2 + $0x50] sm:$0xff]  ;;  %v2793_v37 = vld [vmem:[%s6892_s2 + $0xc40] sm:$0xff] }
  0x41   : > { %v730_v41 = vld [vmem:[%s6892_s2 + $0x78] sm:$0xff]  ;;  %v2798_v42 = vld [vmem:[%s6892_s2 + $0xc68] sm:$0xff]  ;;  %v727_v49 = vld [vmem:[%s6892_s2 + $0x60] sm:$0xff] }
  0x42   : > { %3412 = vmatpush1.bf16.msra.mxu1 %v3411_v33  ;;  %v3687_v33 = vpack.c.bf16 %v2791_v25, %v2789_v23  ;;  %v2800_v43 = vld [vmem:[%s6892_s2 + $0xc78] sm:$0xff]  ;;  %v3437_v48 = vpack.c.bf16 %v730_v41, %v728_v40  ;;  %v729_v50 = vld [vmem:[%s6892_s2 + $0x70] sm:$0xff]  ;;  %v732_v54 = vld [vmem:[%s6892_s2 + $0x88] sm:$0xff] }
  0x43   : > { %3668 = vmatpush1.bf16.msra.mxu0 %v3667_v34  ;;  %3414 = vmatprep.subr.bf16.mxu1 %v3413_v35  ;;  %v3433_v34 = vpack.c.bf16 %v726_v27, %v724_v26  ;;  %v723_v35 = vld [vmem:[%s6892_s2 + $0x40] sm:$0xff]  ;;  %v4704_v44 = vld [vmem:[%s4642_s25 + $0x18] sm:$0xff]  ;;  %v3693_v52 = vpack.c.bf16 %v2800_v43, %v2798_v42  ;;  %v2799_v53 = vld [vmem:[%s6892_s2 + $0xc70] sm:$0xff] }
  0x44   : > { %3670 = vmatprep.subr.bf16.mxu0 %v3669_v39  ;;  %v2795_v39 = vld [vmem:[%s6892_s2 + $0xc50] sm:$0xff]  ;;  %v734_v55 = vld [vmem:[%s6892_s2 + $0x98] sm:$0xff]  ;;  %v2802_v56 = vld [vmem:[%s6892_s2 + $0xc88] sm:$0xff] }
  0x45   : > { %v4742_v60 = vld [vmem:[%s4642_s25 + $0x20] sm:$0xff]  ;;  %v3441_v62 = vpack.c.bf16 %v734_v55, %v732_v54  ;;  %v733_v0 = vld [vmem:[%s6892_s2 + $0x90] sm:$0xff]  ;;  %v736_v4 = vld [vmem:[%s6892_s2 + $0xa8] sm:$0xff] }
  0x46   : > { %3416 = vmatpush1.bf16.msra.mxu1 %v3415_v45  ;;  %v3435_v45 = vpack.c.bf16 %v725_v36, %v723_v35  ;;  %v2801_v1 = vld [vmem:[%s6892_s2 + $0xc80] sm:$0xff]  ;;  %v2803_v3 = vld [vmem:[%s6892_s2 + $0xc90] sm:$0xff]  ;;  %v4772_v9 = vld [vmem:[%s4642_s25 + $0x38] sm:$0xff] }
  0x47   : > { %3672 = vmatpush1.bf16.msra.mxu0 %v3671_v46  ;;  %3418 = vmatprep.subr.bf16.mxu1 %v3417_v47  ;;  %v4708_v46 = vld [vmem:[%s4642_s25 + $0x10] sm:$0xff]  ;;  %v3691_v47 = vpack.c.bf16 %v2795_v39, %v2793_v37  ;;  %v735_v14 = vld [vmem:[%s6892_s2 + $0xa0] sm:$0xff]  ;;  %v2810_v21 = vld [vmem:[%s6892_s2 + $0xcc8] sm:$0xff] }
  0x48   : > { %3674 = vmatprep.subr.bf16.mxu0 %v3673_v51  ;;  %v2797_v51 = vld [vmem:[%s6892_s2 + $0xc60] sm:$0xff]  ;;  %v4776_v11 = vld [vmem:[%s4642_s25 + $0x30] sm:$0xff]  ;;  %v2812_v22 = vld [vmem:[%s6892_s2 + $0xcd8] sm:$0xff] }
  0x49   : > { %v3695_v61 = vpack.c.bf16 %v2799_v53, %v2797_v51  ;;  %v737_v15 = vld [vmem:[%s6892_s2 + $0xb0] sm:$0xff]  ;;  %v2805_v16 = vld [vmem:[%s6892_s2 + $0xca0] sm:$0xff]  ;;  %v4806_v23 = vld [vmem:[%s4642_s25 + $0x48] sm:$0xff] }
  0x4a   : > { %3420 = vmatpush1.bf16.msra.mxu1 %v3419_v57  ;;  %v2804_v57 = vld [vmem:[%s6892_s2 + $0xc98] sm:$0xff]  ;;  %v4810_v25 = vld [vmem:[%s4642_s25 + $0x40] sm:$0xff]  ;;  %v741_v29 = vld [vmem:[%s6892_s2 + $0xd0] sm:$0xff] }
  0x4b   : > { %3676 = vmatpush1.bf16.msra.mxu0 %v3675_v58  ;;  %3422 = vmatprep.subr.bf16.mxu1 %v3421_v59  ;;  %v4738_v58 = vld [vmem:[%s4642_s25 + $0x28] sm:$0xff]  ;;  %v3439_v59 = vpack.c.bf16 %v729_v50, %v727_v49  ;;  %v3697_v2 = vpack.c.bf16 %v2804_v57, %v2802_v56  ;;  %v739_v28 = vld [vmem:[%s6892_s2 + $0xc0] sm:$0xff]  ;;  %v746_v36 = vld [vmem:[%s6892_s2 + $0xf8] sm:$0xff]  ;;  %v442_v56 = vlaneseq }
  0x4c   : > { %3678 = vmatprep.subr.bf16.mxu0 %v3677_v63  ;;  %v731_v63 = vld [vmem:[%s6892_s2 + $0x80] sm:$0xff]  ;;  %v744_v35 = vld [vmem:[%s6892_s2 + $0xe8] sm:$0xff]  ;;  %v4840_v39 = vld [vmem:[%s4642_s25 + $0x58] sm:$0xff]  ;;  %v3451_v40 = vpack.c.bf16 %v741_v29, %v739_v28 }
  0x4d   : > { %v3443_v10 = vpack.c.bf16 %v733_v0, %v731_v63  ;;  %v2814_v37 = vld [vmem:[%s6892_s2 + $0xce8] sm:$0xff]  ;;  %v4844_v41 = vld [vmem:[%s4642_s25 + $0x50] sm:$0xff]  ;;  %v3453_v43 = vpack.c.bf16 %v746_v36, %v744_v35  ;;  %v2820_v54 = vld [vmem:[%s6892_s2 + $0xd18] sm:$0xff] }
  0x4e   : > { %3424 = vmatpush1.bf16.msra.mxu1 %v3423_v5  ;;  %v738_v5 = vld [vmem:[%s6892_s2 + $0xb8] sm:$0xff]  ;;  %v2815_v50 = vld [vmem:[%s6892_s2 + $0xcf0] sm:$0xff]  ;;  %v748_v51 = vld [vmem:[%s6892_s2 + $0x108] sm:$0xff] }
  0x4f   : > { %3680 = vmatpush1.bf16.msra.mxu0 %v3679_v6  ;;  %3426 = vmatprep.subr.bf16.mxu1 %v3425_v8  ;;  %v2806_v6 = vld [vmem:[%s6892_s2 + $0xca8] sm:$0xff]  ;;  %v2808_v8 = vld [vmem:[%s6892_s2 + $0xcb8] sm:$0xff]  ;;  %v3445_v13 = vpack.c.bf16 %v738_v5, %v736_v4  ;;  %v747_v63 = vld [vmem:[%s6892_s2 + $0x100] sm:$0xff] }
  0x50   : > { %3682 = vmatprep.subr.bf16.mxu0 %v3681_v12  ;;  %v3699_v12 = vpack.c.bf16 %v2803_v3, %v2801_v1  ;;  %v3701_v17 = vpack.c.bf16 %v2808_v8, %v2806_v6  ;;  %v2818_v53 = vld [vmem:[%s6892_s2 + $0xd08] sm:$0xff]  ;;  %v749_v0 = vld [vmem:[%s6892_s2 + $0x110] sm:$0xff]  ;;  %v2817_v1 = vld [vmem:[%s6892_s2 + $0xd00] sm:$0xff] }
  0x51   : > { %1039 = vmatmul.mubr.f32.vlgmr.msra.gmra.mrb[0].mxu1 %v6905_v7  ;;  %v4874_v55 = vld [vmem:[%s4642_s25 + $0x68] sm:$0xff]  ;;  %v2819_v3 = vld [vmem:[%s6892_s2 + $0xd10] sm:$0xff]  ;;  %v754_v5 = vld [vmem:[%s6892_s2 + $0x138] sm:$0xff] }
  0x52   : > { %1653 = vmatmul.mubr.f32.vlgmr.msra.gmra.mrb[0].mxu0 %v6905_v7  ;;  %3428 = vmatpush1.bf16.msra.mxu1 %v3427_v18  ;;  %v2807_v18 = vld [vmem:[%s6892_s2 + $0xcb0] sm:$0xff]  ;;  %v752_v4 = vld [vmem:[%s6892_s2 + $0x128] sm:$0xff]  ;;  %v2824_v8 = vld [vmem:[%s6892_s2 + $0xd38] sm:$0xff] }
  0x53   : > { %3684 = vmatpush1.bf16.msra.mxu0 %v3683_v19  ;;  %3430 = vmatprep.subr.bf16.mxu1 %v3429_v20  ;;  %v740_v19 = vld [vmem:[%s6892_s2 + $0xc8] sm:$0xff]  ;;  %v742_v20 = vld [vmem:[%s6892_s2 + $0xd8] sm:$0xff]  ;;  %v3703_v26 = vpack.c.bf16 %v2807_v18, %v2805_v16  ;;  %v3461_v16 = vpack.c.bf16 %v754_v5, %v752_v4  ;;  %v753_v18 = vld [vmem:[%s6892_s2 + $0x130] sm:$0xff] }
  0x54   : > { %3686 = vmatprep.subr.bf16.mxu0 %v3685_v24  ;;  %1044 = vmatprep.mubr.f32.mxu1 %v4670_v30  ;;  %v3447_v24 = vpack.c.bf16 %v737_v15, %v735_v14  ;;  %v3449_v27 = vpack.c.bf16 %v742_v20, %v740_v19  ;;  %v2822_v6 = vld [vmem:[%s6892_s2 + $0xd28] sm:$0xff]  ;;  %v4914_v14 = vld [vmem:[%s4642_s25 + $0x70] sm:$0xff]  ;;  %v3715_v15 = vpack.c.bf16 %v2819_v3, %v2817_v1  ;;  %v2821_v19 = vld [vmem:[%s6892_s2 + $0xd20] sm:$0xff] }
  0x55   : > { %1656 = vmatprep.mubr.f32.mxu0 %v4670_v30  ;;  %1045 = vmatmul.mubr.f32.gmra.mrb[2].mxu1 %v4674_v32  ;;  %v3717_v20 = vpack.c.bf16 %v2824_v8, %v2822_v6  ;;  %v757_v35 = vld [vmem:[%s6892_s2 + $0x150] sm:$0xff]  ;;  %v2825_v36 = vld [vmem:[%s6892_s2 + $0xd40] sm:$0xff] }
  0x56   : > { %3432 = vmatpush1.bf16.msra.mxu1 %v3431_v31  ;;  %1657 = vmatmul.mubr.f32.gmra.mrb[2].mxu0 %v4674_v32  ;;  %v2809_v31 = vld [vmem:[%s6892_s2 + $0xcc0] sm:$0xff]  ;;  %v765_v5 = vld [vmem:[%s6892_s2 + $0x190] sm:$0xff] }
  0x57   : > { %3688 = vmatpush1.bf16.msra.mxu0 %v3687_v33  ;;  %3434 = vmatprep.subr.bf16.mxu1 %v3433_v34  ;;  %v3705_v33 = vpack.c.bf16 %v2812_v22, %v2810_v21  ;;  %v2811_v34 = vld [vmem:[%s6892_s2 + $0xcd0] sm:$0xff]  ;;  %v756_v22 = vld [vmem:[%s6892_s2 + $0x148] sm:$0xff]  ;;  %v763_v4 = vld [vmem:[%s6892_s2 + $0x180] sm:$0xff] }
  0x58   : > { %3690 = vmatprep.subr.bf16.mxu0 %v3689_v38  ;;  %1050 = vmatprep.mubr.f32.mxu1 %v4704_v44  ;;  %v2816_v38 = vld [vmem:[%s6892_s2 + $0xcf8] sm:$0xff]  ;;  %v3707_v42 = vpack.c.bf16 %v2811_v34, %v2809_v31  ;;  %v2823_v21 = vld [vmem:[%s6892_s2 + $0xd30] sm:$0xff]  ;;  %v755_v34 = vld [vmem:[%s6892_s2 + $0x140] sm:$0xff] }
  0x59   : > { %1660 = vmatprep.mubr.f32.mxu0 %v4704_v44  ;;  %1051 = vmatmul.mubr.f32.gmra.mrb[4].mxu1 %v4708_v46  ;;  %v3709_v49 = vpack.c.bf16 %v2816_v38, %v2814_v37  ;;  %v3719_v31 = vpack.c.bf16 %v2823_v21, %v2821_v19  ;;  %v2827_v38 = vld [vmem:[%s6892_s2 + $0xd50] sm:$0xff]  ;;  %v2833_v6 = vld [vmem:[%s6892_s2 + $0xd80] sm:$0xff]  ;;  %v3475_v19 = vpack.c.bf16 %v765_v5, %v763_v4  ;;  %v3102_v5 = vld [vmem:[%s6892_s2 + $0x408] sm:$0xff] }
  0x5a   : > { %3436 = vmatpush1.bf16.msra.mxu1 %v3435_v45  ;;  %1661 = vmatmul.mubr.f32.gmra.mrb[4].mxu0 %v4708_v46  ;;  %v743_v45 = vld [vmem:[%s6892_s2 + $0xe0] sm:$0xff] }
  0x5b   : > { %3692 = vmatpush1.bf16.msra.mxu0 %v3691_v47  ;;  %3438 = vmatprep.subr.bf16.mxu1 %v3437_v48  ;;  %v745_v47 = vld [vmem:[%s6892_s2 + $0xf0] sm:$0xff]  ;;  %v2813_v48 = vld [vmem:[%s6892_s2 + $0xce0] sm:$0xff] }
  0x5c   : > { %3694 = vmatprep.subr.bf16.mxu0 %v3693_v52  ;;  %1056 = vmatprep.mubr.f32.mxu1 %v4738_v58  ;;  %v750_v52 = vld [vmem:[%s6892_s2 + $0x118] sm:$0xff]  ;;  %v3455_v57 = vpack.c.bf16 %v745_v47, %v743_v45  ;;  %v2830_v45 = vld [vmem:[%s6892_s2 + $0xd68] sm:$0xff] }
  0x5d   : > { %1666 = vmatprep.mubr.f32.mxu0 %v4738_v58  ;;  %1057 = vmatmul.mubr.f32.gmra.mrb[6].mxu1 %v4742_v60  ;;  %v2832_v47 = vld [vmem:[%s6892_s2 + $0xd78] sm:$0xff] }
  0x5e   : > { %3440 = vmatpush1.bf16.msra.mxu1 %v3439_v59  ;;  %1667 = vmatmul.mubr.f32.gmra.mrb[6].mxu0 %v4742_v60  ;;  %v4878_v59 = vld [vmem:[%s4642_s25 + $0x60] sm:$0xff] }
  0x5f   : > { %3696 = vmatpush1.bf16.msra.mxu0 %v3695_v61  ;;  %3442 = vmatprep.subr.bf16.mxu1 %v3441_v62  ;;  %v3711_v61 = vpack.c.bf16 %v2815_v50, %v2813_v48  ;;  %v3457_v62 = vpack.c.bf16 %v750_v52, %v748_v51  ;;  %v3723_v50 = vpack.c.bf16 %v2827_v38, %v2825_v36  ;;  %v759_v52 = vld [vmem:[%s6892_s2 + $0x160] sm:$0xff]  ;;  %v3279_v48 = vld [vmem:[%s6892_s2 + $0x1050] sm:$0xff] }
  0x60   : > { %3698 = vmatprep.subr.bf16.mxu0 %v3697_v2  ;;  %1062 = vmatprep.mubr.f32.mxu1 %v4772_v9  ;;  %v3713_v2 = vpack.c.bf16 %v2820_v54, %v2818_v53  ;;  %v761_v53 = vld [vmem:[%s6892_s2 + $0x170] sm:$0xff]  ;;  %v2829_v54 = vld [vmem:[%s6892_s2 + $0xd60] sm:$0xff] }
  0x61   : > { %1672 = vmatprep.mubr.f32.mxu0 %v4772_v9  ;;  %1063 = vmatmul.mubr.f32.gmra.mrb[8].mxu1 %v4776_v11  ;;  %v3471_v1 = vpack.c.bf16 %v761_v53, %v759_v52  ;;  %v2846_v52 = vld [vmem:[%s6892_s2 + $0xde8] sm:$0xff]  ;;  %v2848_v53 = vld [vmem:[%s6892_s2 + $0xdf8] sm:$0xff] }
  0x62   : > { %3444 = vmatpush1.bf16.msra.mxu1 %v3443_v10  ;;  %1673 = vmatmul.mubr.f32.gmra.mrb[8].mxu0 %v4776_v11  ;;  %v4908_v10 = vld [vmem:[%s4642_s25 + $0x78] sm:$0xff] }
  0x63   : > { %3700 = vmatpush1.bf16.msra.mxu0 %v3699_v12  ;;  %3446 = vmatprep.subr.bf16.mxu1 %v3445_v13  ;;  %v4910_v12 = vshrl.u32 %v442_v56, 7  ;;  %v3459_v13 = vpack.c.bf16 %v749_v0, %v747_v63  ;;  %v3725_v56 = vpack.c.bf16 %v2832_v47, %v2830_v45  ;;  %v2834_v63 = vld [vmem:[%s6892_s2 + $0xd88] sm:$0xff]  ;;  %v2836_v0 = vld [vmem:[%s6892_s2 + $0xd98] sm:$0xff]  ;;  %v2841_v45 = vld [vmem:[%s6892_s2 + $0xdc0] sm:$0xff] }
  0x64   : > { %3702 = vmatprep.subr.bf16.mxu0 %v3701_v17  ;;  %1068 = vmatprep.mubr.f32.mxu1 %v4806_v23  ;;  %v751_v17 = vld [vmem:[%s6892_s2 + $0x120] sm:$0xff]  ;;  %v3729_v8 = vpack.c.bf16 %v2836_v0, %v2834_v63  ;;  %v3741_v0 = vpack.c.bf16 %v2848_v53, %v2846_v52  ;;  %v588_v53 = vrot.slane %v4704_v44, 7 }
  0x65   : > { %1678 = vmatprep.mubr.f32.mxu0 %v4806_v23  ;;  %1069 = vmatmul.mubr.f32.gmra.mrb[10].mxu1 %v4810_v25  ;;  %v457_v28 = vand.u32 7, %v4910_v12  ;;  %v3463_v29 = vpack.c.bf16 %v753_v18, %v751_v17  ;;  %v2838_v17 = vld [vmem:[%s6892_s2 + $0xda8] sm:$0xff]  ;;  %v2840_v18 = vld [vmem:[%s6892_s2 + $0xdb8] sm:$0xff]  ;;  %v2845_v63 = vld [vmem:[%s6892_s2 + $0xde0] sm:$0xff]  ;;  %v5103_v4 = vadd.s32 8, %v4910_v12  ;;  %vm603_vm1 = vcmp.lt.s32.totalorder %v4910_v12, 1 }
  0x66   : > { %3448 = vmatpush1.bf16.msra.mxu1 %v3447_v24  ;;  %1679 = vmatmul.mubr.f32.gmra.mrb[10].mxu0 %v4810_v25  ;;  %v758_v24 = vld [vmem:[%s6892_s2 + $0x158] sm:$0xff]  ;;  %vm6923_vm11 = vcmp.lt.s32.totalorder %v4910_v12, 7 }
  0x67   : > { %3704 = vmatpush1.bf16.msra.mxu0 %v3703_v26  ;;  %3450 = vmatprep.subr.bf16.mxu1 %v3449_v27  ;;  %v2826_v26 = vld [vmem:[%s6892_s2 + $0xd48] sm:$0xff]  ;;  %v2828_v27 = vld [vmem:[%s6892_s2 + $0xd58] sm:$0xff]  ;;  %vm4977_vm0 = vcmp.ne.s32.totalorder %v457_v28, 0  ;;  %vm5679_vm12 = vcmp.ne.s32.totalorder %v457_v28, 7  ;;  %v2979_v28 = vld [vmem:[%s6892_s2 + $0x970] sm:$0xff] }
  0x68   : > { %3706 = vmatprep.subr.bf16.mxu0 %v3705_v33  ;;  %1074 = vmatprep.mubr.f32.mxu1 %v4840_v39  ;;  %v3465_v33 = vpack.c.bf16 %v758_v24, %v756_v22  ;;  %v3721_v37 = vpack.c.bf16 %v2828_v27, %v2826_v26  ;;  %v767_v22 = vld [vmem:[%s6892_s2 + $0x1a0] sm:$0xff]  ;;  %v769_v24 = vld [vmem:[%s6892_s2 + $0x1b0] sm:$0xff]  ;;  %v3733_v27 = vpack.c.bf16 %v2840_v18, %v2838_v17 }
  0x69   : > { %1684 = vmatprep.mubr.f32.mxu0 %v4840_v39  ;;  %1075 = vmatmul.mubr.f32.gmra.mrb[12].mxu1 %v4844_v41  ;;  %v2837_v26 = vld [vmem:[%s6892_s2 + $0xda0] sm:$0xff]  ;;  %v3479_v36 = vpack.c.bf16 %v769_v24, %v767_v22  ;;  %v2935_v17 = vld [vmem:[%s6892_s2 + $0x810] sm:$0xff]  ;;  %v2940_v22 = vld [vmem:[%s6892_s2 + $0x838] sm:$0xff]  ;;  %v6904_v24 = vand.u32 7, %v5103_v4 }
  0x6a   : > { %3452 = vmatpush1.bf16.msra.mxu1 %v3451_v40  ;;  %1685 = vmatmul.mubr.f32.gmra.mrb[12].mxu0 %v4844_v41  ;;  %v760_v40 = vld [vmem:[%s6892_s2 + $0x168] sm:$0xff]  ;;  %v3101_v18 = vld [vmem:[%s6892_s2 + $0x400] sm:$0xff] }
  0x6b   : > { %3708 = vmatpush1.bf16.msra.mxu0 %v3707_v42  ;;  %3454 = vmatprep.subr.bf16.mxu1 %v3453_v43  ;;  %v762_v42 = vld [vmem:[%s6892_s2 + $0x178] sm:$0xff]  ;;  %v4965_v43 = vrot.slane %v6905_v7, 7  ;;  %vm5162_vm2 = vcmp.ne.s32.totalorder %v6904_v24, 0 }
  0x6c   : > { %3710 = vmatprep.subr.bf16.mxu0 %v3709_v49  ;;  %1080 = vmatprep.mubr.f32.mxu1 %v4874_v55  ;;  %v3467_v49 = vpack.c.bf16 %v757_v35, %v755_v34  ;;  %v3469_v51 = vpack.c.bf16 %v762_v42, %v760_v40  ;;  %v2842_v34 = vld [vmem:[%s6892_s2 + $0xdc8] sm:$0xff]  ;;  %v2844_v35 = vld [vmem:[%s6892_s2 + $0xdd8] sm:$0xff]  ;;  %v771_v40 = vld [vmem:[%s6892_s2 + $0x1c0] sm:$0xff] }
  0x6d   : > { %1690 = vmatprep.mubr.f32.mxu0 %v4874_v55  ;;  %1081 = vmatmul.mubr.f32.gmra.mrb[14].mxu1 %v4878_v59  ;;  %v773_v42 = vld [vmem:[%s6892_s2 + $0x1d0] sm:$0xff]  ;;  %v3737_v47 = vpack.c.bf16 %v2844_v35, %v2842_v34  ;;  %v585_v34 = vrot.slane %v4674_v32, 7 }
  0x6e   : > { %3456 = vmatpush1.bf16.msra.mxu1 %v3455_v57  ;;  %1691 = vmatmul.mubr.f32.gmra.mrb[14].mxu0 %v4878_v59  ;;  %v2831_v57 = vld [vmem:[%s6892_s2 + $0xd70] sm:$0xff] }
  0x6f   : > { %3712 = vmatpush1.bf16.msra.mxu0 %v3711_v61  ;;  %3458 = vmatprep.subr.bf16.mxu1 %v3457_v62  ;;  %v764_v61 = vld [vmem:[%s6892_s2 + $0x188] sm:$0xff]  ;;  %v766_v62 = vld [vmem:[%s6892_s2 + $0x198] sm:$0xff]  ;;  %v3107_v32 = vld [vmem:[%s6892_s2 + $0x430] sm:$0xff] }
  0x70   : > { %3714 = vmatprep.subr.bf16.mxu0 %v3713_v2  ;;  %1086 = vmatprep.mubr.f32.mxu1 %v4908_v10  ;;  %v3727_v2 = vpack.c.bf16 %v2831_v57, %v2829_v54  ;;  %v3473_v3 = vpack.c.bf16 %v766_v62, %v764_v61  ;;  %v3483_v54 = vpack.c.bf16 %v773_v42, %v771_v40  ;;  %v775_v61 = vld [vmem:[%s6892_s2 + $0x1e0] sm:$0xff]  ;;  %v777_v62 = vld [vmem:[%s6892_s2 + $0x1f0] sm:$0xff]  ;;  %v2942_v42 = vld [vmem:[%s6892_s2 + $0x848] sm:$0xff] }
  0x71   : > { %1696 = vmatprep.mubr.f32.mxu0 %v4908_v10  ;;  %1087 = vmatmul.mubr.f32.gmra.mrb[16].mxu1 %v4914_v14 }
  0x72   : > { %3460 = vmatpush1.bf16.msra.mxu1 %v3459_v13  ;;  %1697 = vmatmul.mubr.f32.gmra.mrb[16].mxu0 %v4914_v14  ;;  %v2835_v13 = vld [vmem:[%s6892_s2 + $0xd90] sm:$0xff] }
  0x73   : > { %3716 = vmatpush1.bf16.msra.mxu0 %v3715_v15  ;;  %3462 = vmatprep.subr.bf16.mxu1 %v3461_v16  ;;  %v768_v15 = vld [vmem:[%s6892_s2 + $0x1a8] sm:$0xff]  ;;  %v770_v16 = vld [vmem:[%s6892_s2 + $0x1b8] sm:$0xff] }
  0x74   : > { %3718 = vmatprep.subr.bf16.mxu0 %v3717_v20  ;;  %1090 = vmatprep.mubr.f32.mxu1 %v6905_v7  ;;  %v3731_v20 = vpack.c.bf16 %v2835_v13, %v2833_v6  ;;  %v3477_v21 = vpack.c.bf16 %v770_v16, %v768_v15  ;;  %v3104_v6 = vld [vmem:[%s6892_s2 + $0x418] sm:$0xff]  ;;  %v2933_v16 = vld [vmem:[%s6892_s2 + $0x800] sm:$0xff] }
  0x75   : > { %1702 = vmatprep.mubr.f32.mxu0 %v6905_v7  ;;  %1091 = vmatmul.mubr.f32.gmra.mrb[18].mxu1 %v6905_v7 }
  0x76   : > { %3464 = vmatpush1.bf16.msra.mxu1 %v3463_v29  ;;  %1703 = vmatmul.mubr.f32.gmra.mrb[18].mxu0 %v6905_v7  ;;  %v2839_v29 = vld [vmem:[%s6892_s2 + $0xdb0] sm:$0xff] }
  0x77   : > { %3720 = vmatpush1.bf16.msra.mxu0 %v3719_v31  ;;  %3466 = vmatprep.subr.bf16.mxu1 %v3465_v33  ;;  %v772_v31 = vld [vmem:[%s6892_s2 + $0x1c8] sm:$0xff]  ;;  %v774_v33 = vld [vmem:[%s6892_s2 + $0x1d8] sm:$0xff] }
  0x78   : > { %3722 = vmatprep.subr.bf16.mxu0 %v3721_v37  ;;  %3081 = vmatprep.mubr.msk.f32.mxu0 %vm4977_vm0, %v4965_v43  ;;  %v3735_v37 = vpack.c.bf16 %v2839_v29, %v2837_v26  ;;  %v3481_v38 = vpack.c.bf16 %v774_v33, %v772_v31  ;;  %v3106_v26 = vld [vmem:[%s6892_s2 + $0x428] sm:$0xff]  ;;  %v586_v29 = vrot.slane %v4670_v30, 7  ;;  %v5138_v31 = vadd.s32 16, %v4910_v12  ;;  %v2939_v30 = vld [vmem:[%s6892_s2 + $0x830] sm:$0xff] }
  0x79   : > { %2913 = vmatprep.mubr.msk.f32.mxu1 %vm4977_vm0, %v4965_v43  ;;  %v3491_v33 = vpack.c.bf16 %v2935_v17, %v2933_v16 }
  0x7a   : > { %3468 = vmatpush1.bf16.msra.mxu1 %v3467_v49  ;;  %v2843_v49 = vld [vmem:[%s6892_s2 + $0xdd0] sm:$0xff]  ;;  %v6902_v52 = vand.u32 7, %v5138_v31  ;;  %v5238_v16 = vsel %vm603_vm1, %v586_v29, %v588_v53 }
  0x7b   : > { %3724 = vmatpush1.bf16.msra.mxu0 %v3723_v50  ;;  %3470 = vmatprep.subr.bf16.mxu1 %v3469_v51  ;;  %v776_v50 = vld [vmem:[%s6892_s2 + $0x1e8] sm:$0xff]  ;;  %v778_v51 = vld [vmem:[%s6892_s2 + $0x1f8] sm:$0xff] }
  0x7c   : > { %3726 = vmatprep.subr.bf16.mxu0 %v3725_v56  ;;  %v3739_v56 = vpack.c.bf16 %v2843_v49, %v2841_v45  ;;  %v3485_v57 = vpack.c.bf16 %v778_v51, %v776_v50  ;;  %v2944_v45 = vld [vmem:[%s6892_s2 + $0x858] sm:$0xff]  ;;  %v3110_v49 = vld [vmem:[%s6892_s2 + $0x448] sm:$0xff]  ;;  %v5178_v51 = vsel %vm603_vm1, %v4965_v43, %v586_v29  ;;  %vm5232_vm3 = vcmp.ne.s32.totalorder %v6902_v52, 0  ;;  %v3113_v29 = vld [vmem:[%s6892_s2 + $0x460] sm:$0xff] }
  0x7d   : > { %v3112_v50 = vld [vmem:[%s6892_s2 + $0x458] sm:$0xff]  ;;  %v3497_v44 = vpack.c.bf16 %v2944_v45, %v2942_v42  ;;  %v5296_v42 = vadd.s32 40, %v4910_v12  ;;  %v3149_v52 = vld [vmem:[%s6892_s2 + $0x580] sm:$0xff] }
  0x7e   : > { %3472 = vmatpush1.bf16.msra.mxu1 %v3471_v1  ;;  %v2847_v1 = vld [vmem:[%s6892_s2 + $0xdf0] sm:$0xff] }
  0x7f   : > { %3728 = vmatpush1.bf16.msra.mxu0 %v3727_v2  ;;  %3474 = vmatprep.subr.bf16.mxu1 %v3473_v3  ;;  %v2934_v2 = vld [vmem:[%s6892_s2 + $0x808] sm:$0xff]  ;;  %v2936_v3 = vld [vmem:[%s6892_s2 + $0x818] sm:$0xff]  ;;  %v3743_v13 = vpack.c.bf16 %v2847_v1, %v2845_v63  ;;  %v2941_v63 = vld [vmem:[%s6892_s2 + $0x840] sm:$0xff] }
  0x80   : > { %3730 = vmatprep.subr.bf16.mxu0 %v3729_v8  ;;  %v3487_v8 = vpack.c.bf16 %v777_v62, %v775_v61  ;;  %v3489_v15 = vpack.c.bf16 %v2936_v3, %v2934_v2  ;;  %v587_v61 = vrot.slane %v4708_v46, 7  ;;  %v3109_v1 = vld [vmem:[%s6892_s2 + $0x440] sm:$0xff]  ;;  %v3753_v2 = vpack.c.bf16 %v3112_v50, %v3110_v49  ;;  %v3111_v46 = vld [vmem:[%s6892_s2 + $0x450] sm:$0xff]  ;;  %v2946_v3 = vld [vmem:[%s6892_s2 + $0x868] sm:$0xff] }
  0x81   : > { %v591_v50 = vrot.slane %v4776_v11, 7  ;;  %v3119_v11 = vld [vmem:[%s6892_s2 + $0x490] sm:$0xff] }
  0x82   : > { %3476 = vmatpush1.bf16.msra.mxu1 %v3475_v19  ;;  %v3745_v19 = vpack.c.bf16 %v3104_v6, %v3102_v5  ;;  %v2948_v5 = vld [vmem:[%s6892_s2 + $0x878] sm:$0xff]  ;;  %v5216_v6 = vadd.s32 32, %v4910_v12 }
  0x83   : > { %3732 = vmatpush1.bf16.msra.mxu0 %v3731_v20  ;;  %3478 = vmatprep.subr.bf16.mxu1 %v3477_v21  ;;  %v3103_v20 = vld [vmem:[%s6892_s2 + $0x410] sm:$0xff]  ;;  %v2938_v21 = vld [vmem:[%s6892_s2 + $0x828] sm:$0xff] }
  0x84   : > { %3734 = vmatprep.subr.bf16.mxu0 %v3733_v27  ;;  %v3108_v27 = vld [vmem:[%s6892_s2 + $0x438] sm:$0xff]  ;;  %v3747_v35 = vpack.c.bf16 %v3103_v20, %v3101_v18  ;;  %v590_v18 = vrot.slane %v4738_v58, 7  ;;  %v5247_v20 = vsel %vm603_vm1, %v585_v34, %v587_v61  ;;  %v2945_v58 = vld [vmem:[%s6892_s2 + $0x860] sm:$0xff] }
  0x85   : > { %v3749_v40 = vpack.c.bf16 %v3108_v27, %v3106_v26  ;;  %v3501_v26 = vpack.c.bf16 %v2948_v5, %v2946_v3  ;;  %v2947_v27 = vld [vmem:[%s6892_s2 + $0x870] sm:$0xff]  ;;  %v6899_v5 = vand.u32 7, %v5296_v42 }
  0x86   : > { %3480 = vmatpush1.bf16.msra.mxu1 %v3479_v36  ;;  %v3493_v36 = vpack.c.bf16 %v2940_v22, %v2938_v21  ;;  %v589_v21 = vrot.slane %v4742_v60, 7  ;;  %v3755_v22 = vpack.c.bf16 %v3111_v46, %v3109_v1  ;;  %v3115_v60 = vld [vmem:[%s6892_s2 + $0x470] sm:$0xff]  ;;  %v3503_v45 = vpack.c.bf16 %v2947_v27, %v2945_v58  ;;  %v3124_v46 = vld [vmem:[%s6892_s2 + $0x4b8] sm:$0xff]  ;;  %v3293_v1 = vld [vmem:[%s6892_s2 + $0x10c0] sm:$0xff] }
  0x87   : > { %3736 = vmatpush1.bf16.msra.mxu0 %v3735_v37  ;;  %3482 = vmatprep.subr.bf16.mxu1 %v3481_v38  ;;  %v2937_v37 = vld [vmem:[%s6892_s2 + $0x820] sm:$0xff]  ;;  %v2955_v27 = vld [vmem:[%s6892_s2 + $0x8b0] sm:$0xff]  ;;  %vm5400_vm6 = vcmp.ne.s32.totalorder %v6899_v5, 0 }
  0x88   : > { %3738 = vmatprep.subr.bf16.mxu0 %v3737_v47  ;;  %v3105_v38 = vld [vmem:[%s6892_s2 + $0x420] sm:$0xff]  ;;  %v5303_v49 = vsel %vm603_vm1, %v587_v61, %v589_v21 }
  0x89   : > { %v3751_v62 = vpack.c.bf16 %v3107_v32, %v3105_v38  ;;  %v592_v32 = vrot.slane %v4772_v9, 7  ;;  %v2949_v9 = vld [vmem:[%s6892_s2 + $0x880] sm:$0xff] }
  0x8a   : > { %3484 = vmatpush1.bf16.msra.mxu1 %v3483_v54  ;;  %v5183_v54 = vadd.s32 24, %v4910_v12  ;;  %v3281_v47 = vld [vmem:[%s6892_s2 + $0x1060] sm:$0xff] }
  0x8b   : > { %3740 = vmatpush1.bf16.msra.mxu0 %v3739_v56  ;;  %3486 = vmatprep.subr.bf16.mxu1 %v3485_v57  ;;  %v3495_v56 = vpack.c.bf16 %v2939_v30, %v2937_v37  ;;  %v5191_v57 = vsel %vm603_vm1, %v4965_v43, %v585_v34  ;;  %v2950_v34 = vld [vmem:[%s6892_s2 + $0x888] sm:$0xff]  ;;  %v3120_v30 = vld [vmem:[%s6892_s2 + $0x498] sm:$0xff]  ;;  %v5347_v3 = vsel %vm603_vm1, %v590_v18, %v592_v32  ;;  %v3289_v38 = vld [vmem:[%s6892_s2 + $0x10a0] sm:$0xff] }
  0x8c   : > { %3742 = vmatprep.subr.bf16.mxu0 %v3741_v0  ;;  %v2943_v0 = vld [vmem:[%s6892_s2 + $0x850] sm:$0xff]  ;;  %v6901_v17 = vand.u32 7, %v5183_v54  ;;  %v3118_v37 = vld [vmem:[%s6892_s2 + $0x488] sm:$0xff] }
  0x8d   : > { %v3761_v61 = vpack.c.bf16 %v3120_v30, %v3118_v37  ;;  %v3128_v37 = vld [vmem:[%s6892_s2 + $0x4d8] sm:$0xff]  ;;  %v6952_v30 = vmov 0 }
  0x8e   : > { %3488 = vmatpush1.bf16.msra.mxu1 %v3487_v8  ;;  %v3114_v8 = vld [vmem:[%s6892_s2 + $0x468] sm:$0xff]  ;;  %vm5286_vm4 = vcmp.ne.s32.totalorder %v6901_v17, 0  ;;  %v6953_v30 = vsel %vm5400_vm6, 4294967295, %v6952_v30  ;;  %v2983_v17 = vld [vmem:[%s6892_s2 + $0x990] sm:$0xff] }
  0x8f   : > { %3744 = vmatpush1.bf16.msra.mxu0 %v3743_v13  ;;  %3490 = vmatprep.subr.bf16.mxu1 %v3489_v15  ;;  %v3116_v13 = vld [vmem:[%s6892_s2 + $0x478] sm:$0xff]  ;;  %6954 = vst [vmem:[#allocation6_spill] sm:$0xff] %v6953_v30  ;;  %v6112_v30 = vld [vmem:[%s4642_s25 + $0x68] sm:$0xff]  ;;  %v3285_v15 = vld [vmem:[%s6892_s2 + $0x1080] sm:$0xff] }
  0x90   : > { %3746 = vmatprep.subr.bf16.mxu0 %v3745_v19  ;;  %v3499_v19 = vpack.c.bf16 %v2943_v0, %v2941_v63  ;;  %v2954_v63 = vld [vmem:[%s6892_s2 + $0x8a8] sm:$0xff]  ;;  %v2956_v0 = vld [vmem:[%s6892_s2 + $0x8b8] sm:$0xff] }
  0x91   : > { %2914 = vmatmul.mubr.msk.f32.vlgmr.msra.gmra.mrb[0].mxu1 %vm4977_vm0, %v4965_v43  ;;  %v3509_v58 = vpack.c.bf16 %v2956_v0, %v2954_v63  ;;  %v3125_v63 = vld [vmem:[%s6892_s2 + $0x4c0] sm:$0xff]  ;;  %v2962_v0 = vld [vmem:[%s6892_s2 + $0x8e8] sm:$0xff] }
  0x92   : > { %3082 = vmatmul.mubr.msk.f32.vlgmr.msra.gmra.mrb[20].mxu0 %vm4977_vm0, %v4965_v43  ;;  %3492 = vmatpush1.bf16.msra.mxu1 %v3491_v33  ;;  %v3757_v33 = vpack.c.bf16 %v3116_v13, %v3114_v8  ;;  %v594_v8 = vrot.slane %v4806_v23, 7  ;;  %v5352_v13 = vadd.s32 48, %v4910_v12  ;;  %v2953_v23 = vld [vmem:[%s6892_s2 + $0x8a0] sm:$0xff] }
  0x93   : > { %3748 = vmatpush1.bf16.msra.mxu0 %v3747_v35  ;;  %3494 = vmatprep.subr.bf16.mxu1 %v3493_v36  ;;  %v2952_v35 = vld [vmem:[%s6892_s2 + $0x898] sm:$0xff]  ;;  %v6900_v36 = vand.u32 7, %v5216_v6 }
  0x94   : > { %3750 = vmatprep.subr.bf16.mxu0 %v3749_v40  ;;  %2915 = vmatprep.mubr.msk.f32.mxu1 %vm5162_vm2, %v5178_v51  ;;  %v5292_v40 = vsel %vm603_vm1, %v588_v53, %v590_v18  ;;  %v3759_v53 = vpack.c.bf16 %v3115_v60, %v3113_v29  ;;  %v593_v18 = vrot.slane %v4810_v25, 7  ;;  %v3121_v29 = vld [vmem:[%s6892_s2 + $0x4a0] sm:$0xff]  ;;  %v3123_v25 = vld [vmem:[%s6892_s2 + $0x4b0] sm:$0xff]  ;;  %v2960_v60 = vld [vmem:[%s6892_s2 + $0x8d8] sm:$0xff] }
  0x95   : > { %3083 = vmatprep.mubr.msk.f32.mxu0 %vm5162_vm2, %v5178_v51  ;;  %2916 = vmatmul.mubr.msk.f32.gmra.mrb[2].mxu1 %vm5162_vm2, %v5191_v57  ;;  %vm5329_vm5 = vcmp.ne.s32.totalorder %v6900_v36, 0 }
  0x96   : > { %3496 = vmatpush1.bf16.msra.mxu1 %v3495_v56  ;;  %3084 = vmatmul.mubr.msk.f32.gmra.mrb[22].mxu0 %vm5162_vm2, %v5191_v57  ;;  %v3505_v56 = vpack.c.bf16 %v2952_v35, %v2950_v34  ;;  %v5384_v34 = vadd.s32 56, %v4910_v12  ;;  %v3126_v35 = vld [vmem:[%s6892_s2 + $0x4c8] sm:$0xff] }
  0x97   : > { %3752 = vmatpush1.bf16.msra.mxu0 %v3751_v62  ;;  %3498 = vmatprep.subr.bf16.mxu1 %v3497_v44  ;;  %v2951_v62 = vld [vmem:[%s6892_s2 + $0x890] sm:$0xff]  ;;  %v3117_v44 = vld [vmem:[%s6892_s2 + $0x480] sm:$0xff] }
  0x98   : > { %3754 = vmatprep.subr.bf16.mxu0 %v3753_v2  ;;  %2917 = vmatprep.mubr.msk.f32.mxu1 %vm5232_vm3, %v5238_v16  ;;  %v3122_v2 = vld [vmem:[%s6892_s2 + $0x4a8] sm:$0xff] }
  0x99   : > { %2918 = vmatmul.mubr.msk.f32.gmra.mrb[4].mxu1 %vm5232_vm3, %v5247_v20  ;;  %3085 = vmatprep.mubr.msk.f32.mxu0 %vm5232_vm3, %v5238_v16 }
  0x9a   : > { %3500 = vmatpush1.bf16.msra.mxu1 %v3499_v19  ;;  %3086 = vmatmul.mubr.msk.f32.gmra.mrb[4].mxu0 %vm5232_vm3, %v5247_v20  ;;  %v3507_v19 = vpack.c.bf16 %v2951_v62, %v2949_v9  ;;  %v3511_v9 = vpack.c.bf16 %v2955_v27, %v2953_v23  ;;  %v5415_v62 = vsel %vm603_vm1, %v591_v50, %v593_v18  ;;  %v598_v27 = vrot.slane %v4874_v55, 7  ;;  %v2961_v55 = vld [vmem:[%s6892_s2 + $0x8e0] sm:$0xff] }
  0x9b   : > { %3756 = vmatpush1.bf16.msra.mxu0 %v3755_v22  ;;  %3502 = vmatprep.subr.bf16.mxu1 %v3501_v26  ;;  %v5359_v22 = vsel %vm603_vm1, %v589_v21, %v591_v50  ;;  %v3763_v26 = vpack.c.bf16 %v3119_v11, %v3117_v44  ;;  %v3765_v21 = vpack.c.bf16 %v3124_v46, %v3122_v2  ;;  %v595_v44 = vrot.slane %v4844_v41, 7  ;;  %v2959_v11 = vld [vmem:[%s6892_s2 + $0x8d0] sm:$0xff]  ;;  %v2964_v2 = vld [vmem:[%s6892_s2 + $0x8f8] sm:$0xff] }
  0x9c   : > { %3758 = vmatprep.subr.bf16.mxu0 %v3757_v33  ;;  %2919 = vmatprep.mubr.msk.f32.mxu1 %vm5286_vm4, %v5292_v40  ;;  %v2958_v33 = vld [vmem:[%s6892_s2 + $0x8c8] sm:$0xff]  ;;  %6956 = vst [vmem:[#allocation8_spill] sm:$0xff] %v5415_v62  ;;  %v3769_v50 = vpack.c.bf16 %v3128_v37, %v3126_v35  ;;  %v3127_v41 = vld [vmem:[%s6892_s2 + $0x4d0] sm:$0xff]  ;;  %v6895_v46 = vand.u32 7, %v5384_v34  ;;  %v3129_v37 = vld [vmem:[%s6892_s2 + $0x4e0] sm:$0xff] }
  0x9d   : > { %2920 = vmatmul.mubr.msk.f32.gmra.mrb[6].mxu1 %vm5286_vm4, %v5303_v49  ;;  %3087 = vmatprep.mubr.msk.f32.mxu0 %vm5286_vm4, %v5292_v40  ;;  %v2963_v35 = vld [vmem:[%s6892_s2 + $0x8f0] sm:$0xff] }
  0x9e   : > { %3504 = vmatpush1.bf16.msra.mxu1 %v3503_v45  ;;  %3088 = vmatmul.mubr.msk.f32.gmra.mrb[6].mxu0 %vm5286_vm4, %v5303_v49  ;;  %v5406_v45 = vsel %vm603_vm1, %v592_v32, %v594_v8  ;;  %v3767_v32 = vpack.c.bf16 %v3123_v25, %v3121_v29  ;;  %v5464_v29 = vadd.s32 64, %v4910_v12  ;;  %v5471_v25 = vsel %vm603_vm1, %v593_v18, %v595_v44 }
  0x9f   : > { %3760 = vmatpush1.bf16.msra.mxu0 %v3759_v53  ;;  %3506 = vmatprep.subr.bf16.mxu1 %v3505_v56  ;;  %6955 = vst [vmem:[#allocation7_spill] sm:$0xff] %v5406_v45  ;;  %v6898_v53 = vand.u32 7, %v5352_v13  ;;  %v596_v56 = vrot.slane %v4840_v39, 7  ;;  %v2957_v39 = vld [vmem:[%s6892_s2 + $0x8c0] sm:$0xff]  ;;  %6961 = vst [vmem:[#allocation11_spill] sm:$0xff] %v5471_v25  ;;  %vm5497_vm8 = vcmp.ne.s32.totalorder %v6895_v46, 0 }
  0xa0   : > { %3762 = vmatprep.subr.bf16.mxu0 %v3761_v61  ;;  %2921 = vmatprep.mubr.msk.f32.mxu1 %vm5329_vm5, %v5347_v3  ;;  %v3513_v61 = vpack.c.bf16 %v2960_v60, %v2958_v33  ;;  %v597_v33 = vrot.slane %v4878_v59, 7  ;;  %v3517_v60 = vpack.c.bf16 %v2964_v2, %v2962_v0  ;;  %v3131_v59 = vld [vmem:[%s6892_s2 + $0x4f0] sm:$0xff]  ;;  %v5520_v0 = vadd.s32 72, %v4910_v12 }
  0xa1   : > { %2922 = vmatmul.mubr.msk.f32.gmra.mrb[8].mxu1 %vm5329_vm5, %v5359_v22  ;;  %3089 = vmatprep.mubr.msk.f32.mxu0 %vm5329_vm5, %v5347_v3  ;;  %vm5454_vm7 = vcmp.ne.s32.totalorder %v6898_v53, 0  ;;  %v5460_v23 = vsel %vm603_vm1, %v594_v8, %v596_v56  ;;  %v3771_v8 = vpack.c.bf16 %v3127_v41, %v3125_v63  ;;  %v5515_v63 = vsel %vm603_vm1, %v596_v56, %v598_v27 }
  0xa2   : > { %3508 = vmatpush1.bf16.msra.mxu1 %v3507_v19  ;;  %3090 = vmatmul.mubr.msk.f32.gmra.mrb[8].mxu0 %vm5329_vm5, %v5359_v22  ;;  %v3130_v19 = vld [vmem:[%s6892_s2 + $0x4e8] sm:$0xff]  ;;  %6960 = vst [vmem:[#allocation10_spill] sm:$0xff] %v5460_v23  ;;  %6965 = vst [vmem:[#allocation13_spill] sm:$0xff] %v5515_v63  ;;  %v600_v41 = vrot.slane %v4908_v10, 7  ;;  %v3519_v2 = vpack.c.bf16 %v2963_v35, %v2961_v55  ;;  %v599_v56 = vrot.slane %v4914_v14, 7  ;;  %v2965_v10 = vld [vmem:[%s6892_s2 + $0x900] sm:$0xff] }
  0xa3   : > { %3764 = vmatpush1.bf16.msra.mxu0 %v3763_v26  ;;  %3510 = vmatprep.subr.bf16.mxu1 %v3509_v58  ;;  %v3132_v26 = vld [vmem:[%s6892_s2 + $0x4f8] sm:$0xff]  ;;  %v6957_v58 = vmov 0  ;;  %v3133_v55 = vld [vmem:[%s6892_s2 + $0x500] sm:$0xff]  ;;  %v3135_v14 = vld [vmem:[%s6892_s2 + $0x510] sm:$0xff] }
  0xa4   : > { %3766 = vmatprep.subr.bf16.mxu0 %v3765_v21  ;;  %2923 = vmatprep.mubr.msk.f32.mxu1 %vm5400_vm6, %v5406_v45  ;;  %v6958_v58 = vsel %vm5454_vm7, 4294967295, %v6957_v58  ;;  %v3515_v21 = vpack.c.bf16 %v2959_v11, %v2957_v39  ;;  %v3773_v18 = vpack.c.bf16 %v3132_v26, %v3130_v19  ;;  %v3134_v39 = vld [vmem:[%s6892_s2 + $0x508] sm:$0xff]  ;;  %v3136_v11 = vld [vmem:[%s6892_s2 + $0x518] sm:$0xff]  ;;  %v5527_v19 = vsel %vm603_vm1, %v595_v44, %v597_v33 }
  0xa5   : > { %2924 = vmatmul.mubr.msk.f32.gmra.mrb[10].mxu1 %vm5400_vm6, %v5415_v62  ;;  %3091 = vmatprep.mubr.msk.f32.mxu0 %vm5400_vm6, %v5406_v45  ;;  %6959 = vst [vmem:[#allocation9_spill] sm:$0xff] %v6958_v58  ;;  %6966 = vst [vmem:[#allocation14_spill] sm:$0xff] %v5527_v19  ;;  %v3775_v26 = vpack.c.bf16 %v3131_v59, %v3129_v37  ;;  %v3777_v44 = vpack.c.bf16 %v3136_v11, %v3134_v39  ;;  %v3138_v35 = vld [vmem:[%s6892_s2 + $0x528] sm:$0xff]  ;;  %v3140_v37 = vld [vmem:[%s6892_s2 + $0x538] sm:$0xff] }
  0xa6   : > { %3512 = vmatpush1.bf16.msra.mxu1 %v3511_v9  ;;  %3092 = vmatmul.mubr.msk.f32.gmra.mrb[10].mxu0 %vm5400_vm6, %v5415_v62  ;;  %v2966_v9 = vld [vmem:[%s6892_s2 + $0x908] sm:$0xff]  ;;  %v5571_v59 = vsel %vm603_vm1, %v598_v27, %v600_v41  ;;  %v5579_v39 = vsel %vm603_vm1, %v597_v33, %v599_v56  ;;  %v3779_v11 = vpack.c.bf16 %v3135_v14, %v3133_v55  ;;  %v2969_v27 = vld [vmem:[%s6892_s2 + $0x920] sm:$0xff]  ;;  %v6972_v14 = vmov 0 }
  0xa7   : > { %3768 = vmatpush1.bf16.msra.mxu0 %v3767_v32  ;;  %3514 = vmatprep.subr.bf16.mxu1 %v3513_v61  ;;  %v2968_v32 = vld [vmem:[%s6892_s2 + $0x918] sm:$0xff]  ;;  %v6962_v61 = vmov 0  ;;  %6970 = vst [vmem:[#allocation16_spill] sm:$0xff] %v5571_v59  ;;  %6971 = vst [vmem:[#allocation17_spill] sm:$0xff] %v5579_v39  ;;  %v2974_v33 = vld [vmem:[%s6892_s2 + $0x948] sm:$0xff] }
  0xa8   : > { %3770 = vmatprep.subr.bf16.mxu0 %v3769_v50  ;;  %2925 = vmatprep.mubr.msk.f32.mxu1 %vm5454_vm7, %v5460_v23  ;;  %v6963_v61 = vsel %vm5497_vm8, 4294967295, %v6962_v61  ;;  %v6896_v50 = vand.u32 7, %v5464_v29  ;;  %v3521_v46 = vpack.c.bf16 %v2968_v32, %v2966_v9  ;;  %v6897_v9 = vand.u32 7, %v5520_v0  ;;  %v3142_v55 = vld [vmem:[%s6892_s2 + $0x548] sm:$0xff] }
  0xa9   : > { %6964 = vst [vmem:[#allocation12_spill] sm:$0xff] %v6963_v61  ;;  %2926 = vmatmul.mubr.msk.f32.gmra.mrb[12].mxu1 %vm5454_vm7, %v5471_v25  ;;  %3093 = vmatprep.mubr.msk.f32.mxu0 %vm5454_vm7, %v5460_v23  ;;  %v5950_v61 = vld [vmem:[%s4642_s25 + $0x38] sm:$0xff] }
  0xaa   : > { %3516 = vmatpush1.bf16.msra.mxu1 %v3515_v21  ;;  %3094 = vmatmul.mubr.msk.f32.gmra.mrb[12].mxu0 %vm5454_vm7, %v5471_v25  ;;  %v2967_v21 = vld [vmem:[%s6892_s2 + $0x910] sm:$0xff]  ;;  %vm5565_vm9 = vcmp.ne.s32.totalorder %v6896_v50, 0  ;;  %vm5616_vm10 = vcmp.ne.s32.totalorder %v6897_v9, 0  ;;  %v5637_v9 = vld [vmem:[%s4642_s25 + $0x8] sm:$0xff]  ;;  %v6058_v23 = vld [vmem:[%s4642_s25 + $0x58] sm:$0xff] }
  0xab   : > { %3772 = vmatpush1.bf16.msra.mxu0 %v3771_v8  ;;  %3518 = vmatprep.subr.bf16.mxu1 %v3517_v60  ;;  %v2970_v8 = vld [vmem:[%s6892_s2 + $0x928] sm:$0xff]  ;;  %v2972_v60 = vld [vmem:[%s6892_s2 + $0x938] sm:$0xff]  ;;  %v3523_v32 = vpack.c.bf16 %v2967_v21, %v2965_v10  ;;  %v3137_v10 = vld [vmem:[%s6892_s2 + $0x520] sm:$0xff]  ;;  %v3781_v21 = vpack.c.bf16 %v3140_v37, %v3138_v35  ;;  %v6973_v14 = vsel %vm5616_vm10, 4294967295, %v6972_v14  ;;  %v5631_v35 = vsel %vm603_vm1, %v599_v56, %v4965_v43 }
  0xac   : > { %3774 = vmatprep.subr.bf16.mxu0 %v3773_v18  ;;  %2927 = vmatprep.mubr.msk.f32.mxu1 %vm5497_vm8, %v5515_v63  ;;  %v6967_v18 = vmov 0  ;;  %v3525_v50 = vpack.c.bf16 %v2972_v60, %v2970_v8  ;;  %6974 = vst [vmem:[#allocation18_spill] sm:$0xff] %v6973_v14  ;;  %v5623_v8 = vsel %vm603_vm1, %v600_v41, %v4965_v43  ;;  %6976 = vst [vmem:[#allocation20_spill] sm:$0xff] %v5631_v35  ;;  %v5634_v37 = vrot.slane %v6905_v7, 1  ;;  %v2975_v56 = vld [vmem:[%s6892_s2 + $0x950] sm:$0xff]  ;;  %v6004_v25 = vld [vmem:[%s4642_s25 + $0x48] sm:$0xff] }
  0xad   : > { %2928 = vmatmul.mubr.msk.f32.gmra.mrb[14].mxu1 %vm5497_vm8, %v5527_v19  ;;  %3095 = vmatprep.mubr.msk.f32.mxu0 %vm5497_vm8, %v5515_v63  ;;  %v6968_v18 = vsel %vm5565_vm9, 4294967295, %v6967_v18  ;;  %6975 = vst [vmem:[#allocation19_spill] sm:$0xff] %v5623_v8  ;;  %v6903_v53 = vrot.slane %v5637_v9, 1 }
  0xae   : > { %6969 = vst [vmem:[#allocation15_spill] sm:$0xff] %v6968_v18  ;;  %3520 = vmatpush1.bf16.msra.mxu1 %v3519_v2  ;;  %3096 = vmatmul.mubr.msk.f32.gmra.mrb[14].mxu0 %vm5497_vm8, %v5527_v19  ;;  %v2971_v2 = vld [vmem:[%s6892_s2 + $0x930] sm:$0xff]  ;;  %v5896_v18 = vld [vmem:[%s4642_s25 + $0x28] sm:$0xff]  ;;  %vm7007_vm8 = vcmp.lt.s32.totalorder %v4910_v12, 7 }
  0xaf   : > { %3776 = vmatpush1.bf16.msra.mxu0 %v3775_v26  ;;  %3522 = vmatprep.subr.bf16.mxu1 %v3521_v46  ;;  %v3139_v46 = vld [vmem:[%s6892_s2 + $0x530] sm:$0xff]  ;;  %v2976_v26 = vld [vmem:[%s6892_s2 + $0x958] sm:$0xff]  ;;  %v3527_v60 = vpack.c.bf16 %v2971_v2, %v2969_v27  ;;  %v2973_v27 = vld [vmem:[%s6892_s2 + $0x940] sm:$0xff] }
  0xb0   : > { %3778 = vmatprep.subr.bf16.mxu0 %v3777_v44  ;;  %2929 = vmatprep.mubr.msk.f32.mxu1 %vm5565_vm9, %v5571_v59  ;;  %v3144_v44 = vld [vmem:[%s6892_s2 + $0x558] sm:$0xff]  ;;  %v3783_v41 = vpack.c.bf16 %v3139_v46, %v3137_v10  ;;  %v3141_v2 = vld [vmem:[%s6892_s2 + $0x540] sm:$0xff] }
  0xb1   : > { %2930 = vmatmul.mubr.msk.f32.gmra.mrb[20].mxu1 %vm5565_vm9, %v5579_v39  ;;  %3097 = vmatprep.mubr.msk.f32.mxu0 %vm5565_vm9, %v5571_v59  ;;  %v3785_v5 = vpack.c.bf16 %v3144_v44, %v3142_v55  ;;  %v2980_v10 = vld [vmem:[%s6892_s2 + $0x978] sm:$0xff]  ;;  %v5688_v55 = vsel %vm6923_vm11, %v5634_v37, %v6903_v53 }
  0xb2   : > { %3524 = vmatpush1.bf16.msra.mxu1 %v3523_v32  ;;  %3098 = vmatmul.mubr.msk.f32.gmra.mrb[16].mxu0 %vm5565_vm9, %v5579_v39  ;;  %v3529_v32 = vpack.c.bf16 %v2976_v26, %v2974_v33  ;;  %v3148_v46 = vld [vmem:[%s6892_s2 + $0x578] sm:$0xff]  ;;  %v3531_v33 = vpack.c.bf16 %v2975_v56, %v2973_v27  ;;  %v2977_v27 = vld [vmem:[%s6892_s2 + $0x960] sm:$0xff]  ;;  %vm7002_vm9 = vcmp.lt.s32.totalorder %v4910_v12, 7 }
  0xb3   : > { %3780 = vmatpush1.bf16.msra.mxu0 %v3779_v11  ;;  %3526 = vmatprep.subr.bf16.mxu1 %v3525_v50  ;;  %v3143_v50 = vld [vmem:[%s6892_s2 + $0x550] sm:$0xff]  ;;  %v2978_v11 = vld [vmem:[%s6892_s2 + $0x968] sm:$0xff]  ;;  %v3145_v56 = vld [vmem:[%s6892_s2 + $0x560] sm:$0xff] }
  0xb4   : > { %3782 = vmatprep.subr.bf16.mxu0 %v3781_v21  ;;  %2931 = vmatprep.mubr.msk.f32.mxu1 %vm5616_vm10, %v5623_v8  ;;  %v3146_v21 = vld [vmem:[%s6892_s2 + $0x568] sm:$0xff]  ;;  %v3787_v44 = vpack.c.bf16 %v3143_v50, %v3141_v2  ;;  %v2984_v2 = vld [vmem:[%s6892_s2 + $0x998] sm:$0xff] }
  0xb5   : > { %2932 = vmatmul.mubr.msk.f32.gmra.mrb[22].mxu1 %vm5616_vm10, %v5631_v35  ;;  %3099 = vmatprep.mubr.msk.f32.mxu0 %vm5616_vm10, %v5623_v8  ;;  %v3789_v36 = vpack.c.bf16 %v3148_v46, %v3146_v21  ;;  %v3150_v50 = vld [vmem:[%s6892_s2 + $0x588] sm:$0xff]  ;;  %v2981_v46 = vld [vmem:[%s6892_s2 + $0x980] sm:$0xff]  ;;  %v6983_v8 = vrot.slane %v5637_v9, 1 }
  0xb6   : > { %3528 = vmatpush1.bf16.msra.mxu1 %v3527_v60  ;;  %3100 = vmatmul.mubr.msk.f32.gmra.mrb[18].mxu0 %vm5616_vm10, %v5631_v35  ;;  %v3533_v60 = vpack.c.bf16 %v2980_v10, %v2978_v11  ;;  %v3535_v11 = vpack.c.bf16 %v2979_v28, %v2977_v27  ;;  %v3154_v27 = vld [vmem:[%s6892_s2 + $0x5a8] sm:$0xff]  ;;  %v3539_v28 = vpack.c.bf16 %v2983_v17, %v2981_v46  ;;  %v3155_v17 = vld [vmem:[%s6892_s2 + $0x5b0] sm:$0xff]  ;;  %vm6997_vm10 = vcmp.lt.s32.totalorder %v4910_v12, 7 }
  0xb7   : > { %3784 = vmatpush1.bf16.msra.mxu0 %v3783_v41  ;;  %3530 = vmatprep.subr.bf16.mxu1 %v3529_v32  ;;  %v3147_v41 = vld [vmem:[%s6892_s2 + $0x570] sm:$0xff]  ;;  %v2982_v32 = vld [vmem:[%s6892_s2 + $0x988] sm:$0xff] }
  0xb8   : > { %3786 = vmatprep.subr.bf16.mxu0 %v3785_v5  ;;  %1345 = vmatprep.mubr.f32.mxu1 %v6905_v7  ;;  %v3152_v5 = vld [vmem:[%s6892_s2 + $0x598] sm:$0xff]  ;;  %v3791_v10 = vpack.c.bf16 %v3147_v41, %v3145_v56  ;;  %v3537_v21 = vpack.c.bf16 %v2984_v2, %v2982_v32  ;;  %v2985_v32 = vld [vmem:[%s6892_s2 + $0x9a0] sm:$0xff]  ;;  %v2987_v2 = vld [vmem:[%s6892_s2 + $0x9b0] sm:$0xff] }
  0xb9   : > { %3165 = vmatprep.mubr.msk.f32.mxu0 %vm5679_vm12, %v5688_v55  ;;  %v3793_v53 = vpack.c.bf16 %v3152_v5, %v3150_v50  ;;  %v3153_v50 = vld [vmem:[%s6892_s2 + $0x5a0] sm:$0xff]  ;;  %v3194_v35 = vld [vmem:[%s6892_s2 + $0xa48] sm:$0xff] }
  0xba   : > { %3532 = vmatpush1.bf16.msra.mxu1 %v3531_v33  ;;  %v3151_v33 = vld [vmem:[%s6892_s2 + $0x590] sm:$0xff]  ;;  %v3799_v46 = vpack.c.bf16 %v3155_v17, %v3153_v50  ;;  %v2725_v7 = vld [vmem:[%s6892_s2 + $0x620] sm:$0xff] }
  0xbb   : > { %3788 = vmatpush1.bf16.msra.mxu0 %v3787_v44  ;;  %3534 = vmatprep.subr.bf16.mxu1 %v3533_v60  ;;  %v2986_v44 = vld [vmem:[%s6892_s2 + $0x9a8] sm:$0xff]  ;;  %v2988_v60 = vld [vmem:[%s6892_s2 + $0x9b8] sm:$0xff]  ;;  %v3795_v56 = vpack.c.bf16 %v3151_v33, %v3149_v52 }
  0xbc   : > { %3790 = vmatprep.subr.bf16.mxu0 %v3789_v36  ;;  %v3156_v36 = vld [vmem:[%s6892_s2 + $0x5b8] sm:$0xff]  ;;  %v3541_v41 = vpack.c.bf16 %v2988_v60, %v2986_v44  ;;  %v2990_v52 = vld [vmem:[%s6892_s2 + $0x9c8] sm:$0xff]  ;;  %v2989_v44 = vld [vmem:[%s6892_s2 + $0x9c0] sm:$0xff] }
  0xbd   : > { %v3797_v5 = vpack.c.bf16 %v3156_v36, %v3154_v27  ;;  %v2991_v60 = vld [vmem:[%s6892_s2 + $0x9d0] sm:$0xff]  ;;  %v3157_v27 = vld [vmem:[%s6892_s2 + $0x5c0] sm:$0xff] }
  0xbe   : > { %3536 = vmatpush1.bf16.msra.mxu1 %v3535_v11  ;;  %v2992_v11 = vld [vmem:[%s6892_s2 + $0x9d8] sm:$0xff]  ;;  %v3547_v50 = vpack.c.bf16 %v2991_v60, %v2989_v44  ;;  %v3186_v44 = vld [vmem:[%s6892_s2 + $0xa08] sm:$0xff] }
  0xbf   : > { %3792 = vmatpush1.bf16.msra.mxu0 %v3791_v10  ;;  %3538 = vmatprep.subr.bf16.mxu1 %v3537_v21  ;;  %v3158_v10 = vld [vmem:[%s6892_s2 + $0x5c8] sm:$0xff]  ;;  %v3543_v21 = vpack.c.bf16 %v2987_v2, %v2985_v32  ;;  %v3545_v33 = vpack.c.bf16 %v2992_v11, %v2990_v52  ;;  %v3164_v2 = vld [vmem:[%s6892_s2 + $0x5f8] sm:$0xff]  ;;  %v2993_v52 = vld [vmem:[%s6892_s2 + $0x9e0] sm:$0xff] }
  0xc0   : > { %3794 = vmatprep.subr.bf16.mxu0 %v3793_v53  ;;  %v3160_v53 = vld [vmem:[%s6892_s2 + $0x5d8] sm:$0xff]  ;;  %v3162_v32 = vld [vmem:[%s6892_s2 + $0x5e8] sm:$0xff]  ;;  %v2995_v11 = vld [vmem:[%s6892_s2 + $0x9f0] sm:$0xff] }
  0xc1   : > { %v3801_v36 = vpack.c.bf16 %v3160_v53, %v3158_v10  ;;  %v3161_v10 = vld [vmem:[%s6892_s2 + $0x5e0] sm:$0xff]  ;;  %v3805_v53 = vpack.c.bf16 %v3164_v2, %v3162_v32  ;;  %v3188_v60 = vld [vmem:[%s6892_s2 + $0xa18] sm:$0xff]  ;;  %v2723_v2 = vld [vmem:[%s6892_s2 + $0x610] sm:$0xff] }
  0xc2   : > { %3540 = vmatpush1.bf16.msra.mxu1 %v3539_v28  ;;  %v3159_v28 = vld [vmem:[%s6892_s2 + $0x5d0] sm:$0xff]  ;;  %v2721_v32 = vld [vmem:[%s6892_s2 + $0x600] sm:$0xff] }
  0xc3   : > { %3796 = vmatpush1.bf16.msra.mxu0 %v3795_v56  ;;  %3542 = vmatprep.subr.bf16.mxu1 %v3541_v41  ;;  %v2994_v56 = vld [vmem:[%s6892_s2 + $0x9e8] sm:$0xff]  ;;  %v2996_v41 = vld [vmem:[%s6892_s2 + $0x9f8] sm:$0xff] }
  0xc4   : > { %3798 = vmatprep.subr.bf16.mxu0 %v3797_v5  ;;  %v3803_v5 = vpack.c.bf16 %v3159_v28, %v3157_v27  ;;  %v3549_v17 = vpack.c.bf16 %v2996_v41, %v2994_v56  ;;  %v3551_v27 = vpack.c.bf16 %v2995_v11, %v2993_v52  ;;  %v3809_v52 = vpack.c.bf16 %v3188_v60, %v3186_v44  ;;  %v2728_v11 = vld [vmem:[%s6892_s2 + $0x638] sm:$0xff] }
  0xc6   : > { %3544 = vmatpush1.bf16.msra.mxu1 %v3543_v21  ;;  %v3163_v21 = vld [vmem:[%s6892_s2 + $0x5f0] sm:$0xff] }
  0xc7   : > { %3800 = vmatpush1.bf16.msra.mxu0 %v3799_v46  ;;  %3546 = vmatprep.subr.bf16.mxu1 %v3545_v33  ;;  %v2722_v46 = vld [vmem:[%s6892_s2 + $0x608] sm:$0xff]  ;;  %v2724_v33 = vld [vmem:[%s6892_s2 + $0x618] sm:$0xff]  ;;  %v3807_v56 = vpack.c.bf16 %v3163_v21, %v3161_v10  ;;  %v3555_v21 = vpack.c.bf16 %v2723_v2, %v2721_v32 }
  0xc8   : > { %3802 = vmatprep.subr.bf16.mxu0 %v3801_v36  ;;  %v5815_v36 = vld [vmem:[%s4642_s25] sm:$0xff]  ;;  %v3553_v41 = vpack.c.bf16 %v2724_v33, %v2722_v46  ;;  %v3190_v10 = vld [vmem:[%s6892_s2 + $0xa28] sm:$0xff]  ;;  %v5843_v46 = vld [vmem:[%s4642_s25 + $0x18] sm:$0xff] }
  0xc9   : > { %v656_v28 = vrot.slane %v5815_v36, 1  ;;  %v659_v33 = vrot.slane %v5843_v46, 1 }
  0xca   : > { %3548 = vmatpush1.bf16.msra.mxu1 %v3547_v50  ;;  %v3185_v50 = vld [vmem:[%s6892_s2 + $0xa00] sm:$0xff] }
  0xcb   : > { %3804 = vmatpush1.bf16.msra.mxu0 %v3803_v5  ;;  %3550 = vmatprep.subr.bf16.mxu1 %v3549_v17  ;;  %v3187_v5 = vld [vmem:[%s6892_s2 + $0xa10] sm:$0xff]  ;;  %v2726_v17 = vld [vmem:[%s6892_s2 + $0x628] sm:$0xff]  ;;  %v5849_v44 = vsel %vm6923_vm11, %v5634_v37, %v656_v28  ;;  %v5893_v39 = vsel %vm6923_vm11, %v6983_v8, %v659_v33  ;;  %v3193_v8 = vld [vmem:[%s6892_s2 + $0xa40] sm:$0xff] }
  0xcc   : > { %3806 = vmatprep.subr.bf16.mxu0 %v3805_v53  ;;  %v3192_v53 = vld [vmem:[%s6892_s2 + $0xa38] sm:$0xff]  ;;  %v3811_v60 = vpack.c.bf16 %v3187_v5, %v3185_v50  ;;  %v3557_v24 = vpack.c.bf16 %v2728_v11, %v2726_v17  ;;  %v3191_v50 = vld [vmem:[%s6892_s2 + $0xa30] sm:$0xff]  ;;  %v2730_v5 = vld [vmem:[%s6892_s2 + $0x648] sm:$0xff]  ;;  %v6979_v11 = vmov 0.0  }
  0xcd   : > { %v3813_v2 = vpack.c.bf16 %v3192_v53, %v3190_v10  ;;  %v2732_v17 = vld [vmem:[%s6892_s2 + $0x658] sm:$0xff]  ;;  %v6980_v53 = vand.u32 7, %v5103_v4  ;;  %v2729_v4 = vld [vmem:[%s6892_s2 + $0x640] sm:$0xff] }
  0xce   : > { %3552 = vmatpush1.bf16.msra.mxu1 %v3551_v27  ;;  %v2727_v27 = vld [vmem:[%s6892_s2 + $0x630] sm:$0xff] }
  0xcf   : > { %3808 = vmatpush1.bf16.msra.mxu0 %v3807_v56  ;;  %3554 = vmatprep.subr.bf16.mxu1 %v3553_v41  ;;  %v3189_v56 = vld [vmem:[%s6892_s2 + $0xa20] sm:$0xff]  ;;  %v5861_v41 = vld [vmem:[%s4642_s25 + $0x10] sm:$0xff]  ;;  %v3559_v10 = vpack.c.bf16 %v2727_v27, %v2725_v7  ;;  %vm5885_vm13 = vcmp.ne.s32.totalorder %v6980_v53, 7  ;;  %v3561_v7 = vpack.c.bf16 %v2732_v17, %v2730_v5  ;;  %v2734_v5 = vld [vmem:[%s6892_s2 + $0x668] sm:$0xff] }
  0xd0   : > { %v658_v32 = vrot.slane %v5861_v41, 1  ;;  %3810 = vmatprep.subr.bf16.mxu0 %v3809_v52  ;;  %v3196_v52 = vld [vmem:[%s6892_s2 + $0xa58] sm:$0xff]  ;;  %v3815_v59 = vpack.c.bf16 %v3191_v50, %v3189_v56  ;;  %v2731_v27 = vld [vmem:[%s6892_s2 + $0x650] sm:$0xff]  ;;  %v3198_v17 = vld [vmem:[%s6892_s2 + $0xa68] sm:$0xff] }
  0xd1   : > { %1346 = vmatmul.mubr.f32.vlgmr.msra.gmra.mrb[24].mxu1 %v6979_v11  ;;  %v3817_v56 = vpack.c.bf16 %v3196_v52, %v3194_v35  ;;  %v3195_v50 = vld [vmem:[%s6892_s2 + $0xa50] sm:$0xff]  ;;  %v3200_v35 = vld [vmem:[%s6892_s2 + $0xa78] sm:$0xff] }
  0xd2   : > { %3556 = vmatpush1.bf16.msra.mxu1 %v3555_v21  ;;  %3166 = vmatmul.mubr.msk.f32.vlgmr.msra.gmra.mrb[4].mxu0 %vm5679_vm12, %v5849_v44  ;;  %v661_v21 = vrot.slane %v5896_v18, 1  ;;  %v5910_v53 = vsel %vm6923_vm11, %v656_v28, %v658_v32  ;;  %v2736_v28 = vld [vmem:[%s6892_s2 + $0x678] sm:$0xff] }
  0xd3   : > { %3812 = vmatpush1.bf16.msra.mxu0 %v3811_v60  ;;  %3558 = vmatprep.subr.bf16.mxu1 %v3557_v24  ;;  %v5913_v60 = vld [vmem:[%s4642_s25 + $0x20] sm:$0xff] }
  0xd4   : > { %v660_v24 = vrot.slane %v5913_v60, 1  ;;  %3814 = vmatprep.subr.bf16.mxu0 %v3813_v2  ;;  %1349 = vmatprep.mubr.f32.mxu1 %v5637_v9  ;;  %v3563_v2 = vpack.c.bf16 %v2731_v27, %v2729_v4  ;;  %v6984_v9 = vand.u32 7, %v5138_v31  ;;  %v5947_v19 = vsel %vm6923_vm11, %v659_v33, %v661_v21  ;;  %v2733_v31 = vld [vmem:[%s6892_s2 + $0x660] sm:$0xff]  ;;  %v2735_v27 = vld [vmem:[%s6892_s2 + $0x670] sm:$0xff] }
  0xd5   : > { %3167 = vmatprep.mubr.msk.f32.mxu0 %vm5885_vm13, %v5893_v39  ;;  %1350 = vmatmul.mubr.f32.gmra.mrb[0].mxu1 %v5815_v36  ;;  %v663_v36 = vrot.slane %v5950_v61, 1  ;;  %v3565_v4 = vpack.c.bf16 %v2736_v28, %v2734_v5  ;;  %v3197_v33 = vld [vmem:[%s6892_s2 + $0xa60] sm:$0xff]  ;;  %v2738_v5 = vld [vmem:[%s6892_s2 + $0x688] sm:$0xff] }
  0xd6   : > { %3560 = vmatpush1.bf16.msra.mxu1 %v3559_v10  ;;  %3168 = vmatmul.mubr.msk.f32.gmra.mrb[6].mxu0 %vm5885_vm13, %v5910_v53  ;;  %vm5941_vm14 = vcmp.ne.s32.totalorder %v6984_v9, 7  ;;  %v3819_v10 = vpack.c.bf16 %v3195_v50, %v3193_v8  ;;  %v5964_v9 = vsel %vm6923_vm11, %v658_v32, %v660_v24  ;;  %v3821_v8 = vpack.c.bf16 %v3200_v35, %v3198_v17  ;;  %v3199_v50 = vld [vmem:[%s6892_s2 + $0xa70] sm:$0xff]  ;;  %v2740_v32 = vld [vmem:[%s6892_s2 + $0x698] sm:$0xff]  ;;  %v3202_v28 = vld [vmem:[%s6892_s2 + $0xa88] sm:$0xff] }
  0xd7   : > { %3816 = vmatpush1.bf16.msra.mxu0 %v3815_v59  ;;  %3562 = vmatprep.subr.bf16.mxu1 %v3561_v7  ;;  %v5967_v59 = vld [vmem:[%s4642_s25 + $0x30] sm:$0xff]  ;;  %v3567_v17 = vpack.c.bf16 %v2735_v27, %v2733_v31  ;;  %v6001_v63 = vsel %vm6923_vm11, %v661_v21, %v663_v36  ;;  %v3569_v31 = vpack.c.bf16 %v2740_v32, %v2738_v5  ;;  %v3201_v21 = vld [vmem:[%s6892_s2 + $0xa80] sm:$0xff]  ;;  %v2742_v5 = vld [vmem:[%s6892_s2 + $0x6a8] sm:$0xff] }
  0xd8   : > { %v662_v7 = vrot.slane %v5967_v59, 1  ;;  %3818 = vmatprep.subr.bf16.mxu0 %v3817_v56  ;;  %1355 = vmatprep.mubr.f32.mxu1 %v5843_v46  ;;  %v3204_v56 = vld [vmem:[%s6892_s2 + $0xa98] sm:$0xff]  ;;  %v6987_v46 = vand.u32 7, %v5183_v54  ;;  %v2737_v54 = vld [vmem:[%s6892_s2 + $0x680] sm:$0xff]  ;;  %v2739_v27 = vld [vmem:[%s6892_s2 + $0x690] sm:$0xff] }
  0xd9   : > { %3169 = vmatprep.mubr.msk.f32.mxu0 %vm5941_vm14, %v5947_v19  ;;  %1356 = vmatmul.mubr.f32.gmra.mrb[2].mxu1 %v5861_v41  ;;  %v665_v41 = vrot.slane %v6004_v25, 1  ;;  %v3206_v32 = vld [vmem:[%s6892_s2 + $0xaa8] sm:$0xff] }
  0xda   : > { %3564 = vmatpush1.bf16.msra.mxu1 %v3563_v2  ;;  %3170 = vmatmul.mubr.msk.f32.gmra.mrb[8].mxu0 %vm5941_vm14, %v5964_v9  ;;  %vm5995_vm15 = vcmp.ne.s32.totalorder %v6987_v46, 7  ;;  %v3823_v2 = vpack.c.bf16 %v3199_v50, %v3197_v33  ;;  %v6018_v46 = vsel %vm6923_vm11, %v660_v24, %v662_v7  ;;  %v3825_v33 = vpack.c.bf16 %v3204_v56, %v3202_v28  ;;  %v3203_v50 = vld [vmem:[%s6892_s2 + $0xa90] sm:$0xff]  ;;  %v2744_v24 = vld [vmem:[%s6892_s2 + $0x6b8] sm:$0xff] }
  0xdb   : > { %3820 = vmatpush1.bf16.msra.mxu0 %v3819_v10  ;;  %3566 = vmatprep.subr.bf16.mxu1 %v3565_v4  ;;  %v6021_v10 = vld [vmem:[%s4642_s25 + $0x40] sm:$0xff]  ;;  %v3571_v28 = vpack.c.bf16 %v2739_v27, %v2737_v54  ;;  %v6055_v58 = vsel %vm6923_vm11, %v663_v36, %v665_v41  ;;  %v3573_v54 = vpack.c.bf16 %v2744_v24, %v2742_v5  ;;  %v2743_v27 = vld [vmem:[%s6892_s2 + $0x6b0] sm:$0xff]  ;;  %v2746_v5 = vld [vmem:[%s6892_s2 + $0x6c8] sm:$0xff] }
  0xdc   : > { %v664_v4 = vrot.slane %v6021_v10, 1  ;;  %3822 = vmatprep.subr.bf16.mxu0 %v3821_v8  ;;  %1361 = vmatprep.mubr.f32.mxu1 %v5896_v18  ;;  %v3208_v8 = vld [vmem:[%s6892_s2 + $0xab8] sm:$0xff]  ;;  %v6990_v18 = vand.u32 7, %v5216_v6  ;;  %v2741_v6 = vld [vmem:[%s6892_s2 + $0x6a0] sm:$0xff]  ;;  %v3210_v24 = vld [vmem:[%s6892_s2 + $0xac8] sm:$0xff] }
  0xdd   : > { %3171 = vmatprep.mubr.msk.f32.mxu0 %vm5995_vm15, %v6001_v63  ;;  %1362 = vmatmul.mubr.f32.gmra.mrb[4].mxu1 %v5913_v60  ;;  %v667_v60 = vrot.slane %v6058_v23, 1  ;;  %v3205_v36 = vld [vmem:[%s6892_s2 + $0xaa0] sm:$0xff] }
  0xde   : > { %3568 = vmatpush1.bf16.msra.mxu1 %v3567_v17  ;;  %3172 = vmatmul.mubr.msk.f32.gmra.mrb[10].mxu0 %vm5995_vm15, %v6018_v46  ;;  %vm6049_vm1 = vcmp.ne.s32.totalorder %v6990_v18, 7  ;;  %v3827_v17 = vpack.c.bf16 %v3203_v50, %v3201_v21  ;;  %v6072_v18 = vsel %vm6923_vm11, %v662_v7, %v664_v4  ;;  %v3829_v21 = vpack.c.bf16 %v3208_v8, %v3206_v32  ;;  %v3207_v50 = vld [vmem:[%s6892_s2 + $0xab0] sm:$0xff]  ;;  %v2748_v7 = vld [vmem:[%s6892_s2 + $0x6d8] sm:$0xff] }
  0xdf   : > { %3824 = vmatpush1.bf16.msra.mxu0 %v3823_v2  ;;  %3570 = vmatprep.subr.bf16.mxu1 %v3569_v31  ;;  %6993 = vst [vmem:[#allocation21_spill] sm:$0xff] %v6072_v18  ;;  %v6075_v2 = vld [vmem:[%s4642_s25 + $0x50] sm:$0xff]  ;;  %v3575_v32 = vpack.c.bf16 %v2743_v27, %v2741_v6  ;;  %v6109_v62 = vsel %vm6997_vm10, %v665_v41, %v667_v60  ;;  %v3209_v41 = vld [vmem:[%s6892_s2 + $0xac0] sm:$0xff] }
  0xe0   : > { %v666_v31 = vrot.slane %v6075_v2, 1  ;;  %3826 = vmatprep.subr.bf16.mxu0 %v3825_v33  ;;  %1367 = vmatprep.mubr.f32.mxu1 %v5950_v61  ;;  %v3212_v33 = vld [vmem:[%s6892_s2 + $0xad8] sm:$0xff]  ;;  %v6994_v61 = vand.u32 7, %v5296_v42  ;;  %6998 = vst [vmem:[#allocation22_spill] sm:$0xff] %v6109_v62  ;;  %v3577_v6 = vpack.c.bf16 %v2748_v7, %v2746_v5  ;;  %v2745_v42 = vld [vmem:[%s6892_s2 + $0x6c0] sm:$0xff]  ;;  %v2747_v27 = vld [vmem:[%s6892_s2 + $0x6d0] sm:$0xff] }
  0xe1   : > { %3173 = vmatprep.mubr.msk.f32.mxu0 %vm6049_vm1, %v6055_v58  ;;  %1368 = vmatmul.mubr.f32.gmra.mrb[6].mxu1 %v5967_v59  ;;  %v669_v59 = vrot.slane %v6112_v30, 1  ;;  %v2750_v5 = vld [vmem:[%s6892_s2 + $0x6e8] sm:$0xff]  ;;  %v2752_v7 = vld [vmem:[%s6892_s2 + $0x6f8] sm:$0xff] }
  0xe2   : > { %3572 = vmatpush1.bf16.msra.mxu1 %v3571_v28  ;;  %3174 = vmatmul.mubr.msk.f32.gmra.mrb[12].mxu0 %vm6049_vm1, %v6072_v18  ;;  %vm6103_vm11 = vcmp.ne.s32.totalorder %v6994_v61, 7  ;;  %v3831_v28 = vpack.c.bf16 %v3207_v50, %v3205_v36  ;;  %v6126_v61 = vsel %vm6997_vm10, %v664_v4, %v666_v31  ;;  %v3833_v36 = vpack.c.bf16 %v3212_v33, %v3210_v24  ;;  %v3211_v50 = vld [vmem:[%s6892_s2 + $0xad0] sm:$0xff]  ;;  %v3214_v4 = vld [vmem:[%s6892_s2 + $0xae8] sm:$0xff] }
  0xe3   : > { %3828 = vmatpush1.bf16.msra.mxu0 %v3827_v17  ;;  %3574 = vmatprep.subr.bf16.mxu1 %v3573_v54  ;;  %v4135_v17 = vld [vmem:[%s4642_s25 + $0x60] sm:$0xff]  ;;  %v3579_v24 = vpack.c.bf16 %v2747_v27, %v2745_v42  ;;  %v7000_v33 = vmov 0  ;;  %v6160_v45 = vsel %vm7002_vm9, %v667_v60, %v669_v59 }
  0xe4   : > { %v668_v54 = vrot.slane %v4135_v17, 1  ;;  %3830 = vmatprep.subr.bf16.mxu0 %v3829_v21  ;;  %1373 = vmatprep.mubr.f32.mxu1 %v6004_v25  ;;  %v3216_v21 = vld [vmem:[%s6892_s2 + $0xaf8] sm:$0xff]  ;;  %v6999_v25 = vand.u32 7, %v5352_v13  ;;  %7003 = vst [vmem:[#allocation23_spill] sm:$0xff] %v6160_v45  ;;  %v2749_v42 = vld [vmem:[%s6892_s2 + $0x6e0] sm:$0xff]  ;;  %v2751_v13 = vld [vmem:[%s6892_s2 + $0x6f0] sm:$0xff] }
  0xe5   : > { %3175 = vmatprep.mubr.msk.f32.mxu0 %vm6103_vm11, %v6109_v62  ;;  %1374 = vmatmul.mubr.f32.gmra.mrb[8].mxu1 %v6021_v10  ;;  %v4136_v62 = vld [vmem:[%s4642_s25 + $0x78] sm:$0xff]  ;;  %v3835_v10 = vpack.c.bf16 %v3211_v50, %v3209_v41  ;;  %v3213_v27 = vld [vmem:[%s6892_s2 + $0xae0] sm:$0xff]  ;;  %v3837_v41 = vpack.c.bf16 %v3216_v21, %v3214_v4  ;;  %v3215_v50 = vld [vmem:[%s6892_s2 + $0xaf0] sm:$0xff]  ;;  %v3583_v4 = vpack.c.bf16 %v2751_v13, %v2749_v42 }
  0xe6   : > { %3576 = vmatpush1.bf16.msra.mxu1 %v3575_v32  ;;  %3176 = vmatmul.mubr.msk.f32.gmra.mrb[14].mxu0 %vm6103_vm11, %v6126_v61  ;;  %vm6154_vm10 = vcmp.ne.s32.totalorder %v6999_v25, 7  ;;  %v671_v18 = vrot.slane %v4136_v62, 1  ;;  %v3581_v32 = vpack.c.bf16 %v2752_v7, %v2750_v5  ;;  %v6174_v60 = vsel %vm7002_vm9, %v666_v31, %v668_v54  ;;  %v2754_v5 = vld [vmem:[%s6892_s2 + $0x708] sm:$0xff]  ;;  %v2756_v7 = vld [vmem:[%s6892_s2 + $0x718] sm:$0xff]  ;;  %v3217_v42 = vld [vmem:[%s6892_s2 + $0xb00] sm:$0xff] }
  0xe7   : > { %v7001_v33 = vsel %vm6154_vm10, 4294967295, %v7000_v33  ;;  %3832 = vmatpush1.bf16.msra.mxu0 %v3831_v28  ;;  %3578 = vmatprep.subr.bf16.mxu1 %v3577_v6  ;;  %v4137_v28 = vld [vmem:[%s4642_s25 + $0x70] sm:$0xff]  ;;  %v3218_v31 = vld [vmem:[%s6892_s2 + $0xb08] sm:$0xff] }
  0xe8   : > { %v670_v6 = vrot.slane %v4137_v28, 1  ;;  %3834 = vmatprep.subr.bf16.mxu0 %v3833_v36  ;;  %1379 = vmatprep.mubr.f32.mxu1 %v6058_v23  ;;  %v3220_v36 = vld [vmem:[%s6892_s2 + $0xb18] sm:$0xff]  ;;  %v7004_v23 = vand.u32 7, %v5384_v34  ;;  %v6208_v25 = vsel %vm7007_vm8, %v669_v59, %v671_v18  ;;  %v2755_v34 = vld [vmem:[%s6892_s2 + $0x710] sm:$0xff]  ;;  %v2758_v13 = vld [vmem:[%s6892_s2 + $0x728] sm:$0xff] }
  0xe9   : > { %3177 = vmatprep.mubr.msk.f32.mxu0 %vm6154_vm10, %v6160_v45  ;;  %1380 = vmatmul.mubr.f32.gmra.mrb[10].mxu1 %v6075_v2  ;;  %v3839_v45 = vpack.c.bf16 %v3215_v50, %v3213_v27  ;;  %v3585_v2 = vpack.c.bf16 %v2756_v7, %v2754_v5  ;;  %v2760_v27 = vld [vmem:[%s6892_s2 + $0x738] sm:$0xff] }
  0xea   : > { %3580 = vmatpush1.bf16.msra.mxu1 %v3579_v24  ;;  %3178 = vmatmul.mubr.msk.f32.gmra.mrb[16].mxu0 %vm6154_vm10, %v6174_v60  ;;  %vm6202_vm9 = vcmp.ne.s32.totalorder %v7004_v23, 7  ;;  %v2753_v24 = vld [vmem:[%s6892_s2 + $0x700] sm:$0xff]  ;;  %vm7008_vm10 = vmmov %vm7007_vm8  ;;  %v3223_v23 = vld [vmem:[%s6892_s2 + $0xb30] sm:$0xff] }
  0xeb   : > { %3836 = vmatpush1.bf16.msra.mxu0 %v3835_v10  ;;  %3582 = vmatprep.subr.bf16.mxu1 %v3581_v32  ;;  %v6221_v59 = vsel %vm7008_vm10, %v668_v54, %v670_v6  ;;  %v3841_v10 = vpack.c.bf16 %v3220_v36, %v3218_v31  ;;  %v3219_v32 = vld [vmem:[%s6892_s2 + $0xb10] sm:$0xff]  ;;  %v3222_v54 = vld [vmem:[%s6892_s2 + $0xb28] sm:$0xff]  ;;  %v3587_v50 = vpack.c.bf16 %v2755_v34, %v2753_v24  ;;  %v2757_v36 = vld [vmem:[%s6892_s2 + $0x720] sm:$0xff] }
  0xec   : > { %3838 = vmatprep.subr.bf16.mxu0 %v3837_v41  ;;  %1385 = vmatprep.mubr.f32.mxu1 %v6112_v30  ;;  %v3224_v41 = vld [vmem:[%s6892_s2 + $0xb38] sm:$0xff]  ;;  %v7009_v30 = vand.u32 7, %v5464_v29  ;;  %v6254_v7 = vsel %vm7008_vm10, %v671_v18, %v5634_v37  ;;  %v3589_v31 = vpack.c.bf16 %v2760_v27, %v2758_v13  ;;  %v2759_v29 = vld [vmem:[%s6892_s2 + $0x730] sm:$0xff]  ;;  %v6268_v18 = vsel %vm7008_vm10, %v670_v6, %v5634_v37  ;;  %v3226_v6 = vld [vmem:[%s6892_s2 + $0xb48] sm:$0xff] }
  0xed   : > { %3179 = vmatprep.mubr.msk.f32.mxu0 %vm6202_vm9, %v6208_v25  ;;  %1386 = vmatmul.mubr.f32.gmra.mrb[12].mxu1 %v4135_v17  ;;  %v3843_v17 = vpack.c.bf16 %v3219_v32, %v3217_v42  ;;  %v2764_v24 = vld [vmem:[%s6892_s2 + $0x758] sm:$0xff]  ;;  %v3591_v42 = vpack.c.bf16 %v2759_v29, %v2757_v36  ;;  %v2763_v27 = vld [vmem:[%s6892_s2 + $0x750] sm:$0xff] }
  0xee   : > { %3584 = vmatpush1.bf16.msra.mxu1 %v3583_v4  ;;  %3180 = vmatmul.mubr.msk.f32.gmra.mrb[18].mxu0 %vm6202_vm9, %v6221_v59  ;;  %vm6247_vm8 = vcmp.ne.s32.totalorder %v7009_v30, 7  ;;  %v3221_v4 = vld [vmem:[%s6892_s2 + $0xb20] sm:$0xff]  ;;  %v3228_v34 = vld [vmem:[%s6892_s2 + $0xb58] sm:$0xff] }
  0xef   : > { %3840 = vmatpush1.bf16.msra.mxu0 %v3839_v45  ;;  %3586 = vmatprep.subr.bf16.mxu1 %v3585_v2  ;;  %v3845_v45 = vpack.c.bf16 %v3224_v41, %v3222_v54  ;;  %v2762_v2 = vld [vmem:[%s6892_s2 + $0x748] sm:$0xff]  ;;  %v3847_v32 = vpack.c.bf16 %v3223_v23, %v3221_v4  ;;  %v3849_v54 = vpack.c.bf16 %v3228_v34, %v3226_v6  ;;  %v3227_v41 = vld [vmem:[%s6892_s2 + $0xb50] sm:$0xff]  ;;  %v2768_v30 = vld [vmem:[%s6892_s2 + $0x778] sm:$0xff] }
  0xf0   : > { %3842 = vmatprep.subr.bf16.mxu0 %v3841_v10  ;;  %1391 = vmatprep.mubr.f32.mxu1 %v4136_v62  ;;  %v7012_v62 = vand.u32 7, %v5520_v0  ;;  %v3593_v13 = vpack.c.bf16 %v2764_v24, %v2762_v2  ;;  %v3225_v0 = vld [vmem:[%s6892_s2 + $0xb40] sm:$0xff]  ;;  %v2767_v23 = vld [vmem:[%s6892_s2 + $0x770] sm:$0xff]  ;;  %v2770_v6 = vld [vmem:[%s6892_s2 + $0x788] sm:$0xff] }
  0xf1   : > { %3181 = vmatprep.mubr.msk.f32.mxu0 %vm6247_vm8, %v6254_v7  ;;  %1392 = vmatmul.mubr.f32.gmra.mrb[14].mxu1 %v4137_v28  ;;  %v2761_v28 = vld [vmem:[%s6892_s2 + $0x740] sm:$0xff]  ;;  %v3851_v29 = vpack.c.bf16 %v3227_v41, %v3225_v0  ;;  %v3231_v24 = vld [vmem:[%s6892_s2 + $0xb70] sm:$0xff]  ;;  %v2772_v34 = vld [vmem:[%s6892_s2 + $0x798] sm:$0xff] }
  0xf2   : > { %3588 = vmatpush1.bf16.msra.mxu1 %v3587_v50  ;;  %3182 = vmatmul.mubr.msk.f32.gmra.mrb[24].mxu0 %vm6247_vm8, %v6268_v18  ;;  %vm6293_vm10 = vcmp.ne.s32.totalorder %v7012_v62, 7  ;;  %v2766_v50 = vld [vmem:[%s6892_s2 + $0x768] sm:$0xff]  ;;  %v3595_v36 = vpack.c.bf16 %v2763_v27, %v2761_v28  ;;  %v3236_v62 = vld [vmem:[%s6892_s2 + $0xb98] sm:$0xff]  ;;  %v3601_v28 = vpack.c.bf16 %v2772_v34, %v2770_v6  ;;  %v2769_v27 = vld [vmem:[%s6892_s2 + $0x780] sm:$0xff] }
  0xf3   : > { %3844 = vmatpush1.bf16.msra.mxu0 %v3843_v17  ;;  %3590 = vmatprep.subr.bf16.mxu1 %v3589_v31  ;;  %v3230_v17 = vld [vmem:[%s6892_s2 + $0xb68] sm:$0xff]  ;;  %v3232_v31 = vld [vmem:[%s6892_s2 + $0xb78] sm:$0xff]  ;;  %v3597_v4 = vpack.c.bf16 %v2768_v30, %v2766_v50  ;;  %v2771_v0 = vld [vmem:[%s6892_s2 + $0x790] sm:$0xff] }
  0xf4   : > { %3846 = vmatprep.subr.bf16.mxu0 %v3845_v45  ;;  %1397 = vmatprep.mubr.f32.mxu1 %v6979_v11  ;;  %v2765_v45 = vld [vmem:[%s6892_s2 + $0x760] sm:$0xff]  ;;  %v3853_v2 = vpack.c.bf16 %v3232_v31, %v3230_v17  ;;  %v3235_v50 = vld [vmem:[%s6892_s2 + $0xb90] sm:$0xff]  ;;  %v2774_v30 = vld [vmem:[%s6892_s2 + $0x7a8] sm:$0xff] }
  0xf5   : > { %3183 = vmatprep.mubr.msk.f32.mxu0 %vm6293_vm10, %v5634_v37  ;;  %1398 = vmatmul.mubr.f32.gmra.mrb[26].mxu1 %v6979_v11  ;;  %v3229_v11 = vld [vmem:[%s6892_s2 + $0xb60] sm:$0xff]  ;;  %v2776_v17 = vld [vmem:[%s6892_s2 + $0x7b8] sm:$0xff]  ;;  %v3238_v31 = vld [vmem:[%s6892_s2 + $0xba8] sm:$0xff] }
  0xf6   : > { %3592 = vmatpush1.bf16.msra.mxu1 %v3591_v42  ;;  %3184 = vmatmul.mubr.msk.f32.gmra.mrb[26].mxu0 %vm6293_vm10, %v5634_v37  ;;  %v3234_v42 = vld [vmem:[%s6892_s2 + $0xb88] sm:$0xff]  ;;  %v3239_v6 = vld [vmem:[%s6892_s2 + $0xbb0] sm:$0xff] }
  0xf7   : > { %3848 = vmatpush1.bf16.msra.mxu0 %v3847_v32  ;;  %3594 = vmatprep.subr.bf16.mxu1 %v3593_v13  ;;  %v3599_v32 = vpack.c.bf16 %v2767_v23, %v2765_v45  ;;  %v3855_v13 = vpack.c.bf16 %v3231_v24, %v3229_v11  ;;  %v3857_v41 = vpack.c.bf16 %v3236_v62, %v3234_v42  ;;  %v2773_v23 = vld [vmem:[%s6892_s2 + $0x7a0] sm:$0xff]  ;;  %v2775_v11 = vld [vmem:[%s6892_s2 + $0x7b0] sm:$0xff]  ;;  %v2778_v34 = vld [vmem:[%s6892_s2 + $0x7c8] sm:$0xff] }
  0xf8   : > { %3850 = vmatprep.subr.bf16.mxu0 %v3849_v54  ;;  %2997 = vmatprep.mubr.msk.f32.mxu1 %vm4977_vm0, %v4965_v43  ;;  %v3233_v54 = vld [vmem:[%s6892_s2 + $0xb80] sm:$0xff]  ;;  %v3605_v45 = vpack.c.bf16 %v2776_v17, %v2774_v30  ;;  %v2780_v42 = vld [vmem:[%s6892_s2 + $0x7d8] sm:$0xff]  ;;  %v3242_v62 = vld [vmem:[%s6892_s2 + $0xbc8] sm:$0xff] }
  0xf9   : > { %3249 = vmatprep.mubr.msk.f32.mxu0 %vm5679_vm12, %v5688_v55  ;;  %v3243_v30 = vld [vmem:[%s6892_s2 + $0xbd0] sm:$0xff]  ;;  %v2782_v17 = vld [vmem:[%s6892_s2 + $0x7e8] sm:$0xff] }
  0xfa   : > { %3596 = vmatpush1.bf16.msra.mxu1 %v3595_v36  ;;  %v3240_v36 = vld [vmem:[%s6892_s2 + $0xbb8] sm:$0xff] }
  0xfb   : > { %3852 = vmatpush1.bf16.msra.mxu0 %v3851_v29  ;;  %3598 = vmatprep.subr.bf16.mxu1 %v3597_v4  ;;  %v3603_v29 = vpack.c.bf16 %v2771_v0, %v2769_v27  ;;  %v3859_v4 = vpack.c.bf16 %v3235_v50, %v3233_v54  ;;  %v3861_v24 = vpack.c.bf16 %v3240_v36, %v3238_v31  ;;  %v2777_v0 = vld [vmem:[%s6892_s2 + $0x7c0] sm:$0xff]  ;;  %v2779_v54 = vld [vmem:[%s6892_s2 + $0x7d0] sm:$0xff]  ;;  %v2784_v31 = vld [vmem:[%s6892_s2 + $0x7f8] sm:$0xff] }
  0xfc   : > { %3854 = vmatprep.subr.bf16.mxu0 %v3853_v2  ;;  %v3237_v2 = vld [vmem:[%s6892_s2 + $0xba0] sm:$0xff]  ;;  %v3609_v27 = vpack.c.bf16 %v2780_v42, %v2778_v34  ;;  %v3246_v36 = vld [vmem:[%s6892_s2 + $0xbe8] sm:$0xff]  ;;  %v3247_v34 = vld [vmem:[%s6892_s2 + $0xbf0] sm:$0xff] }
  0xfd   : > { %v3270_v42 = vld [vmem:[%s6892_s2 + $0x1008] sm:$0xff] }
  0xfe   : > { %3600 = vmatpush1.bf16.msra.mxu1 %v3599_v32  ;;  %v3244_v32 = vld [vmem:[%s6892_s2 + $0xbd8] sm:$0xff] }
  0xff   : > { %3856 = vmatpush1.bf16.msra.mxu0 %v3855_v13  ;;  %3602 = vmatprep.subr.bf16.mxu1 %v3601_v28  ;;  %v3607_v13 = vpack.c.bf16 %v2775_v11, %v2773_v23  ;;  %v3863_v28 = vpack.c.bf16 %v3239_v6, %v3237_v2  ;;  %v3865_v50 = vpack.c.bf16 %v3244_v32, %v3242_v62  ;;  %v2781_v11 = vld [vmem:[%s6892_s2 + $0x7e0] sm:$0xff]  ;;  %v2783_v2 = vld [vmem:[%s6892_s2 + $0x7f0] sm:$0xff]  ;;  %v3272_v62 = vld [vmem:[%s6892_s2 + $0x1018] sm:$0xff] }
 0x100   : > { %3858 = vmatprep.subr.bf16.mxu0 %v3857_v41  ;;  %v3241_v41 = vld [vmem:[%s6892_s2 + $0xbc0] sm:$0xff]  ;;  %v3613_v23 = vpack.c.bf16 %v2784_v31, %v2782_v17  ;;  %v3615_v32 = vpack.c.bf16 %v2783_v2, %v2781_v11  ;;  %v3275_v17 = vld [vmem:[%s6892_s2 + $0x1030] sm:$0xff] }
 0x102   : > { %3604 = vmatpush1.bf16.msra.mxu1 %v3603_v29  ;;  %v3248_v29 = vld [vmem:[%s6892_s2 + $0xbf8] sm:$0xff] }
 0x103   : > { %3860 = vmatpush1.bf16.msra.mxu0 %v3859_v4  ;;  %3606 = vmatprep.subr.bf16.mxu1 %v3605_v45  ;;  %v3611_v4 = vpack.c.bf16 %v2779_v54, %v2777_v0  ;;  %v3867_v45 = vpack.c.bf16 %v3243_v30, %v3241_v41  ;;  %v3869_v6 = vpack.c.bf16 %v3248_v29, %v3246_v36  ;;  %v3271_v0 = vld [vmem:[%s6892_s2 + $0x1010] sm:$0xff]  ;;  %v3274_v54 = vld [vmem:[%s6892_s2 + $0x1028] sm:$0xff]  ;;  %v3276_v41 = vld [vmem:[%s6892_s2 + $0x1038] sm:$0xff] }
 0x104   : > { %3862 = vmatprep.subr.bf16.mxu0 %v3861_v24  ;;  %v3245_v24 = vld [vmem:[%s6892_s2 + $0xbe0] sm:$0xff]  ;;  %v3877_v31 = vpack.c.bf16 %v3276_v41, %v3274_v54  ;;  %v3278_v36 = vld [vmem:[%s6892_s2 + $0x1048] sm:$0xff]  ;;  %v3280_v29 = vld [vmem:[%s6892_s2 + $0x1058] sm:$0xff] }
 0x105   : > { %v3273_v30 = vld [vmem:[%s6892_s2 + $0x1020] sm:$0xff]  ;;  %v3307_v54 = vld [vmem:[%s6892_s2 + $0x1130] sm:$0xff] }
 0x106   : > { %3608 = vmatpush1.bf16.msra.mxu1 %v3607_v13  ;;  %v3871_v13 = vpack.c.bf16 %v3247_v34, %v3245_v24  ;;  %v3288_v24 = vld [vmem:[%s6892_s2 + $0x1098] sm:$0xff]  ;;  %v7018_v41 = vld [vmem:[#allocation22_spill] sm:$0xff] }
 0x107   : > { %3864 = vmatpush1.bf16.msra.mxu0 %v3863_v28  ;;  %3610 = vmatprep.subr.bf16.mxu1 %v3609_v27  ;;  %v3873_v28 = vpack.c.bf16 %v3272_v62, %v3270_v42  ;;  %v3269_v27 = vld [vmem:[%s6892_s2 + $0x1000] sm:$0xff]  ;;  %v3292_v42 = vld [vmem:[%s6892_s2 + $0x10b8] sm:$0xff] }
 0x108   : > { %3866 = vmatprep.subr.bf16.mxu0 %v3865_v50  ;;  %v3875_v50 = vpack.c.bf16 %v3271_v0, %v3269_v27  ;;  %v7016_v0 = vld [vmem:[#allocation7_spill] sm:$0xff] }
 0x10a   : > { %3612 = vmatpush1.bf16.msra.mxu1 %v3611_v4  ;;  %v3879_v4 = vpack.c.bf16 %v3275_v17, %v3273_v30  ;;  %v7019_v17 = vld [vmem:[#allocation8_spill] sm:$0xff] }
 0x10b   : > { %3868 = vmatpush1.bf16.msra.mxu0 %v3867_v45  ;;  %3614 = vmatprep.subr.bf16.mxu1 %v3613_v23  ;;  %v3881_v45 = vpack.c.bf16 %v3280_v29, %v3278_v36  ;;  %v3284_v23 = vld [vmem:[%s6892_s2 + $0x1078] sm:$0xff] }
 0x10c   : > { %3870 = vmatprep.subr.bf16.mxu0 %v3869_v6  ;;  %v3300_v36 = vld [vmem:[%s6892_s2 + $0x10f8] sm:$0xff] }
 0x10e   : > { %3616 = vmatpush1.bf16.msra.mxu1 %v3615_v32 }
 0x10f   : > { %3872 = vmatpush1.bf16.msra.mxu0 %v3871_v13  ;;  %3937 = vmatprep.subr.bf16.mxu1 %v3873_v28  ;;  %v3296_v13 = vld [vmem:[%s6892_s2 + $0x10d8] sm:$0xff] }
 0x110   : > { %3874 = vmatprep.subr.bf16.mxu0 %v3873_v28  ;;  %v7015_v28 = vld [vmem:[#allocation21_spill] sm:$0xff] }
 0x111   : > { %2998 = vmatmul.mubr.msk.f32.vlgmr.msra.gmra.mrb[28].mxu1 %vm4977_vm0, %v4965_v43  ;;  %v3277_v43 = vld [vmem:[%s6892_s2 + $0x1040] sm:$0xff]  ;;  %vm7023_vm0 = vnez %v7001_v33 }
 0x112   : > { %3250 = vmatmul.mubr.msk.f32.vlgmr.msra.gmra.mrb[28].mxu0 %vm5679_vm12, %v5849_v44  ;;  %3953 = vmatpush1.bf16.msra.mxu1 %v3875_v50  ;;  %v3883_v11 = vpack.c.bf16 %v3279_v48, %v3277_v43  ;;  %v7020_v43 = vld [vmem:[#allocation10_spill] sm:$0xff] }
 0x113   : > { %3876 = vmatpush1.bf16.msra.mxu0 %v3875_v50  ;;  %2999 = vmatprep.mubr.msk.f32.mxu1 %vm5162_vm2, %v5178_v51  ;;  %v3282_v51 = vld [vmem:[%s6892_s2 + $0x1068] sm:$0xff]  ;;  %v7034_v48 = vld [vmem:[#allocation18_spill] sm:$0xff] }
 0x114   : > { %3251 = vmatprep.mubr.msk.f32.mxu0 %vm5885_vm13, %v5893_v39  ;;  %3878 = vmatprep.subr.bf16.mxu0 %v3877_v31  ;;  %v3885_v2 = vpack.c.bf16 %v3284_v23, %v3282_v51  ;;  %v3299_v51 = vld [vmem:[%s6892_s2 + $0x10f0] sm:$0xff]  ;;  %v7022_v23 = vld [vmem:[#allocation23_spill] sm:$0xff] }
 0x115   : > { %3000 = vmatmul.mubr.msk.f32.gmra.mrb[0].mxu1 %vm5162_vm2, %v5191_v57  ;;  %3938 = vmatprep.subr.bf16.mxu1 %v3877_v31  ;;  %v3283_v57 = vld [vmem:[%s6892_s2 + $0x1070] sm:$0xff]  ;;  %v3298_v31 = vld [vmem:[%s6892_s2 + $0x10e8] sm:$0xff] }
 0x116   : > { %3252 = vmatmul.mubr.msk.f32.gmra.mrb[4].mxu0 %vm5885_vm13, %v5910_v53  ;;  %3954 = vmatpush1.bf16.msra.mxu1 %v3879_v4  ;;  %v3887_v6 = vpack.c.bf16 %v3283_v57, %v3281_v47  ;;  %v7024_v47 = vld [vmem:[#allocation11_spill] sm:$0xff] }
 0x117   : > { %3880 = vmatpush1.bf16.msra.mxu0 %v3879_v4  ;;  %3001 = vmatprep.mubr.msk.f32.mxu1 %vm5232_vm3, %v5238_v16  ;;  %v3286_v16 = vld [vmem:[%s6892_s2 + $0x1088] sm:$0xff] }
 0x118   : > { %3253 = vmatprep.mubr.msk.f32.mxu0 %vm5941_vm14, %v5947_v19  ;;  %3882 = vmatprep.subr.bf16.mxu0 %v3881_v45  ;;  %v3889_v34 = vpack.c.bf16 %v3288_v24, %v3286_v16  ;;  %v3302_v57 = vld [vmem:[%s6892_s2 + $0x1108] sm:$0xff] }
 0x119   : > { %3002 = vmatmul.mubr.msk.f32.gmra.mrb[2].mxu1 %vm5232_vm3, %v5247_v20  ;;  %3939 = vmatprep.subr.bf16.mxu1 %v3881_v45  ;;  %v3287_v20 = vld [vmem:[%s6892_s2 + $0x1090] sm:$0xff]  ;;  %v3297_v45 = vld [vmem:[%s6892_s2 + $0x10e0] sm:$0xff] }
 0x11a   : > { %3254 = vmatmul.mubr.msk.f32.gmra.mrb[6].mxu0 %vm5941_vm14, %v5964_v9  ;;  %3955 = vmatpush1.bf16.msra.mxu1 %v3883_v11  ;;  %v3891_v62 = vpack.c.bf16 %v3287_v20, %v3285_v15  ;;  %v3903_v24 = vpack.c.bf16 %v3299_v51, %v3297_v45  ;;  %v7025_v15 = vld [vmem:[#allocation13_spill] sm:$0xff]  ;;  %v7026_v20 = vld [vmem:[#allocation12_spill] sm:$0xff] }
 0x11b   : > { %3884 = vmatpush1.bf16.msra.mxu0 %v3883_v11  ;;  %3003 = vmatprep.mubr.msk.f32.mxu1 %vm5286_vm4, %v5292_v40  ;;  %v3290_v40 = vld [vmem:[%s6892_s2 + $0x10a8] sm:$0xff]  ;;  %v3901_v11 = vpack.c.bf16 %v3300_v36, %v3298_v31  ;;  %vm7027_vm2 = vnez %v7026_v20  ;;  %v3309_v31 = vld [vmem:[%s6892_s2 + $0x1140] sm:$0xff]  ;;  %v3311_v36 = vld [vmem:[%s6892_s2 + $0x1150] sm:$0xff] }
 0x11c   : > { %3255 = vmatprep.mubr.msk.f32.mxu0 %vm5995_vm15, %v6001_v63  ;;  %3886 = vmatprep.subr.bf16.mxu0 %v3885_v2  ;;  %v3893_v32 = vpack.c.bf16 %v3292_v42, %v3290_v40  ;;  %v3303_v40 = vld [vmem:[%s6892_s2 + $0x1110] sm:$0xff]  ;;  %v3915_v51 = vpack.c.bf16 %v3311_v36, %v3309_v31 }
 0x11d   : > { %3004 = vmatmul.mubr.msk.f32.gmra.mrb[4].mxu1 %vm5286_vm4, %v5303_v49  ;;  %3940 = vmatprep.subr.bf16.mxu1 %v3885_v2  ;;  %v3291_v49 = vld [vmem:[%s6892_s2 + $0x10b0] sm:$0xff]  ;;  %v3304_v2 = vld [vmem:[%s6892_s2 + $0x1118] sm:$0xff]  ;;  %vm7035_vm4 = vnez %v7034_v48 }
 0x11e   : > { %3256 = vmatmul.mubr.msk.f32.gmra.mrb[8].mxu0 %vm5995_vm15, %v6018_v46  ;;  %3956 = vmatpush1.bf16.msra.mxu1 %v3887_v6  ;;  %v3895_v27 = vpack.c.bf16 %v3291_v49, %v3289_v38  ;;  %v3905_v42 = vpack.c.bf16 %v3304_v2, %v3302_v57  ;;  %v3308_v38 = vld [vmem:[%s6892_s2 + $0x1138] sm:$0xff]  ;;  %v7028_v49 = vld [vmem:[#allocation14_spill] sm:$0xff]  ;;  %v7036_v45 = vld [vmem:[#allocation20_spill] sm:$0xff] }
 0x11f   : > { %3888 = vmatpush1.bf16.msra.mxu0 %v3887_v6  ;;  %3005 = vmatprep.mubr.msk.f32.mxu1 %vm5329_vm5, %v5347_v3  ;;  %v3294_v3 = vld [vmem:[%s6892_s2 + $0x10c8] sm:$0xff]  ;;  %v3315_v57 = vld [vmem:[%s6892_s2 + $0x1170] sm:$0xff] }
 0x120   : > { %3257 = vmatprep.mubr.msk.f32.mxu0 %vm6049_vm1, %v6055_v58  ;;  %3890 = vmatprep.subr.bf16.mxu0 %v3889_v34  ;;  %v3897_v50 = vpack.c.bf16 %v3296_v13, %v3294_v3  ;;  %v7029_v3 = vld [vmem:[#allocation16_spill] sm:$0xff]  ;;  %v7030_v13 = vld [vmem:[#allocation15_spill] sm:$0xff] }
 0x121   : > { %3006 = vmatmul.mubr.msk.f32.gmra.mrb[6].mxu1 %vm5329_vm5, %v5359_v22  ;;  %3941 = vmatprep.subr.bf16.mxu1 %v3889_v34  ;;  %v3295_v22 = vld [vmem:[%s6892_s2 + $0x10d0] sm:$0xff]  ;;  %v3301_v34 = vld [vmem:[%s6892_s2 + $0x1100] sm:$0xff]  ;;  %vm7031_vm3 = vnez %v7030_v13  ;;  %v3318_v2 = vld [vmem:[%s6892_s2 + $0x1188] sm:$0xff] }
 0x122   : > { %3258 = vmatmul.mubr.msk.f32.gmra.mrb[10].mxu0 %vm6049_vm1, %v7015_v28  ;;  %3957 = vmatpush1.bf16.msra.mxu1 %v3891_v62  ;;  %v3899_v4 = vpack.c.bf16 %v3295_v22, %v3293_v1  ;;  %v3310_v1 = vld [vmem:[%s6892_s2 + $0x1148] sm:$0xff]  ;;  %v3312_v22 = vld [vmem:[%s6892_s2 + $0x1158] sm:$0xff]  ;;  %v3319_v20 = vld [vmem:[%s6892_s2 + $0x1190] sm:$0xff] }
 0x123   : > { %3892 = vmatpush1.bf16.msra.mxu0 %v3891_v62  ;;  %3007 = vmatprep.mubr.msk.f32.mxu1 %vm5400_vm6, %v7016_v0  ;;  %v3306_v62 = vld [vmem:[%s6892_s2 + $0x1128] sm:$0xff]  ;;  %v3305_v0 = vld [vmem:[%s6892_s2 + $0x1120] sm:$0xff]  ;;  %v3331_v31 = vld [vmem:[%s6892_s2 + $0x11f0] sm:$0xff] }
 0x124   : > { %3259 = vmatprep.mubr.msk.f32.mxu0 %vm6103_vm11, %v7018_v41  ;;  %3894 = vmatprep.subr.bf16.mxu0 %v3893_v32  ;;  %v3325_v13 = vld [vmem:[%s6892_s2 + $0x11c0] sm:$0xff] }
 0x125   : > { %v1654_v30 = vpop.f32.mrb[0].mxu0  ;;  %3008 = vmatmul.mubr.msk.f32.gmra.mrb[8].mxu1 %vm5400_vm6, %v7019_v17  ;;  %3942 = vmatprep.subr.bf16.mxu1 %v3893_v32  ;;  %v3907_v32 = vpack.c.bf16 %v3303_v40, %v3301_v34  ;;  %v3913_v17 = vpack.c.bf16 %v3312_v22, %v3310_v1 }
 0x126   : > { %v1655_v29 = vpop.f32.mrb[1].mxu0  ;;  %3260 = vmatmul.mubr.msk.f32.gmra.mrb[12].mxu0 %vm6103_vm11, %v6126_v61  ;;  %3958 = vmatpush1.bf16.msra.mxu1 %v3895_v27  ;;  %v3911_v30 = vpack.c.bf16 %v3307_v54, %v3305_v0  ;;  %v3330_v0 = vld [vmem:[%s6892_s2 + $0x11e8] sm:$0xff]  ;;  %v3332_v54 = vld [vmem:[%s6892_s2 + $0x11f8] sm:$0xff] }
 0x127   : > { %3896 = vmatpush1.bf16.msra.mxu0 %v3895_v27  ;;  %3009 = vmatprep.mubr.msk.f32.mxu1 %vm5454_vm7, %v7020_v43  ;;  %v3909_v27 = vpack.c.bf16 %v3308_v38, %v3306_v62  ;;  %v3314_v29 = vld [vmem:[%s6892_s2 + $0x1168] sm:$0xff]  ;;  %v3323_v62 = vld [vmem:[%s6892_s2 + $0x11b0] sm:$0xff] }
 0x128   : > { %3261 = vmatprep.mubr.msk.f32.mxu0 %vm7023_vm0, %v7022_v23  ;;  %3898 = vmatprep.subr.bf16.mxu0 %v3897_v50  ;;  %v7033_v43 = vld [vmem:[#allocation19_spill] sm:$0xff] }
 0x129   : > { %3010 = vmatmul.mubr.msk.f32.gmra.mrb[10].mxu1 %vm5454_vm7, %v7024_v47  ;;  %3943 = vmatprep.subr.bf16.mxu1 %v3897_v50  ;;  %v1658_v16 = vpop.f32.mrb[2].mxu0  ;;  %v7032_v50 = vld [vmem:[#allocation17_spill] sm:$0xff]  ;;  %v3313_v47 = vld [vmem:[%s6892_s2 + $0x1160] sm:$0xff]  ;;  %v3326_v38 = vld [vmem:[%s6892_s2 + $0x11c8] sm:$0xff] }
 0x12a   : > { %3262 = vmatmul.mubr.msk.f32.gmra.mrb[14].mxu0 %vm7023_vm0, %v6174_v60  ;;  %3959 = vmatpush1.bf16.msra.mxu1 %v3899_v4  ;;  %v1659_v6 = vpop.f32.mrb[3].mxu0  ;;  %v3320_v16 = vld [vmem:[%s6892_s2 + $0x1198] sm:$0xff] }
 0x12b   : > { %3900 = vmatpush1.bf16.msra.mxu0 %v3899_v4  ;;  %3011 = vmatprep.mubr.msk.f32.mxu1 %vm7027_vm2, %v7025_v15  ;;  %v3316_v4 = vld [vmem:[%s6892_s2 + $0x1178] sm:$0xff]  ;;  %v3921_v6 = vpack.c.bf16 %v3320_v16, %v3318_v2  ;;  %v3317_v15 = vld [vmem:[%s6892_s2 + $0x1180] sm:$0xff] }
 0x12c   : > { %3263 = vmatprep.mubr.msk.f32.mxu0 %vm6202_vm9, %v6208_v25  ;;  %3902 = vmatprep.subr.bf16.mxu0 %v3901_v11  ;;  %v3923_v34 = vpack.c.bf16 %v3319_v20, %v3317_v15 }
 0x12d   : > { %3012 = vmatmul.mubr.msk.f32.gmra.mrb[12].mxu1 %vm7027_vm2, %v7028_v49  ;;  %3944 = vmatprep.subr.bf16.mxu1 %v3901_v11  ;;  %v3917_v11 = vpack.c.bf16 %v3316_v4, %v3314_v29  ;;  %v3328_v49 = vld [vmem:[%s6892_s2 + $0x11d8] sm:$0xff] }
 0x12e   : > { %3264 = vmatmul.mubr.msk.f32.gmra.mrb[16].mxu0 %vm6202_vm9, %v6221_v59  ;;  %3960 = vmatpush1.bf16.msra.mxu1 %v3903_v24 }
 0x12f   : > { %3904 = vmatpush1.bf16.msra.mxu0 %v3903_v24  ;;  %3013 = vmatprep.mubr.msk.f32.mxu1 %vm7031_vm3, %v7029_v3  ;;  %v3919_v24 = vpack.c.bf16 %v3315_v57, %v3313_v47  ;;  %v3929_v3 = vpack.c.bf16 %v3328_v49, %v3326_v38 }
 0x130   : > { %3265 = vmatprep.mubr.msk.f32.mxu0 %vm6247_vm8, %v6254_v7  ;;  %3906 = vmatprep.subr.bf16.mxu0 %v3905_v42 }
 0x131   : > { %3014 = vmatmul.mubr.msk.f32.gmra.mrb[14].mxu1 %vm7031_vm3, %v7032_v50  ;;  %3945 = vmatprep.subr.bf16.mxu1 %v3905_v42  ;;  %v3321_v42 = vld [vmem:[%s6892_s2 + $0x11a0] sm:$0xff] }
 0x132   : > { %3266 = vmatmul.mubr.msk.f32.gmra.mrb[18].mxu0 %vm6247_vm8, %v6268_v18  ;;  %3961 = vmatpush1.bf16.msra.mxu1 %v3907_v32 }
 0x133   : > { %3908 = vmatpush1.bf16.msra.mxu0 %v3907_v32  ;;  %3946 = vmatprep.subr.bf16.mxu1 %v3909_v27  ;;  %v3927_v32 = vpack.c.bf16 %v3323_v62, %v3321_v42 }
 0x134   : > { %3910 = vmatprep.subr.bf16.mxu0 %v3909_v27  ;;  %3015 = vmatprep.mubr.msk.f32.mxu1 %vm7035_vm4, %v7033_v43  ;;  %v3327_v27 = vld [vmem:[%s6892_s2 + $0x11d0] sm:$0xff] }
 0x135   : > { %3267 = vmatprep.mubr.msk.f32.mxu0 %vm6293_vm10, %v5634_v37  ;;  %3016 = vmatmul.mubr.msk.f32.gmra.mrb[30].mxu1 %vm7035_vm4, %v7036_v45  ;;  %v3931_v50 = vpack.c.bf16 %v3327_v27, %v3325_v13 }
 0x136   : > { %3962 = vmatpush1.bf16.msra.mxu1 %v3911_v30  ;;  %3268 = vmatmul.mubr.msk.f32.gmra.mrb[30].mxu0 %vm6293_vm10, %v5634_v37 }
 0x137   : > { %3912 = vmatpush1.bf16.msra.mxu0 %v3911_v30  ;;  %3947 = vmatprep.subr.bf16.mxu1 %v3913_v17  ;;  %v3933_v30 = vpack.c.bf16 %v3332_v54, %v3330_v0 }
 0x138   : > { %3914 = vmatprep.subr.bf16.mxu0 %v3913_v17  ;;  %3333 = vmatprep.mubr.msk.f32.mxu0 %vm5679_vm12, %v5688_v55  ;;  %v3322_v55 = vld [vmem:[%s6892_s2 + $0x11a8] sm:$0xff]  ;;  %v3329_v17 = vld [vmem:[%s6892_s2 + $0x11e0] sm:$0xff] }
 0x139   : > { %3343 = vmatprep.mubr.msk.f32.mxu1 %vm6103_vm11, %v7018_v41  ;;  %v3324_v41 = vld [vmem:[%s6892_s2 + $0x11b8] sm:$0xff]  ;;  %v3935_v4 = vpack.c.bf16 %v3331_v31, %v3329_v17 }
 0x13a   : > { %3963 = vmatpush1.bf16.msra.mxu1 %v3915_v51  ;;  %v3925_v40 = vpack.c.bf16 %v3324_v41, %v3322_v55 }
 0x13b   : > { %3916 = vmatpush1.bf16.msra.mxu0 %v3915_v51  ;;  %3948 = vmatprep.subr.bf16.mxu1 %v3917_v11 }
 0x13c   : > { %3918 = vmatprep.subr.bf16.mxu0 %v3917_v11 }
 0x13e   : > { %3964 = vmatpush1.bf16.msra.mxu1 %v3919_v24 }
 0x13f   : > { %3920 = vmatpush1.bf16.msra.mxu0 %v3919_v24  ;;  %3949 = vmatprep.subr.bf16.mxu1 %v3921_v6 }
 0x140   : > { %3922 = vmatprep.subr.bf16.mxu0 %v3921_v6 }
 0x142   : > { %3965 = vmatpush1.bf16.msra.mxu1 %v3923_v34 }
 0x143   : > { %3924 = vmatpush1.bf16.msra.mxu0 %v3923_v34  ;;  %3950 = vmatprep.subr.bf16.mxu1 %v3925_v40 }
 0x144   : > { %3926 = vmatprep.subr.bf16.mxu0 %v3925_v40  ;;  %v1088_v1 = vpop.f32.mrb[16].mxu1 }
 0x145   : > { %v1089_v22 = vpop.f32.mrb[17].mxu1 }
 0x146   : > { %3966 = vmatpush1.bf16.msra.mxu1 %v3927_v32 }
 0x147   : > { %3928 = vmatpush1.bf16.msra.mxu0 %v3927_v32  ;;  %3951 = vmatprep.subr.bf16.mxu1 %v3929_v3 }
 0x148   : > { %3930 = vmatprep.subr.bf16.mxu0 %v3929_v3  ;;  %v1092_v36 = vpop.f32.mrb[18].mxu1 }
 0x149   : > { %v1093_v29 = vpop.f32.mrb[19].mxu1  ;;  %v2472_v36 = vsub.s32 0, %v4910_v12 }
 0x14a   : > { %3967 = vmatpush1.bf16.msra.mxu1 %v3931_v50  ;;  %v2436_v29 = vld [vmem:[%s6893_s3] sm:$0x3] }
 0x14b   : > { %3932 = vmatpush1.bf16.msra.mxu0 %v3931_v50  ;;  %3952 = vmatprep.subr.bf16.mxu1 %v3933_v30 }
 0x14c   : > { %3934 = vmatprep.subr.bf16.mxu0 %v3933_v30 }
 0x14e   : > { %3968 = vmatpush1.bf16.msra.mxu1 %v3935_v4 }
 0x14f   : > { %3936 = vmatpush1.bf16.msra.mxu0 %v3935_v4  ;;  %v2476_v4 = vsub.s32 1, %v4910_v12 }
 0x151   : > { %3344 = vmatmul.mubr.msk.f32.vlgmr.msra.gmra.mrb[32].mxu1 %vm6103_vm11, %v6126_v61 }
 0x152   : > { %3334 = vmatmul.mubr.msk.f32.vlgmr.msra.gmra.mrb[32].mxu0 %vm5679_vm12, %v5849_v44  ;;  %3345 = vmatprep.mubr.msk.f32.mxu1 %vm7023_vm0, %v7022_v23 }
 0x153   : > { %3335 = vmatprep.mubr.msk.f32.mxu0 %vm5885_vm13, %v5893_v39 }
 0x155   : > { %3346 = vmatmul.mubr.msk.f32.gmra.mrb[34].mxu1 %vm7023_vm0, %v6174_v60 }
 0x156   : > { %3336 = vmatmul.mubr.msk.f32.gmra.mrb[34].mxu0 %vm5885_vm13, %v5910_v53  ;;  %3347 = vmatprep.mubr.msk.f32.mxu1 %vm6202_vm9, %v6208_v25 }
 0x157   : > { %3337 = vmatprep.mubr.msk.f32.mxu0 %vm5941_vm14, %v5947_v19 }
 0x159   : > { %3348 = vmatmul.mubr.msk.f32.gmra.mrb[36].mxu1 %vm6202_vm9, %v6221_v59 }
 0x15a   : > { %3338 = vmatmul.mubr.msk.f32.gmra.mrb[4].mxu0 %vm5941_vm14, %v5964_v9  ;;  %3349 = vmatprep.mubr.msk.f32.mxu1 %vm6247_vm8, %v6254_v7 }
 0x15b   : > { %3339 = vmatprep.mubr.msk.f32.mxu0 %vm5995_vm15, %v6001_v63 }
 0x15d   : > { %3350 = vmatmul.mubr.msk.f32.gmra.mrb[38].mxu1 %vm6247_vm8, %v6268_v18 }
 0x15e   : > { %3340 = vmatmul.mubr.msk.f32.gmra.mrb[6].mxu0 %vm5995_vm15, %v6018_v46  ;;  %3351 = vmatprep.mubr.msk.f32.mxu1 %vm6293_vm10, %v5634_v37 }
 0x15f   : > { %3341 = vmatprep.mubr.msk.f32.mxu0 %vm6049_vm1, %v6055_v58 }
 0x161   : > { %3352 = vmatmul.mubr.msk.f32.gmra.mrb[40].mxu1 %vm6293_vm10, %v5634_v37 }
 0x162   : > { %3342 = vmatmul.mubr.msk.f32.gmra.mrb[8].mxu0 %vm6049_vm1, %v7015_v28 }
 0x165   : > { %v1775_v63 = vpop.f32.mrb[20].mxu0 }
 0x166   : > { %v1776_v19 = vpop.f32.mrb[21].mxu0  ;;  %v6830_v63 = vrot.slane %v2436_v29, %v2472_v36 }
 0x169   : > { %v1779_v39 = vpop.f32.mrb[22].mxu0 }
 0x16a   : > { %v1780_v14 = vpop.f32.mrb[23].mxu0  ;;  %v6832_v39 = vrot.slane %v2436_v29, %v2476_v4 }
 0x184   : > { %v1209_v26 = vpop.f32.mrb[20].mxu1 }
 0x185   : > { %v1210_v44 = vpop.f32.mrb[21].mxu1 }
 0x188   : > { %v1213_v53 = vpop.f32.mrb[22].mxu1 }
 0x189   : > { %v1214_v52 = vpop.f32.mrb[23].mxu1 }
 0x1a4   : > { %v1347_v9 = vpop.f32.mrb[24].mxu1 }
 0x1a5   : > { %v1348_v35 = vpop.f32.mrb[25].mxu1 }
 0x1c5   : > { %v2009_v46 = vpop.f32.mrb[24].mxu0 }
 0x1c6   : > { %v2010_v58 = vpop.f32.mrb[25].mxu0 }
 0x1c8   : > { %v1399_v8 = vpop.f32.mrb[26].mxu1 }
 0x1c9   : > { %v2013_v61 = vpop.f32.mrb[26].mxu0  ;;  %v1400_v33 = vpop.f32.mrb[27].mxu1 }
 0x1ca   : > { %v2014_v37 = vpop.f32.mrb[27].mxu0 }
 0x1e4   : > { %v1468_v60 = vpop.f32.mrb[28].mxu1 }
 0x1e5   : > { %v2163_v21 = vpop.f32.mrb[28].mxu0  ;;  %v1469_v56 = vpop.f32.mrb[29].mxu1 }
 0x1e6   : > { %v2164_v25 = vpop.f32.mrb[29].mxu0 }
 0x1e8   : > { %v6809_v59 = vpop.f32.mrb[0].mxu1 }
 0x1e9   : > { %v6811_v5 = vpop.f32.mrb[1].mxu1 }
 0x1ec   : > { %v6813_v7 = vpop.f32.mrb[2].mxu1 }
 0x1ed   : > { %v6815_v18 = vpop.f32.mrb[3].mxu1 }
 0x1f0   : > { %v6817_v10 = vpop.f32.mrb[4].mxu1 }
 0x1f1   : > { %v6819_v28 = vpop.f32.mrb[5].mxu1 }
 0x1f4   : > { %v1490_v23 = vpop.f32.mrb[6].mxu1 }
 0x1f5   : > { %v2185_v43 = vpop.f32.mrb[10].mxu0  ;;  %v1492_v48 = vpop.f32.mrb[7].mxu1 }
 0x1f6   : > { %v3975_v45 = vadd.f32 %v2185_v43, %v1490_v23  ;;  %v2187_v51 = vpop.f32.mrb[11].mxu0 }
 0x1f7   : > { %v3977_v11 = vadd.f32 %v2187_v51, %v1492_v48 }
 0x1f8   : > { %v1496_v47 = vpop.f32.mrb[8].mxu1 }
 0x1f9   : > { %v2191_v57 = vpop.f32.mrb[12].mxu0  ;;  %v1498_v2 = vpop.f32.mrb[9].mxu1 }
 0x1fa   : > { %v3979_v16 = vadd.f32 %v2191_v57, %v1496_v47  ;;  %v2193_v24 = vpop.f32.mrb[13].mxu0 }
 0x1fb   : > { %v3981_v6 = vadd.f32 %v2193_v24, %v1498_v2 }
 0x1fc   : > { %v1502_v15 = vpop.f32.mrb[10].mxu1 }
 0x1fd   : > { %v2197_v20 = vpop.f32.mrb[14].mxu0  ;;  %v1504_v55 = vpop.f32.mrb[11].mxu1 }
 0x1fe   : > { %v3983_v41 = vadd.f32 %v2197_v20, %v1502_v15  ;;  %v2199_v34 = vpop.f32.mrb[15].mxu0 }
 0x1ff   : > { %v3985_v40 = vadd.f32 %v2199_v34, %v1504_v55 }
 0x200   : > { %v1508_v42 = vpop.f32.mrb[12].mxu1 }
 0x201   : > { %v2203_v62 = vpop.f32.mrb[16].mxu0  ;;  %v1510_v38 = vpop.f32.mrb[13].mxu1 }
 0x202   : > { %v3987_v49 = vadd.f32 %v2203_v62, %v1508_v42  ;;  %v2205_v32 = vpop.f32.mrb[17].mxu0 }
 0x203   : > { %v3989_v3 = vadd.f32 %v2205_v32, %v1510_v38 }
 0x204   : > { %v1514_v13 = vpop.f32.mrb[14].mxu1 }
 0x205   : > { %v2209_v27 = vpop.f32.mrb[18].mxu0  ;;  %v1516_v0 = vpop.f32.mrb[15].mxu1 }
 0x206   : > { %v6821_v54 = vadd.f32 %v2209_v27, %v1514_v13  ;;  %v2211_v1 = vpop.f32.mrb[19].mxu0 }
 0x207   : > { %v6823_v22 = vadd.f32 %v2211_v1, %v1516_v0 }
 0x208   : > { %v1520_v50 = vpop.f32.mrb[30].mxu1 }
 0x209   : > { %v2215_v30 = vpop.f32.mrb[30].mxu0  ;;  %v1521_v17 = vpop.f32.mrb[31].mxu1 }
 0x20a   : > { %v2216_v31 = vpop.f32.mrb[31].mxu0 }
 0x224   : > { %v2391_v19 = vpop.f32.mrb[32].mxu1 }
 0x225   : > { %v2365_v14 = vpop.f32.mrb[32].mxu0  ;;  %v3976_v26 = vadd.f32 %v3975_v45, %v2391_v19  ;;  %v2393_v44 = vpop.f32.mrb[33].mxu1 }
 0x226   : > { %v2366_v53 = vpop.f32.mrb[33].mxu0  ;;  %v3978_v52 = vadd.f32 %v3977_v11, %v2393_v44 }
 0x227   : > { %v2486_v12 = vadd.f32 %v3976_v26, %v6830_v63 }
 0x228   : > { %v2487_v9 = vadd.f32 %v3978_v52, %v6832_v39  ;;  %v2397_v35 = vpop.f32.mrb[34].mxu1 }
 0x229   : > { %2502 = vst [vmem:[%s6839_s29 + $0x30] sm:$0xff] %v2486_v12  ;;  %v2369_v46 = vpop.f32.mrb[34].mxu0  ;;  %v3980_v58 = vadd.f32 %v3979_v16, %v2397_v35  ;;  %v2399_v8 = vpop.f32.mrb[35].mxu1 }
 0x22a   : > { %2503 = vst [vmem:[%s6839_s29 + $0x38] sm:$0xff] %v2487_v9  ;;  %v2370_v61 = vpop.f32.mrb[35].mxu0  ;;  %v3982_v33 = vadd.f32 %v3981_v6, %v2399_v8 }
 0x22b   : > { %v2488_v37 = vadd.f32 %v3980_v58, %v6830_v63 }
 0x22c   : > { %v2489_v60 = vadd.f32 %v3982_v33, %v6832_v39  ;;  %v2403_v21 = vpop.f32.mrb[36].mxu1 }
 0x22d   : > { %2504 = vst [vmem:[%s6839_s29 + $0x40] sm:$0xff] %v2488_v37  ;;  %v2373_v56 = vpop.f32.mrb[4].mxu0  ;;  %v3984_v25 = vadd.f32 %v3983_v41, %v2403_v21  ;;  %v2405_v23 = vpop.f32.mrb[37].mxu1 }
 0x22e   : > { %2505 = vst [vmem:[%s6839_s29 + $0x48] sm:$0xff] %v2489_v60  ;;  %v3969_v43 = vadd.f32 %v2373_v56, %v6809_v59  ;;  %v2375_v48 = vpop.f32.mrb[5].mxu0  ;;  %v3986_v45 = vadd.f32 %v3985_v40, %v2405_v23 }
 0x22f   : > { %v2490_v51 = vadd.f32 %v3984_v25, %v6830_v63  ;;  %v3970_v11 = vadd.f32 %v2375_v48, %v6811_v5 }
 0x230   : > { %v2480_v47 = vadd.f32 %v3969_v43, %v6830_v63  ;;  %v2491_v57 = vadd.f32 %v3986_v45, %v6832_v39  ;;  %v2409_v2 = vpop.f32.mrb[38].mxu1 }
 0x231   : > { %2506 = vst [vmem:[%s6839_s29 + $0x50] sm:$0xff] %v2490_v51  ;;  %v2481_v16 = vadd.f32 %v3970_v11, %v6832_v39  ;;  %v2379_v24 = vpop.f32.mrb[6].mxu0  ;;  %v3988_v6 = vadd.f32 %v3987_v49, %v2409_v2  ;;  %v2411_v15 = vpop.f32.mrb[39].mxu1 }
 0x232   : > { %2496 = vst [vmem:[%s6839_s29] sm:$0xff] %v2480_v47  ;;  %2507 = vst [vmem:[%s6839_s29 + $0x58] sm:$0xff] %v2491_v57  ;;  %v3971_v59 = vadd.f32 %v2379_v24, %v6813_v7  ;;  %v2381_v20 = vpop.f32.mrb[7].mxu0  ;;  %v3990_v5 = vadd.f32 %v3989_v3, %v2411_v15 }
 0x233   : > { %2497 = vst [vmem:[%s6839_s29 + $0x8] sm:$0xff] %v2481_v16  ;;  %v2492_v55 = vadd.f32 %v3988_v6, %v6830_v63  ;;  %v3972_v41 = vadd.f32 %v2381_v20, %v6815_v18 }
 0x234   : > { %v2482_v34 = vadd.f32 %v3971_v59, %v6830_v63  ;;  %v2493_v40 = vadd.f32 %v3990_v5, %v6832_v39  ;;  %v2415_v42 = vpop.f32.mrb[40].mxu1 }
 0x235   : > { %2508 = vst [vmem:[%s6839_s29 + $0x60] sm:$0xff] %v2492_v55  ;;  %v2483_v62 = vadd.f32 %v3972_v41, %v6832_v39  ;;  %v2385_v38 = vpop.f32.mrb[8].mxu0  ;;  %v3992_v7 = vadd.f32 %v6821_v54, %v2415_v42  ;;  %v2417_v49 = vpop.f32.mrb[41].mxu1 }
 0x236   : > { %2498 = vst [vmem:[%s6839_s29 + $0x10] sm:$0xff] %v2482_v34  ;;  %2509 = vst [vmem:[%s6839_s29 + $0x68] sm:$0xff] %v2493_v40  ;;  %v3973_v18 = vadd.f32 %v2385_v38, %v6817_v10  ;;  %v2387_v32 = vpop.f32.mrb[9].mxu0  ;;  %v3994_v3 = vadd.f32 %v6823_v22, %v2417_v49 }
 0x237   : > { %2499 = vst [vmem:[%s6839_s29 + $0x18] sm:$0xff] %v2483_v62  ;;  %v2494_v13 = vadd.f32 %v3992_v7, %v6830_v63  ;;  %v3974_v27 = vadd.f32 %v2387_v32, %v6819_v28 }
 0x238   : > { %v2484_v0 = vadd.f32 %v3973_v18, %v6830_v63  ;;  %v2495_v1 = vadd.f32 %v3994_v3, %v6832_v39 }
 0x239   : > { %2510 = vst [vmem:[%s6839_s29 + $0x70] sm:$0xff] %v2494_v13  ;;  %v2485_v54 = vadd.f32 %v3974_v27, %v6832_v39 }
 0x23a   : > { %2500 = vst [vmem:[%s6839_s29 + $0x20] sm:$0xff] %v2484_v0  ;;  %2511 = vst [vmem:[%s6839_s29 + $0x78] sm:$0xff] %v2495_v1 }
 0x23b   : > { %2501 = vst [vmem:[%s6839_s29 + $0x28] sm:$0xff] %v2485_v54 }
 0x23c PF: > { %s14_s17 = sadd.s32 1, %s4160_s17   ;;  %s7037_s15 = smov %s4156_s16 }
 0x23d   : > { %p11_p5 = scmp.ge.s32.totalorder %s14_s17, 4   ;;  %s7038_s16 = smov %s7040_s1 }
 0x23f   :  { %13 = sbr.rel (!%p11_p5) target bundleno = 2 (0x2), region = 192 }
 0x246   :  { %2552 = vsyncmov [#allocation3] }
 0x249   :  { %s2553_s9 = vpop.sfrf %2552 }
 0x24a   :  { %p3355_p6 = scmp.ne.s32.totalorder %s2553_s9, 0 }
 0x24c   :  { %2557 = shalt.err (%p3355_p6)  }
 0x24d   :  { %2559 = vsyncmov [#allocation3 + $0x1] }
 0x250   :  { %s2560_s30 = vpop.sfrf %2559 }
 0x251   :  { %p3356_p7 = scmp.ne.s32.totalorder %s2560_s30, 0 }
 0x253   :  { %2564 = shalt.err (%p3356_p7)  }

</bundles_post_ra>
